<compile_context>
chip_gen: v5e
topology: v5e:2x2
jax: 0.10.0
libtpu: 0.0.40
codegen_flags: <defaults>
</compile_context>

<pallas_src>
import functools

import jax
import jax.numpy as jnp
from jax.experimental import pallas as pl
from jax.experimental.pallas import tpu as pltpu

# Conservative scoped-VMEM raise: above the 16/32 MiB defaults, below v7x's
# 64 MiB physical VMEM.
_VMEM_LIMIT = 48 * 1024 * 1024


def _row_tile(m, cap=1024):
    """Row tile for matmul-style kernels: full M if small, else a big multiple of 16."""
    if m <= cap:
        return m
    return cap - (cap % 16)


def _h_tile(h, cap=256):
    """Spatial row tile that divides h and is a multiple of 8 (or h itself)."""
    if h <= cap:
        return h
    for t in range(cap, 7, -8):
        if h % t == 0:
            return t
    return h


# -----------------------------------------------------------------------------
# Kernel 1: tiled  (im2col-matmul + bias + optional ReLU)  -> generic conv
# -----------------------------------------------------------------------------
def _matmul_bias_act_kernel(x_ref, w_ref, b_ref, o_ref, *, relu):
    acc = jnp.dot(x_ref[...], w_ref[...], preferred_element_type=jnp.float32)
    acc = acc + b_ref[...]                      # (tm, N) + (1, N)
    if relu:
        acc = jnp.maximum(acc, 0.0)
    o_ref[...] = acc.astype(o_ref.dtype)


def matmul_bias_act(x, w, b, relu, out_dtype=jnp.bfloat16):
    """x: (M, K) bf16, w: (K, N) bf16, b: (N,) f32 -> (M, N)."""
    M, K = x.shape
    K2, N = w.shape
    assert K == K2
    tm = _row_tile(M)
    kern = functools.partial(_matmul_bias_act_kernel, relu=relu)
    return pl.pallas_call(
        kern,
        out_shape=jax.ShapeDtypeStruct((M, N), out_dtype),
        grid=(pl.cdiv(M, tm),),
        in_specs=[
            pl.BlockSpec((tm, K), lambda i: (i, 0)),
            pl.BlockSpec((K, N), lambda i: (0, 0)),
            pl.BlockSpec((1, N), lambda i: (0, 0)),
        ],
        out_specs=pl.BlockSpec((tm, N), lambda i: (i, 0)),
        compiler_params=pltpu.CompilerParams(
            dimension_semantics=("parallel",),
            vmem_limit_bytes=_VMEM_LIMIT,
        ),
    )(x, w, b.reshape(1, N))


# -----------------------------------------------------------------------------
# Kernel 2: fused decoder head.
# Per image: zero-padded decoder input (Hd+2, Wd+2, Cd) is loaded to VMEM, the
# nine 3x3 taps are extracted *in VMEM* (no HBM im2col), accumulated through
# nine (Hd*Wd, Cd) x (Cd, 32) MXU matmuls, then ReLU and the Cout=1 classifier.
# -----------------------------------------------------------------------------
def _dec_head_kernel(xpad_ref, w1_ref, b1_ref, w2_ref, b2_ref, o_ref):
    Hp, Wp, Cd = xpad_ref.shape[1], xpad_ref.shape[2], xpad_ref.shape[3]
    Hd, Wd = Hp - 2, Wp - 2
    xp = xpad_ref[0]                                        # (Hp, Wp, Cd) bf16
    acc = None
    for t in range(9):                                      # static unroll
        i, j = t // 3, t % 3
        xs = xp[i:i + Hd, j:j + Wd, :].reshape(Hd * Wd, Cd)
        part = jnp.dot(xs, w1_ref[t], preferred_element_type=jnp.float32)
        acc = part if acc is None else acc + part
    hid = jnp.maximum(acc + b1_ref[...], 0.0).astype(w2_ref.dtype)
    logit = jnp.dot(hid, w2_ref[...], preferred_element_type=jnp.float32) + b2_ref[...]
    o_ref[...] = logit.astype(o_ref.dtype)


def dec_head_fused(xpad, w1_taps, b1, w2, b2):
    """xpad: (N, Hd+2, Wd+2, Cd) bf16, w1_taps: (9, Cd, Nh) bf16 -> (N*Hd*Wd, 1) f32."""
    N, Hp, Wp, Cd = xpad.shape
    Hd, Wd = Hp - 2, Wp - 2
    Nh = w1_taps.shape[2]
    Nc = w2.shape[1]
    # TODO(synk): for very large decoder resolutions, additionally tile Hd with
    #             a halo'd manual DMA; per-image blocks are ample here.
    return pl.pallas_call(
        _dec_head_kernel,
        out_shape=jax.ShapeDtypeStruct((N * Hd * Wd, Nc), jnp.float32),
        grid=(N,),
        in_specs=[
            pl.BlockSpec((1, Hp, Wp, Cd), lambda n: (n, 0, 0, 0)),
            pl.BlockSpec((9, Cd, Nh), lambda n: (0, 0, 0)),
            pl.BlockSpec((1, Nh), lambda n: (0, 0)),
            pl.BlockSpec((Nh, Nc), lambda n: (0, 0)),
            pl.BlockSpec((1, Nc), lambda n: (0, 0)),
        ],
        out_specs=pl.BlockSpec((Hd * Wd, Nc), lambda n: (n, 0)),
        compiler_params=pltpu.CompilerParams(
            dimension_semantics=("parallel",),
            vmem_limit_bytes=_VMEM_LIMIT,
        ),
    )(xpad, w1_taps, b1.reshape(1, Nh), w2, b2.reshape(1, Nc))


# -----------------------------------------------------------------------------
# Kernel 3: fused ASPP  (1x1 branch + dilated 3x3 branch + 1x1 projection).
# The global-pool branch is folded into a per-batch effective bias `be`.
# concat([b0,b1,bp]) @ Wp  ==  b0 @ Wp[:32] + b1 @ Wp[32:64] + bp @ Wp[64:]
# -----------------------------------------------------------------------------
def _aspp_kernel(feat_ref, pat_ref, w0_ref, b0_ref, w1_ref, b1_ref,
                 wp0_ref, wp1_ref, be_ref, o_ref):
    feat = feat_ref[0]                          # (tm, Cin)      bf16
    pat = pat_ref[0]                            # (tm, 9*Cin)    bf16
    br0 = jnp.dot(feat, w0_ref[...], preferred_element_type=jnp.float32) + b0_ref[...]
    br0 = jnp.maximum(br0, 0.0).astype(wp0_ref.dtype)
    br1 = jnp.dot(pat, w1_ref[...], preferred_element_type=jnp.float32) + b1_ref[...]
    br1 = jnp.maximum(br1, 0.0).astype(wp1_ref.dtype)
    acc = jnp.dot(br0, wp0_ref[...], preferred_element_type=jnp.float32)
    acc = acc + jnp.dot(br1, wp1_ref[...], preferred_element_type=jnp.float32)
    acc = acc + be_ref[0]                       # per-batch pooled branch + proj bias
    o_ref[0] = jnp.maximum(acc, 0.0).astype(o_ref.dtype)


def aspp_fused(feat_flat, pat_flat, w0, b0, w1, b1, wp0, wp1, be,
               out_dtype=jnp.bfloat16):
    N, P, Cin = feat_flat.shape
    K1 = pat_flat.shape[-1]
    Cm = w0.shape[1]
    Co = wp0.shape[1]
    tm = _row_tile(P)
    be3 = be.reshape(N, 1, Co).astype(jnp.float32)
    return pl.pallas_call(
        _aspp_kernel,
        out_shape=jax.ShapeDtypeStruct((N, P, Co), out_dtype),
        grid=(N, pl.cdiv(P, tm)),
        in_specs=[
            pl.BlockSpec((1, tm, Cin), lambda n, i: (n, i, 0)),
            pl.BlockSpec((1, tm, K1), lambda n, i: (n, i, 0)),
            pl.BlockSpec((Cin, Cm), lambda n, i: (0, 0)),
            pl.BlockSpec((1, Cm), lambda n, i: (0, 0)),
            pl.BlockSpec((K1, Cm), lambda n, i: (0, 0)),
            pl.BlockSpec((1, Cm), lambda n, i: (0, 0)),
            pl.BlockSpec((Cm, Co), lambda n, i: (0, 0)),
            pl.BlockSpec((Cm, Co), lambda n, i: (0, 0)),
            pl.BlockSpec((1, 1, Co), lambda n, i: (n, 0, 0)),
        ],
        out_specs=pl.BlockSpec((1, tm, Co), lambda n, i: (n, i, 0)),
        compiler_params=pltpu.CompilerParams(
            dimension_semantics=("parallel", "parallel"),
            vmem_limit_bytes=_VMEM_LIMIT,
        ),
    )(feat_flat, pat_flat, w0, b0.reshape(1, Cm), w1, b1.reshape(1, Cm),
      wp0, wp1, be3)


# -----------------------------------------------------------------------------
# Kernel 4: fused tail — bilinear upsample (align_corners=True, separable
# matmuls) + tanh + elementwise multiply with the ORIGINAL NCHW input.
# Lane-dense: last dim is W.  rw is passed pre-transposed as (wl, W).
# -----------------------------------------------------------------------------
def _tail_kernel(rh_ref, rwt_ref, low_ref, x_ref, o_ref):
    low = low_ref[0]                                                      # (hl, wl) f32
    tmp = jnp.dot(rh_ref[...], low, preferred_element_type=jnp.float32)   # (th, wl)
    up = jnp.dot(tmp, rwt_ref[...], preferred_element_type=jnp.float32)   # (th, W)
    att = jnp.tanh(up)
    o_ref[...] = (x_ref[...] * att[None, None, :, :]).astype(o_ref.dtype)


def fused_upsample_tanh_mul(x_nchw, logits_nhw, rh, rwt):
    """x: (N,C,H,W) f32 image, logits: (N,hl,wl) f32, rh: (H,hl), rwt: (wl,W)."""
    N, C, H, W = x_nchw.shape
    hl, wl = logits_nhw.shape[1], logits_nhw.shape[2]
    th = _h_tile(H)
    return pl.pallas_call(
        _tail_kernel,
        out_shape=jax.ShapeDtypeStruct((N, C, H, W), x_nchw.dtype),
        grid=(N, H // th),
        in_specs=[
            pl.BlockSpec((th, hl), lambda n, h: (h, 0)),
            pl.BlockSpec((wl, W), lambda n, h: (0, 0)),
            pl.BlockSpec((1, hl, wl), lambda n, h: (n, 0, 0)),
            pl.BlockSpec((1, C, th, W), lambda n, h: (n, 0, h, 0)),
        ],
        out_specs=pl.BlockSpec((1, C, th, W), lambda n, h: (n, 0, h, 0)),
        compiler_params=pltpu.CompilerParams(
            dimension_semantics=("parallel", "parallel"),
            vmem_limit_bytes=_VMEM_LIMIT,
        ),
    )(rh, rwt, logits_nhw, x_nchw)


# -----------------------------------------------------------------------------
# Glue: im2col, conv wrapper, bilinear matrices, parameter init (plain JAX)
# -----------------------------------------------------------------------------
def im2col(x, kh, kw, stride=1, dilation=1, padding=0):
    """x: (N,H,W,C) -> patches (N,Ho,Wo,kh*kw*C). kh/kw/stride/... are static ints."""
    N, H, W, C = x.shape
    Ho = (H + 2 * padding - dilation * (kh - 1) - 1) // stride + 1
    Wo = (W + 2 * padding - dilation * (kw - 1) - 1) // stride + 1
    if kh == 1 and kw == 1 and stride == 1 and padding == 0:
        return x, Ho, Wo
    xp = jnp.pad(x, ((0, 0), (padding, padding), (padding, padding), (0, 0)))
    cols = []
    for i in range(kh):
        for j in range(kw):
            cols.append(
                xp[:, i * dilation: i * dilation + stride * (Ho - 1) + 1: stride,
                      j * dilation: j * dilation + stride * (Wo - 1) + 1: stride, :])
    return jnp.concatenate(cols, axis=-1), Ho, Wo


def conv2d(x, p, kh, kw, *, stride=1, dilation=1, padding=0, relu=True,
           out_dtype=jnp.bfloat16):
    N = x.shape[0]
    cols, Ho, Wo = im2col(x, kh, kw, stride, dilation, padding)
    out = matmul_bias_act(cols.reshape(N * Ho * Wo, -1), p["w"], p["b"], relu,
                          out_dtype=out_dtype)
    return out.reshape(N, Ho, Wo, -1)


def bilinear_matrix(out_size, in_size):
    """align_corners=True interpolation matrix (out_size, in_size), f32."""
    if in_size == 1:
        return jnp.ones((out_size, 1), jnp.float32)
    if out_size == 1:
        m = jnp.zeros((1, in_size), jnp.float32)
        return m.at[0, 0].set(1.0)
    i = jnp.arange(out_size, dtype=jnp.float32)
    s = i * (in_size - 1) / (out_size - 1)
    f = jnp.floor(s)
    w = s - f
    f = f.astype(jnp.int32)
    f1 = jnp.minimum(f + 1, in_size - 1)
    m = jnp.zeros((out_size, in_size), jnp.float32)
    rows = jnp.arange(out_size)
    m = m.at[rows, f].add(1.0 - w)
    m = m.at[rows, f1].add(w)
    return m


def init_conv(key, kh, kw, cin, cout):
    fan_in = kh * kw * cin
    w = jax.random.normal(key, (fan_in, cout), jnp.float32) * jnp.sqrt(2.0 / fan_in)
    # weights stored bf16 (MXU-native), biases f32; kernel sizes are NOT stored
    # in the traced pytree (they are passed as static args to conv2d).
    return {"w": w.astype(jnp.bfloat16), "b": jnp.zeros((cout,), jnp.float32)}


def init_params(key):
    ks = jax.random.split(key, 11)
    p = {}
    # backbone (stride-16, low-level feat at stride 4)
    p["bb1"] = init_conv(ks[0], 3, 3, 3, 16)
    p["bb2"] = init_conv(ks[1], 3, 3, 16, 24)
    p["bb3"] = init_conv(ks[2], 3, 3, 24, 32)
    p["bb4"] = init_conv(ks[3], 3, 3, 32, 64)
    # ASPP
    p["aspp0"] = init_conv(ks[4], 1, 1, 64, 32)
    p["aspp1"] = init_conv(ks[5], 3, 3, 64, 32)
    p["aspp_pool"] = init_conv(ks[6], 1, 1, 64, 32)
    p["aspp_proj"] = init_conv(ks[7], 1, 1, 96, 32)
    # decoder (num_classes = 1)
    p["dec_low"] = init_conv(ks[8], 1, 1, 24, 16)
    p["dec_conv"] = init_conv(ks[9], 3, 3, 48, 32)
    p["dec_cls"] = init_conv(ks[10], 1, 1, 32, 1)
    return p


# -----------------------------------------------------------------------------
# Full V2 forward
# -----------------------------------------------------------------------------
def v2_forward(params, x_nchw):
    N, C, H, W = x_nchw.shape
    x = jnp.transpose(x_nchw, (0, 2, 3, 1)).astype(jnp.bfloat16)   # conv path: NHWC bf16

    # --- backbone ---
    h1 = conv2d(x, params["bb1"], 3, 3, stride=2, padding=1)       # H/2
    low = conv2d(h1, params["bb2"], 3, 3, stride=2, padding=1)     # H/4 (low_level_feat)
    h3 = conv2d(low, params["bb3"], 3, 3, stride=2, padding=1)     # H/8
    feat = conv2d(h3, params["bb4"], 3, 3, stride=2, padding=1)    # H/16

    # --- ASPP (branches + projection fused; pooled branch folded into bias) ---
    Nf, hf, wf, Cf = feat.shape
    pat, _, _ = im2col(feat, 3, 3, stride=1, dilation=2, padding=2)
    feat_flat = feat.reshape(Nf, hf * wf, Cf)
    pat_flat = pat.reshape(Nf, hf * wf, -1)

    pooled = jnp.mean(feat.astype(jnp.float32), axis=(1, 2))                       # (N, 64)
    bp = jnp.maximum(pooled @ params["aspp_pool"]["w"].astype(jnp.float32)
                     + params["aspp_pool"]["b"], 0.0)                              # (N, 32)
    c0 = params["aspp0"]["w"].shape[1]
    c1 = params["aspp1"]["w"].shape[1]
    wproj = params["aspp_proj"]["w"]
    wp0, wp1, wp2 = wproj[:c0], wproj[c0:c0 + c1], wproj[c0 + c1:]
    be = params["aspp_proj"]["b"][None, :] + bp @ wp2.astype(jnp.float32)          # (N, 32)

    aspp = aspp_fused(feat_flat, pat_flat,
                      params["aspp0"]["w"], params["aspp0"]["b"],
                      params["aspp1"]["w"], params["aspp1"]["b"],
                      wp0, wp1, be)
    aspp = aspp.reshape(Nf, hf, wf, -1)

    # --- decoder ---
    low_p = conv2d(low, params["dec_low"], 1, 1)                   # (N, H/4, W/4, 16)
    hl, wl = low_p.shape[1], low_p.shape[2]
    rh4 = bilinear_matrix(hl, hf)
    rw4 = bilinear_matrix(wl, wf)
    a32 = aspp.astype(jnp.float32)
    aspp_up = jnp.einsum("bj,najc->nabc", rw4,
                         jnp.einsum("ai,nijc->najc", rh4, a32))    # separable x4 upsample
    dec_in = jnp.concatenate([aspp_up.astype(jnp.bfloat16), low_p], axis=-1)  # (N,hl,wl,48)

    # fused decoder head: 3x3 taps extracted in VMEM (no HBM im2col), +ReLU, +1x1 cls
    dec_in_pad = jnp.pad(dec_in, ((0, 0), (1, 1), (1, 1), (0, 0)))            # (N,hl+2,wl+2,48)
    cd = dec_in.shape[-1]
    w1_taps = params["dec_conv"]["w"].reshape(9, cd, -1)                      # (9, 48, 32)
    logits = dec_head_fused(dec_in_pad, w1_taps, params["dec_conv"]["b"],
                            params["dec_cls"]["w"], params["dec_cls"]["b"])
    logits = logits.reshape(N, hl, wl)                             # (N, H/4, W/4) f32

    # --- fused tail: bilinear upsample to (H,W) + tanh + input * attention ---
    # operates directly on the original NCHW input (lane-dense W, no transposes).
    rh = bilinear_matrix(H, hl)                                    # (H, hl)
    rwt = bilinear_matrix(W, wl).T                                 # pre-transposed (wl, W)
    return fused_upsample_tanh_mul(x_nchw, logits, rh, rwt)        # NCHW out


if __name__ == "__main__":
    key = jax.random.PRNGKey(0)
    k_in, k_par = jax.random.split(key)
    x = jax.random.normal(k_in, (2, 3, 32, 32), jnp.float32)       # NCHW, like PyTorch
    params = init_params(k_par)

    out = jax.jit(v2_forward)(params, x)
    out = jax.block_until_ready(out)

    assert out.shape == x.shape, out.shape
    assert bool(jnp.all(jnp.isfinite(out)))
    print("KERNEL_OK")
</pallas_src>

<mosaic_0001>
module attributes {stable_mosaic.version = 11 : i64} {
  func.func @_matmul_bias_act_kernel(%arg0: i32, %arg1: memref<512x27xbf16, #tpu.memory_space<vmem>>, %arg2: memref<27x16xbf16, #tpu.memory_space<vmem>>, %arg3: memref<1x16xf32, #tpu.memory_space<vmem>>, %arg4: memref<512x16xbf16, #tpu.memory_space<vmem>>) attributes {dimension_semantics = [#tpu.dimension_semantics<parallel>], iteration_bounds = array<i64: 1>, scalar_prefetch = 0 : i64, scratch_operands = 0 : i64, tpu.core_type = #tpu.core_type<tc>, window_params = [{transform_indices = @transform_0, window_bounds = array<i64: 512, 27>}, {pipeline_mode = #tpu.pipeline_mode<synchronous>, transform_indices = @transform_1, window_bounds = array<i64: 27, 16>}, {pipeline_mode = #tpu.pipeline_mode<synchronous>, transform_indices = @transform_2, window_bounds = array<i64: 1, 16>}, {transform_indices = @transform_3, window_bounds = array<i64: 512, 16>}]} {
    %c0 = arith.constant 0 : index
    %c0_0 = arith.constant 0 : index
    %0 = vector.load %arg1[%c0, %c0_0] : memref<512x27xbf16, #tpu.memory_space<vmem>>, vector<512x27xbf16>
    %c0_1 = arith.constant 0 : index
    %c0_2 = arith.constant 0 : index
    %1 = vector.load %arg2[%c0_1, %c0_2] : memref<27x16xbf16, #tpu.memory_space<vmem>>, vector<27x16xbf16>
    %cst = arith.constant dense<0.000000e+00> : vector<512x16xf32>
    %2 = tpu.matmul %0, %1, %cst {dimension_numbers = #tpu.dot_dimension_numbers<[1], [0], [0], [1], [0, 0, 1, 1], [], []>} : vector<512x27xbf16>, vector<27x16xbf16>, vector<512x16xf32> -> vector<512x16xf32>
    %c0_3 = arith.constant 0 : index
    %c0_4 = arith.constant 0 : index
    %3 = vector.load %arg3[%c0_3, %c0_4] : memref<1x16xf32, #tpu.memory_space<vmem>>, vector<1x16xf32>
    %4 = vector.broadcast %3 : vector<1x16xf32> to vector<512x16xf32>
    %5 = arith.addf %2, %4 : vector<512x16xf32>
    %cst_5 = arith.constant 0.000000e+00 : f32
    %6 = vector.broadcast %cst_5 : f32 to vector<512x16xf32>
    %7 = arith.maximumf %5, %6 : vector<512x16xf32>
    %8 = arith.truncf %7 : vector<512x16xf32> to vector<512x16xbf16>
    %c0_6 = arith.constant 0 : index
    %c0_7 = arith.constant 0 : index
    %9 = vector.load %arg4[%c0_6, %c0_7] : memref<512x16xbf16, #tpu.memory_space<vmem>>, vector<512x16xbf16>
    tpu.vector_store %arg4[%c0_6, %c0_7], %8 {strides = array<i32>} : memref<512x16xbf16, #tpu.memory_space<vmem>>, vector<512x16xbf16>,
    return
  }
  func.func @transform_0(%arg0: i32) -> (i32, i32) {
    %c0_i32 = arith.constant 0 : i32
    %c0_i32_0 = arith.constant 0 : i32
    return %arg0, %c0_i32 : i32, i32
  }
  func.func @transform_1(%arg0: i32) -> (i32, i32) {
    %c0_i32 = arith.constant 0 : i32
    %c0_i32_0 = arith.constant 0 : i32
    %c0_i32_1 = arith.constant 0 : i32
    return %c0_i32, %c0_i32_0 : i32, i32
  }
  func.func @transform_2(%arg0: i32) -> (i32, i32) {
    %c0_i32 = arith.constant 0 : i32
    %c0_i32_0 = arith.constant 0 : i32
    %c0_i32_1 = arith.constant 0 : i32
    return %c0_i32, %c0_i32_0 : i32, i32
  }
  func.func @transform_3(%arg0: i32) -> (i32, i32) {
    %c0_i32 = arith.constant 0 : i32
    %c0_i32_0 = arith.constant 0 : i32
    return %arg0, %c0_i32 : i32, i32
  }
}

module attributes {stable_mosaic.version = 11 : i64} {
  func.func @_matmul_bias_act_kernel(%arg0: i32, %arg1: memref<128x144xbf16, #tpu.memory_space<vmem>>, %arg2: memref<144x24xbf16, #tpu.memory_space<vmem>>, %arg3: memref<1x24xf32, #tpu.memory_space<vmem>>, %arg4: memref<128x24xbf16, #tpu.memory_space<vmem>>) attributes {dimension_semantics = [#tpu.dimension_semantics<parallel>], iteration_bounds = array<i64: 1>, scalar_prefetch = 0 : i64, scratch_operands = 0 : i64, tpu.core_type = #tpu.core_type<tc>, window_params = [{transform_indices = @transform_0, window_bounds = array<i64: 128, 144>}, {pipeline_mode = #tpu.pipeline_mode<synchronous>, transform_indices = @transform_1, window_bounds = array<i64: 144, 24>}, {pipeline_mode = #tpu.pipeline_mode<synchronous>, transform_indices = @transform_2, window_bounds = array<i64: 1, 24>}, {transform_indices = @transform_3, window_bounds = array<i64: 128, 24>}]} {
    %c0 = arith.constant 0 : index
    %c0_0 = arith.constant 0 : index
    %0 = vector.load %arg1[%c0, %c0_0] : memref<128x144xbf16, #tpu.memory_space<vmem>>, vector<128x144xbf16>
    %c0_1 = arith.constant 0 : index
    %c0_2 = arith.constant 0 : index
    %1 = vector.load %arg2[%c0_1, %c0_2] : memref<144x24xbf16, #tpu.memory_space<vmem>>, vector<144x24xbf16>
    %cst = arith.constant dense<0.000000e+00> : vector<128x24xf32>
    %2 = tpu.matmul %0, %1, %cst {dimension_numbers = #tpu.dot_dimension_numbers<[1], [0], [0], [1], [0, 0, 1, 1], [], []>} : vector<128x144xbf16>, vector<144x24xbf16>, vector<128x24xf32> -> vector<128x24xf32>
    %c0_3 = arith.constant 0 : index
    %c0_4 = arith.constant 0 : index
    %3 = vector.load %arg3[%c0_3, %c0_4] : memref<1x24xf32, #tpu.memory_space<vmem>>, vector<1x24xf32>
    %4 = vector.broadcast %3 : vector<1x24xf32> to vector<128x24xf32>
    %5 = arith.addf %2, %4 : vector<128x24xf32>
    %cst_5 = arith.constant 0.000000e+00 : f32
    %6 = vector.broadcast %cst_5 : f32 to vector<128x24xf32>
    %7 = arith.maximumf %5, %6 : vector<128x24xf32>
    %8 = arith.truncf %7 : vector<128x24xf32> to vector<128x24xbf16>
    %c0_6 = arith.constant 0 : index
    %c0_7 = arith.constant 0 : index
    %9 = vector.load %arg4[%c0_6, %c0_7] : memref<128x24xbf16, #tpu.memory_space<vmem>>, vector<128x24xbf16>
    tpu.vector_store %arg4[%c0_6, %c0_7], %8 {strides = array<i32>} : memref<128x24xbf16, #tpu.memory_space<vmem>>, vector<128x24xbf16>,
    return
  }
  func.func @transform_0(%arg0: i32) -> (i32, i32) {
    %c0_i32 = arith.constant 0 : i32
    %c0_i32_0 = arith.constant 0 : i32
    return %arg0, %c0_i32 : i32, i32
  }
  func.func @transform_1(%arg0: i32) -> (i32, i32) {
    %c0_i32 = arith.constant 0 : i32
    %c0_i32_0 = arith.constant 0 : i32
    %c0_i32_1 = arith.constant 0 : i32
    return %c0_i32, %c0_i32_0 : i32, i32
  }
  func.func @transform_2(%arg0: i32) -> (i32, i32) {
    %c0_i32 = arith.constant 0 : i32
    %c0_i32_0 = arith.constant 0 : i32
    %c0_i32_1 = arith.constant 0 : i32
    return %c0_i32, %c0_i32_0 : i32, i32
  }
  func.func @transform_3(%arg0: i32) -> (i32, i32) {
    %c0_i32 = arith.constant 0 : i32
    %c0_i32_0 = arith.constant 0 : i32
    return %arg0, %c0_i32 : i32, i32
  }
}

module attributes {stable_mosaic.version = 11 : i64} {
  func.func @_matmul_bias_act_kernel(%arg0: i32, %arg1: memref<32x216xbf16, #tpu.memory_space<vmem>>, %arg2: memref<216x32xbf16, #tpu.memory_space<vmem>>, %arg3: memref<1x32xf32, #tpu.memory_space<vmem>>, %arg4: memref<32x32xbf16, #tpu.memory_space<vmem>>) attributes {dimension_semantics = [#tpu.dimension_semantics<parallel>], iteration_bounds = array<i64: 1>, scalar_prefetch = 0 : i64, scratch_operands = 0 : i64, tpu.core_type = #tpu.core_type<tc>, window_params = [{transform_indices = @transform_0, window_bounds = array<i64: 32, 216>}, {pipeline_mode = #tpu.pipeline_mode<synchronous>, transform_indices = @transform_1, window_bounds = array<i64: 216, 32>}, {pipeline_mode = #tpu.pipeline_mode<synchronous>, transform_indices = @transform_2, window_bounds = array<i64: 1, 32>}, {transform_indices = @transform_3, window_bounds = array<i64: 32, 32>}]} {
    %c0 = arith.constant 0 : index
    %c0_0 = arith.constant 0 : index
    %0 = vector.load %arg1[%c0, %c0_0] : memref<32x216xbf16, #tpu.memory_space<vmem>>, vector<32x216xbf16>
    %c0_1 = arith.constant 0 : index
    %c0_2 = arith.constant 0 : index
    %1 = vector.load %arg2[%c0_1, %c0_2] : memref<216x32xbf16, #tpu.memory_space<vmem>>, vector<216x32xbf16>
    %cst = arith.constant dense<0.000000e+00> : vector<32x32xf32>
    %2 = tpu.matmul %0, %1, %cst {dimension_numbers = #tpu.dot_dimension_numbers<[1], [0], [0], [1], [0, 0, 1, 1], [], []>} : vector<32x216xbf16>, vector<216x32xbf16>, vector<32x32xf32> -> vector<32x32xf32>
    %c0_3 = arith.constant 0 : index
    %c0_4 = arith.constant 0 : index
    %3 = vector.load %arg3[%c0_3, %c0_4] : memref<1x32xf32, #tpu.memory_space<vmem>>, vector<1x32xf32>
    %4 = vector.broadcast %3 : vector<1x32xf32> to vector<32x32xf32>
    %5 = arith.addf %2, %4 : vector<32x32xf32>
    %cst_5 = arith.constant 0.000000e+00 : f32
    %6 = vector.broadcast %cst_5 : f32 to vector<32x32xf32>
    %7 = arith.maximumf %5, %6 : vector<32x32xf32>
    %8 = arith.truncf %7 : vector<32x32xf32> to vector<32x32xbf16>
    %c0_6 = arith.constant 0 : index
    %c0_7 = arith.constant 0 : index
    %9 = vector.load %arg4[%c0_6, %c0_7] : memref<32x32xbf16, #tpu.memory_space<vmem>>, vector<32x32xbf16>
    tpu.vector_store %arg4[%c0_6, %c0_7], %8 {strides = array<i32>} : memref<32x32xbf16, #tpu.memory_space<vmem>>, vector<32x32xbf16>,
    return
  }
  func.func @transform_0(%arg0: i32) -> (i32, i32) {
    %c0_i32 = arith.constant 0 : i32
    %c0_i32_0 = arith.constant 0 : i32
    return %arg0, %c0_i32 : i32, i32
  }
  func.func @transform_1(%arg0: i32) -> (i32, i32) {
    %c0_i32 = arith.constant 0 : i32
    %c0_i32_0 = arith.constant 0 : i32
    %c0_i32_1 = arith.constant 0 : i32
    return %c0_i32, %c0_i32_0 : i32, i32
  }
  func.func @transform_2(%arg0: i32) -> (i32, i32) {
    %c0_i32 = arith.constant 0 : i32
    %c0_i32_0 = arith.constant 0 : i32
    %c0_i32_1 = arith.constant 0 : i32
    return %c0_i32, %c0_i32_0 : i32, i32
  }
  func.func @transform_3(%arg0: i32) -> (i32, i32) {
    %c0_i32 = arith.constant 0 : i32
    %c0_i32_0 = arith.constant 0 : i32
    return %arg0, %c0_i32 : i32, i32
  }
}

module attributes {stable_mosaic.version = 11 : i64} {
  func.func @_matmul_bias_act_kernel(%arg0: i32, %arg1: memref<8x288xbf16, #tpu.memory_space<vmem>>, %arg2: memref<288x64xbf16, #tpu.memory_space<vmem>>, %arg3: memref<1x64xf32, #tpu.memory_space<vmem>>, %arg4: memref<8x64xbf16, #tpu.memory_space<vmem>>) attributes {dimension_semantics = [#tpu.dimension_semantics<parallel>], iteration_bounds = array<i64: 1>, scalar_prefetch = 0 : i64, scratch_operands = 0 : i64, tpu.core_type = #tpu.core_type<tc>, window_params = [{transform_indices = @transform_0, window_bounds = array<i64: 8, 288>}, {pipeline_mode = #tpu.pipeline_mode<synchronous>, transform_indices = @transform_1, window_bounds = array<i64: 288, 64>}, {pipeline_mode = #tpu.pipeline_mode<synchronous>, transform_indices = @transform_2, window_bounds = array<i64: 1, 64>}, {transform_indices = @transform_3, window_bounds = array<i64: 8, 64>}]} {
    %c0 = arith.constant 0 : index
    %c0_0 = arith.constant 0 : index
    %0 = vector.load %arg1[%c0, %c0_0] : memref<8x288xbf16, #tpu.memory_space<vmem>>, vector<8x288xbf16>
    %c0_1 = arith.constant 0 : index
    %c0_2 = arith.constant 0 : index
    %1 = vector.load %arg2[%c0_1, %c0_2] : memref<288x64xbf16, #tpu.memory_space<vmem>>, vector<288x64xbf16>
    %cst = arith.constant dense<0.000000e+00> : vector<8x64xf32>
    %2 = tpu.matmul %0, %1, %cst {dimension_numbers = #tpu.dot_dimension_numbers<[1], [0], [0], [1], [0, 0, 1, 1], [], []>} : vector<8x288xbf16>, vector<288x64xbf16>, vector<8x64xf32> -> vector<8x64xf32>
    %c0_3 = arith.constant 0 : index
    %c0_4 = arith.constant 0 : index
    %3 = vector.load %arg3[%c0_3, %c0_4] : memref<1x64xf32, #tpu.memory_space<vmem>>, vector<1x64xf32>
    %4 = vector.broadcast %3 : vector<1x64xf32> to vector<8x64xf32>
    %5 = arith.addf %2, %4 : vector<8x64xf32>
    %cst_5 = arith.constant 0.000000e+00 : f32
    %6 = vector.broadcast %cst_5 : f32 to vector<8x64xf32>
    %7 = arith.maximumf %5, %6 : vector<8x64xf32>
    %8 = arith.truncf %7 : vector<8x64xf32> to vector<8x64xbf16>
    %c0_6 = arith.constant 0 : index
    %c0_7 = arith.constant 0 : index
    %9 = vector.load %arg4[%c0_6, %c0_7] : memref<8x64xbf16, #tpu.memory_space<vmem>>, vector<8x64xbf16>
    tpu.vector_store %arg4[%c0_6, %c0_7], %8 {strides = array<i32>} : memref<8x64xbf16, #tpu.memory_space<vmem>>, vector<8x64xbf16>,
    return
  }
  func.func @transform_0(%arg0: i32) -> (i32, i32) {
    %c0_i32 = arith.constant 0 : i32
    %c0_i32_0 = arith.constant 0 : i32
    return %arg0, %c0_i32 : i32, i32
  }
  func.func @transform_1(%arg0: i32) -> (i32, i32) {
    %c0_i32 = arith.constant 0 : i32
    %c0_i32_0 = arith.constant 0 : i32
    %c0_i32_1 = arith.constant 0 : i32
    return %c0_i32, %c0_i32_0 : i32, i32
  }
  func.func @transform_2(%arg0: i32) -> (i32, i32) {
    %c0_i32 = arith.constant 0 : i32
    %c0_i32_0 = arith.constant 0 : i32
    %c0_i32_1 = arith.constant 0 : i32
    return %c0_i32, %c0_i32_0 : i32, i32
  }
  func.func @transform_3(%arg0: i32) -> (i32, i32) {
    %c0_i32 = arith.constant 0 : i32
    %c0_i32_0 = arith.constant 0 : i32
    return %arg0, %c0_i32 : i32, i32
  }
}

module attributes {stable_mosaic.version = 11 : i64} {
  func.func @_aspp_kernel(%arg0: i32, %arg1: i32, %arg2: memref<1x4x64xbf16, #tpu.memory_space<vmem>>, %arg3: memref<1x4x576xbf16, #tpu.memory_space<vmem>>, %arg4: memref<64x32xbf16, #tpu.memory_space<vmem>>, %arg5: memref<1x32xf32, #tpu.memory_space<vmem>>, %arg6: memref<576x32xbf16, #tpu.memory_space<vmem>>, %arg7: memref<1x32xf32, #tpu.memory_space<vmem>>, %arg8: memref<32x32xbf16, #tpu.memory_space<vmem>>, %arg9: memref<32x32xbf16, #tpu.memory_space<vmem>>, %arg10: memref<1x1x32xf32, #tpu.memory_space<vmem>>, %arg11: memref<1x4x32xbf16, #tpu.memory_space<vmem>>) attributes {dimension_semantics = [#tpu.dimension_semantics<parallel>, #tpu.dimension_semantics<parallel>], iteration_bounds = array<i64: 2, 1>, scalar_prefetch = 0 : i64, scratch_operands = 0 : i64, tpu.core_type = #tpu.core_type<tc>, window_params = [{transform_indices = @transform_0, window_bounds = array<i64: 1, 4, 64>}, {transform_indices = @transform_1, window_bounds = array<i64: 1, 4, 576>}, {pipeline_mode = #tpu.pipeline_mode<synchronous>, transform_indices = @transform_2, window_bounds = array<i64: 64, 32>}, {pipeline_mode = #tpu.pipeline_mode<synchronous>, transform_indices = @transform_3, window_bounds = array<i64: 1, 32>}, {pipeline_mode = #tpu.pipeline_mode<synchronous>, transform_indices = @transform_4, window_bounds = array<i64: 576, 32>}, {pipeline_mode = #tpu.pipeline_mode<synchronous>, transform_indices = @transform_5, window_bounds = array<i64: 1, 32>}, {pipeline_mode = #tpu.pipeline_mode<synchronous>, transform_indices = @transform_6, window_bounds = array<i64: 32, 32>}, {pipeline_mode = #tpu.pipeline_mode<synchronous>, transform_indices = @transform_7, window_bounds = array<i64: 32, 32>}, {transform_indices = @transform_8, window_bounds = array<i64: 1, 1, 32>}, {transform_indices = @transform_9, window_bounds = array<i64: 1, 4, 32>}]} {
    %c0 = arith.constant 0 : index
    %c0_0 = arith.constant 0 : index
    %c0_1 = arith.constant 0 : index
    %0 = vector.load %arg2[%c0, %c0_0, %c0_1] : memref<1x4x64xbf16, #tpu.memory_space<vmem>>, vector<1x4x64xbf16>
    %1 = vector.shape_cast %0 : vector<1x4x64xbf16> to vector<4x64xbf16>
    %c0_2 = arith.constant 0 : index
    %c0_3 = arith.constant 0 : index
    %c0_4 = arith.constant 0 : index
    %2 = vector.load %arg3[%c0_2, %c0_3, %c0_4] : memref<1x4x576xbf16, #tpu.memory_space<vmem>>, vector<1x4x576xbf16>
    %3 = vector.shape_cast %2 : vector<1x4x576xbf16> to vector<4x576xbf16>
    %c0_5 = arith.constant 0 : index
    %c0_6 = arith.constant 0 : index
    %4 = vector.load %arg4[%c0_5, %c0_6] : memref<64x32xbf16, #tpu.memory_space<vmem>>, vector<64x32xbf16>
    %cst = arith.constant dense<0.000000e+00> : vector<4x32xf32>
    %5 = tpu.matmul %1, %4, %cst {dimension_numbers = #tpu.dot_dimension_numbers<[1], [0], [0], [1], [0, 0, 1, 1], [], []>} : vector<4x64xbf16>, vector<64x32xbf16>, vector<4x32xf32> -> vector<4x32xf32>
    %c0_7 = arith.constant 0 : index
    %c0_8 = arith.constant 0 : index
    %6 = vector.load %arg5[%c0_7, %c0_8] : memref<1x32xf32, #tpu.memory_space<vmem>>, vector<1x32xf32>
    %7 = vector.broadcast %6 : vector<1x32xf32> to vector<4x32xf32>
    %8 = arith.addf %5, %7 : vector<4x32xf32>
    %cst_9 = arith.constant 0.000000e+00 : f32
    %9 = vector.broadcast %cst_9 : f32 to vector<4x32xf32>
    %10 = arith.maximumf %8, %9 : vector<4x32xf32>
    %11 = arith.truncf %10 : vector<4x32xf32> to vector<4x32xbf16>
    %c0_10 = arith.constant 0 : index
    %c0_11 = arith.constant 0 : index
    %12 = vector.load %arg6[%c0_10, %c0_11] : memref<576x32xbf16, #tpu.memory_space<vmem>>, vector<576x32xbf16>
    %cst_12 = arith.constant dense<0.000000e+00> : vector<4x32xf32>
    %13 = tpu.matmul %3, %12, %cst_12 {dimension_numbers = #tpu.dot_dimension_numbers<[1], [0], [0], [1], [0, 0, 1, 1], [], []>} : vector<4x576xbf16>, vector<576x32xbf16>, vector<4x32xf32> -> vector<4x32xf32>
    %c0_13 = arith.constant 0 : index
    %c0_14 = arith.constant 0 : index
    %14 = vector.load %arg7[%c0_13, %c0_14] : memref<1x32xf32, #tpu.memory_space<vmem>>, vector<1x32xf32>
    %15 = vector.broadcast %14 : vector<1x32xf32> to vector<4x32xf32>
    %16 = arith.addf %13, %15 : vector<4x32xf32>
    %cst_15 = arith.constant 0.000000e+00 : f32
    %17 = vector.broadcast %cst_15 : f32 to vector<4x32xf32>
    %18 = arith.maximumf %16, %17 : vector<4x32xf32>
    %19 = arith.truncf %18 : vector<4x32xf32> to vector<4x32xbf16>
    %c0_16 = arith.constant 0 : index
    %c0_17 = arith.constant 0 : index
    %20 = vector.load %arg8[%c0_16, %c0_17] : memref<32x32xbf16, #tpu.memory_space<vmem>>, vector<32x32xbf16>
    %cst_18 = arith.constant dense<0.000000e+00> : vector<4x32xf32>
    %21 = tpu.matmul %11, %20, %cst_18 {dimension_numbers = #tpu.dot_dimension_numbers<[1], [0], [0], [1], [0, 0, 1, 1], [], []>} : vector<4x32xbf16>, vector<32x32xbf16>, vector<4x32xf32> -> vector<4x32xf32>
    %c0_19 = arith.constant 0 : index
    %c0_20 = arith.constant 0 : index
    %22 = vector.load %arg9[%c0_19, %c0_20] : memref<32x32xbf16, #tpu.memory_space<vmem>>, vector<32x32xbf16>
    %cst_21 = arith.constant dense<0.000000e+00> : vector<4x32xf32>
    %23 = tpu.matmul %19, %22, %cst_21 {dimension_numbers = #tpu.dot_dimension_numbers<[1], [0], [0], [1], [0, 0, 1, 1], [], []>} : vector<4x32xbf16>, vector<32x32xbf16>, vector<4x32xf32> -> vector<4x32xf32>
    %24 = arith.addf %21, %23 : vector<4x32xf32>
    %c0_22 = arith.constant 0 : index
    %c0_23 = arith.constant 0 : index
    %c0_24 = arith.constant 0 : index
    %25 = vector.load %arg10[%c0_22, %c0_23, %c0_24] : memref<1x1x32xf32, #tpu.memory_space<vmem>>, vector<1x1x32xf32>
    %26 = vector.shape_cast %25 : vector<1x1x32xf32> to vector<1x32xf32>
    %27 = vector.broadcast %26 : vector<1x32xf32> to vector<4x32xf32>
    %28 = arith.addf %24, %27 : vector<4x32xf32>
    %cst_25 = arith.constant 0.000000e+00 : f32
    %29 = vector.broadcast %cst_25 : f32 to vector<4x32xf32>
    %30 = arith.maximumf %28, %29 : vector<4x32xf32>
    %31 = arith.truncf %30 : vector<4x32xf32> to vector<4x32xbf16>
    %c0_26 = arith.constant 0 : index
    %c0_27 = arith.constant 0 : index
    %c0_28 = arith.constant 0 : index
    %32 = vector.load %arg11[%c0_26, %c0_27, %c0_28] : memref<1x4x32xbf16, #tpu.memory_space<vmem>>, vector<1x4x32xbf16>
    %33 = vector.shape_cast %32 : vector<1x4x32xbf16> to vector<4x32xbf16>
    %34 = vector.shape_cast %31 : vector<4x32xbf16> to vector<1x4x32xbf16>
    tpu.vector_store %arg11[%c0_26, %c0_27, %c0_28], %34 {strides = array<i32>} : memref<1x4x32xbf16, #tpu.memory_space<vmem>>, vector<1x4x32xbf16>,
    return
  }
  func.func @transform_0(%arg0: i32, %arg1: i32) -> (i32, i32, i32) {
    %c0_i32 = arith.constant 0 : i32
    %c0_i32_0 = arith.constant 0 : i32
    return %arg0, %arg1, %c0_i32 : i32, i32, i32
  }
  func.func @transform_1(%arg0: i32, %arg1: i32) -> (i32, i32, i32) {
    %c0_i32 = arith.constant 0 : i32
    %c0_i32_0 = arith.constant 0 : i32
    return %arg0, %arg1, %c0_i32 : i32, i32, i32
  }
  func.func @transform_2(%arg0: i32, %arg1: i32) -> (i32, i32) {
    %c0_i32 = arith.constant 0 : i32
    %c0_i32_0 = arith.constant 0 : i32
    %c0_i32_1 = arith.constant 0 : i32
    return %c0_i32, %c0_i32_0 : i32, i32
  }
  func.func @transform_3(%arg0: i32, %arg1: i32) -> (i32, i32) {
    %c0_i32 = arith.constant 0 : i32
    %c0_i32_0 = arith.constant 0 : i32
    %c0_i32_1 = arith.constant 0 : i32
    return %c0_i32, %c0_i32_0 : i32, i32
  }
  func.func @transform_4(%arg0: i32, %arg1: i32) -> (i32, i32) {
    %c0_i32 = arith.constant 0 : i32
    %c0_i32_0 = arith.constant 0 : i32
    %c0_i32_1 = arith.constant 0 : i32
    return %c0_i32, %c0_i32_0 : i32, i32
  }
  func.func @transform_5(%arg0: i32, %arg1: i32) -> (i32, i32) {
    %c0_i32 = arith.constant 0 : i32
    %c0_i32_0 = arith.constant 0 : i32
    %c0_i32_1 = arith.constant 0 : i32
    return %c0_i32, %c0_i32_0 : i32, i32
  }
  func.func @transform_6(%arg0: i32, %arg1: i32) -> (i32, i32) {
    %c0_i32 = arith.constant 0 : i32
    %c0_i32_0 = arith.constant 0 : i32
    %c0_i32_1 = arith.constant 0 : i32
    return %c0_i32, %c0_i32_0 : i32, i32
  }
  func.func @transform_7(%arg0: i32, %arg1: i32) -> (i32, i32) {
    %c0_i32 = arith.constant 0 : i32
    %c0_i32_0 = arith.constant 0 : i32
    %c0_i32_1 = arith.constant 0 : i32
    return %c0_i32, %c0_i32_0 : i32, i32
  }
  func.func @transform_8(%arg0: i32, %arg1: i32) -> (i32, i32, i32) {
    %c0_i32 = arith.constant 0 : i32
    %c0_i32_0 = arith.constant 0 : i32
    %c0_i32_1 = arith.constant 0 : i32
    return %arg0, %c0_i32, %c0_i32_0 : i32, i32, i32
  }
  func.func @transform_9(%arg0: i32, %arg1: i32) -> (i32, i32, i32) {
    %c0_i32 = arith.constant 0 : i32
    %c0_i32_0 = arith.constant 0 : i32
    return %arg0, %arg1, %c0_i32 : i32, i32, i32
  }
}

module attributes {stable_mosaic.version = 11 : i64} {
  func.func @_matmul_bias_act_kernel(%arg0: i32, %arg1: memref<128x24xbf16, #tpu.memory_space<vmem>>, %arg2: memref<24x16xbf16, #tpu.memory_space<vmem>>, %arg3: memref<1x16xf32, #tpu.memory_space<vmem>>, %arg4: memref<128x16xbf16, #tpu.memory_space<vmem>>) attributes {dimension_semantics = [#tpu.dimension_semantics<parallel>], iteration_bounds = array<i64: 1>, scalar_prefetch = 0 : i64, scratch_operands = 0 : i64, tpu.core_type = #tpu.core_type<tc>, window_params = [{transform_indices = @transform_0, window_bounds = array<i64: 128, 24>}, {pipeline_mode = #tpu.pipeline_mode<synchronous>, transform_indices = @transform_1, window_bounds = array<i64: 24, 16>}, {pipeline_mode = #tpu.pipeline_mode<synchronous>, transform_indices = @transform_2, window_bounds = array<i64: 1, 16>}, {transform_indices = @transform_3, window_bounds = array<i64: 128, 16>}]} {
    %c0 = arith.constant 0 : index
    %c0_0 = arith.constant 0 : index
    %0 = vector.load %arg1[%c0, %c0_0] : memref<128x24xbf16, #tpu.memory_space<vmem>>, vector<128x24xbf16>
    %c0_1 = arith.constant 0 : index
    %c0_2 = arith.constant 0 : index
    %1 = vector.load %arg2[%c0_1, %c0_2] : memref<24x16xbf16, #tpu.memory_space<vmem>>, vector<24x16xbf16>
    %cst = arith.constant dense<0.000000e+00> : vector<128x16xf32>
    %2 = tpu.matmul %0, %1, %cst {dimension_numbers = #tpu.dot_dimension_numbers<[1], [0], [0], [1], [0, 0, 1, 1], [], []>} : vector<128x24xbf16>, vector<24x16xbf16>, vector<128x16xf32> -> vector<128x16xf32>
    %c0_3 = arith.constant 0 : index
    %c0_4 = arith.constant 0 : index
    %3 = vector.load %arg3[%c0_3, %c0_4] : memref<1x16xf32, #tpu.memory_space<vmem>>, vector<1x16xf32>
    %4 = vector.broadcast %3 : vector<1x16xf32> to vector<128x16xf32>
    %5 = arith.addf %2, %4 : vector<128x16xf32>
    %cst_5 = arith.constant 0.000000e+00 : f32
    %6 = vector.broadcast %cst_5 : f32 to vector<128x16xf32>
    %7 = arith.maximumf %5, %6 : vector<128x16xf32>
    %8 = arith.truncf %7 : vector<128x16xf32> to vector<128x16xbf16>
    %c0_6 = arith.constant 0 : index
    %c0_7 = arith.constant 0 : index
    %9 = vector.load %arg4[%c0_6, %c0_7] : memref<128x16xbf16, #tpu.memory_space<vmem>>, vector<128x16xbf16>
    tpu.vector_store %arg4[%c0_6, %c0_7], %8 {strides = array<i32>} : memref<128x16xbf16, #tpu.memory_space<vmem>>, vector<128x16xbf16>,
    return
  }
  func.func @transform_0(%arg0: i32) -> (i32, i32) {
    %c0_i32 = arith.constant 0 : i32
    %c0_i32_0 = arith.constant 0 : i32
    return %arg0, %c0_i32 : i32, i32
  }
  func.func @transform_1(%arg0: i32) -> (i32, i32) {
    %c0_i32 = arith.constant 0 : i32
    %c0_i32_0 = arith.constant 0 : i32
    %c0_i32_1 = arith.constant 0 : i32
    return %c0_i32, %c0_i32_0 : i32, i32
  }
  func.func @transform_2(%arg0: i32) -> (i32, i32) {
    %c0_i32 = arith.constant 0 : i32
    %c0_i32_0 = arith.constant 0 : i32
    %c0_i32_1 = arith.constant 0 : i32
    return %c0_i32, %c0_i32_0 : i32, i32
  }
  func.func @transform_3(%arg0: i32) -> (i32, i32) {
    %c0_i32 = arith.constant 0 : i32
    %c0_i32_0 = arith.constant 0 : i32
    return %arg0, %c0_i32 : i32, i32
  }
}

module attributes {stable_mosaic.version = 11 : i64} {
  func.func @_dec_head_kernel(%arg0: i32, %arg1: memref<1x10x10x48xbf16, #tpu.memory_space<vmem>>, %arg2: memref<9x48x32xbf16, #tpu.memory_space<vmem>>, %arg3: memref<1x32xf32, #tpu.memory_space<vmem>>, %arg4: memref<32x1xbf16, #tpu.memory_space<vmem>>, %arg5: memref<1x1xf32, #tpu.memory_space<vmem>>, %arg6: memref<64x1xf32, #tpu.memory_space<vmem>>) attributes {dimension_semantics = [#tpu.dimension_semantics<parallel>], iteration_bounds = array<i64: 2>, scalar_prefetch = 0 : i64, scratch_operands = 0 : i64, tpu.core_type = #tpu.core_type<tc>, window_params = [{transform_indices = @transform_0, window_bounds = array<i64: 1, 10, 10, 48>}, {pipeline_mode = #tpu.pipeline_mode<synchronous>, transform_indices = @transform_1, window_bounds = array<i64: 9, 48, 32>}, {pipeline_mode = #tpu.pipeline_mode<synchronous>, transform_indices = @transform_2, window_bounds = array<i64: 1, 32>}, {pipeline_mode = #tpu.pipeline_mode<synchronous>, transform_indices = @transform_3, window_bounds = array<i64: 32, 1>}, {pipeline_mode = #tpu.pipeline_mode<synchronous>, transform_indices = @transform_4, window_bounds = array<i64: 1, 1>}, {transform_indices = @transform_5, window_bounds = array<i64: 64, 1>}]} {
    %c0 = arith.constant 0 : index
    %c0_0 = arith.constant 0 : index
    %c0_1 = arith.constant 0 : index
    %c0_2 = arith.constant 0 : index
    %0 = vector.load %arg1[%c0, %c0_0, %c0_1, %c0_2] : memref<1x10x10x48xbf16, #tpu.memory_space<vmem>>, vector<1x10x10x48xbf16>
    %1 = vector.shape_cast %0 : vector<1x10x10x48xbf16> to vector<10x10x48xbf16>
    %2 = vector.extract_strided_slice %1 {offsets = [0, 0, 0], sizes = [8, 8, 48], strides = [1, 1, 1]} : vector<10x10x48xbf16> to vector<8x8x48xbf16>
    %3 = vector.shape_cast %2 : vector<8x8x48xbf16> to vector<64x48xbf16>
    %c0_3 = arith.constant 0 : index
    %c0_4 = arith.constant 0 : index
    %c0_5 = arith.constant 0 : index
    %4 = vector.load %arg2[%c0_3, %c0_4, %c0_5] : memref<9x48x32xbf16, #tpu.memory_space<vmem>>, vector<1x48x32xbf16>
    %5 = vector.shape_cast %4 : vector<1x48x32xbf16> to vector<48x32xbf16>
    %cst = arith.constant dense<0.000000e+00> : vector<64x32xf32>
    %6 = tpu.matmul %3, %5, %cst {dimension_numbers = #tpu.dot_dimension_numbers<[1], [0], [0], [1], [0, 0, 1, 1], [], []>} : vector<64x48xbf16>, vector<48x32xbf16>, vector<64x32xf32> -> vector<64x32xf32>
    %7 = vector.extract_strided_slice %1 {offsets = [0, 1, 0], sizes = [8, 8, 48], strides = [1, 1, 1]} : vector<10x10x48xbf16> to vector<8x8x48xbf16>
    %8 = vector.shape_cast %7 : vector<8x8x48xbf16> to vector<64x48xbf16>
    %c1 = arith.constant 1 : index
    %c0_6 = arith.constant 0 : index
    %c0_7 = arith.constant 0 : index
    %9 = vector.load %arg2[%c1, %c0_6, %c0_7] : memref<9x48x32xbf16, #tpu.memory_space<vmem>>, vector<1x48x32xbf16>
    %10 = vector.shape_cast %9 : vector<1x48x32xbf16> to vector<48x32xbf16>
    %cst_8 = arith.constant dense<0.000000e+00> : vector<64x32xf32>
    %11 = tpu.matmul %8, %10, %cst_8 {dimension_numbers = #tpu.dot_dimension_numbers<[1], [0], [0], [1], [0, 0, 1, 1], [], []>} : vector<64x48xbf16>, vector<48x32xbf16>, vector<64x32xf32> -> vector<64x32xf32>
    %12 = arith.addf %6, %11 : vector<64x32xf32>
    %13 = vector.extract_strided_slice %1 {offsets = [0, 2, 0], sizes = [8, 8, 48], strides = [1, 1, 1]} : vector<10x10x48xbf16> to vector<8x8x48xbf16>
    %14 = vector.shape_cast %13 : vector<8x8x48xbf16> to vector<64x48xbf16>
    %c2 = arith.constant 2 : index
    %c0_9 = arith.constant 0 : index
    %c0_10 = arith.constant 0 : index
    %15 = vector.load %arg2[%c2, %c0_9, %c0_10] : memref<9x48x32xbf16, #tpu.memory_space<vmem>>, vector<1x48x32xbf16>
    %16 = vector.shape_cast %15 : vector<1x48x32xbf16> to vector<48x32xbf16>
    %cst_11 = arith.constant dense<0.000000e+00> : vector<64x32xf32>
    %17 = tpu.matmul %14, %16, %cst_11 {dimension_numbers = #tpu.dot_dimension_numbers<[1], [0], [0], [1], [0, 0, 1, 1], [], []>} : vector<64x48xbf16>, vector<48x32xbf16>, vector<64x32xf32> -> vector<64x32xf32>
    %18 = arith.addf %12, %17 : vector<64x32xf32>
    %19 = vector.extract_strided_slice %1 {offsets = [1, 0, 0], sizes = [8, 8, 48], strides = [1, 1, 1]} : vector<10x10x48xbf16> to vector<8x8x48xbf16>
    %20 = vector.shape_cast %19 : vector<8x8x48xbf16> to vector<64x48xbf16>
    %c3 = arith.constant 3 : index
    %c0_12 = arith.constant 0 : index
    %c0_13 = arith.constant 0 : index
    %21 = vector.load %arg2[%c3, %c0_12, %c0_13] : memref<9x48x32xbf16, #tpu.memory_space<vmem>>, vector<1x48x32xbf16>
    %22 = vector.shape_cast %21 : vector<1x48x32xbf16> to vector<48x32xbf16>
    %cst_14 = arith.constant dense<0.000000e+00> : vector<64x32xf32>
    %23 = tpu.matmul %20, %22, %cst_14 {dimension_numbers = #tpu.dot_dimension_numbers<[1], [0], [0], [1], [0, 0, 1, 1], [], []>} : vector<64x48xbf16>, vector<48x32xbf16>, vector<64x32xf32> -> vector<64x32xf32>
    %24 = arith.addf %18, %23 : vector<64x32xf32>
    %25 = vector.extract_strided_slice %1 {offsets = [1, 1, 0], sizes = [8, 8, 48], strides = [1, 1, 1]} : vector<10x10x48xbf16> to vector<8x8x48xbf16>
    %26 = vector.shape_cast %25 : vector<8x8x48xbf16> to vector<64x48xbf16>
    %c4 = arith.constant 4 : index
    %c0_15 = arith.constant 0 : index
    %c0_16 = arith.constant 0 : index
    %27 = vector.load %arg2[%c4, %c0_15, %c0_16] : memref<9x48x32xbf16, #tpu.memory_space<vmem>>, vector<1x48x32xbf16>
    %28 = vector.shape_cast %27 : vector<1x48x32xbf16> to vector<48x32xbf16>
    %cst_17 = arith.constant dense<0.000000e+00> : vector<64x32xf32>
    %29 = tpu.matmul %26, %28, %cst_17 {dimension_numbers = #tpu.dot_dimension_numbers<[1], [0], [0], [1], [0, 0, 1, 1], [], []>} : vector<64x48xbf16>, vector<48x32xbf16>, vector<64x32xf32> -> vector<64x32xf32>
    %30 = arith.addf %24, %29 : vector<64x32xf32>
    %31 = vector.extract_strided_slice %1 {offsets = [1, 2, 0], sizes = [8, 8, 48], strides = [1, 1, 1]} : vector<10x10x48xbf16> to vector<8x8x48xbf16>
    %32 = vector.shape_cast %31 : vector<8x8x48xbf16> to vector<64x48xbf16>
    %c5 = arith.constant 5 : index
    %c0_18 = arith.constant 0 : index
    %c0_19 = arith.constant 0 : index
    %33 = vector.load %arg2[%c5, %c0_18, %c0_19] : memref<9x48x32xbf16, #tpu.memory_space<vmem>>, vector<1x48x32xbf16>
    %34 = vector.shape_cast %33 : vector<1x48x32xbf16> to vector<48x32xbf16>
    %cst_20 = arith.constant dense<0.000000e+00> : vector<64x32xf32>
    %35 = tpu.matmul %32, %34, %cst_20 {dimension_numbers = #tpu.dot_dimension_numbers<[1], [0], [0], [1], [0, 0, 1, 1], [], []>} : vector<64x48xbf16>, vector<48x32xbf16>, vector<64x32xf32> -> vector<64x32xf32>
    %36 = arith.addf %30, %35 : vector<64x32xf32>
    %37 = vector.extract_strided_slice %1 {offsets = [2, 0, 0], sizes = [8, 8, 48], strides = [1, 1, 1]} : vector<10x10x48xbf16> to vector<8x8x48xbf16>
    %38 = vector.shape_cast %37 : vector<8x8x48xbf16> to vector<64x48xbf16>
    %c6 = arith.constant 6 : index
    %c0_21 = arith.constant 0 : index
    %c0_22 = arith.constant 0 : index
    %39 = vector.load %arg2[%c6, %c0_21, %c0_22] : memref<9x48x32xbf16, #tpu.memory_space<vmem>>, vector<1x48x32xbf16>
    %40 = vector.shape_cast %39 : vector<1x48x32xbf16> to vector<48x32xbf16>
    %cst_23 = arith.constant dense<0.000000e+00> : vector<64x32xf32>
    %41 = tpu.matmul %38, %40, %cst_23 {dimension_numbers = #tpu.dot_dimension_numbers<[1], [0], [0], [1], [0, 0, 1, 1], [], []>} : vector<64x48xbf16>, vector<48x32xbf16>, vector<64x32xf32> -> vector<64x32xf32>
    %42 = arith.addf %36, %41 : vector<64x32xf32>
    %43 = vector.extract_strided_slice %1 {offsets = [2, 1, 0], sizes = [8, 8, 48], strides = [1, 1, 1]} : vector<10x10x48xbf16> to vector<8x8x48xbf16>
    %44 = vector.shape_cast %43 : vector<8x8x48xbf16> to vector<64x48xbf16>
    %c7 = arith.constant 7 : index
    %c0_24 = arith.constant 0 : index
    %c0_25 = arith.constant 0 : index
    %45 = vector.load %arg2[%c7, %c0_24, %c0_25] : memref<9x48x32xbf16, #tpu.memory_space<vmem>>, vector<1x48x32xbf16>
    %46 = vector.shape_cast %45 : vector<1x48x32xbf16> to vector<48x32xbf16>
    %cst_26 = arith.constant dense<0.000000e+00> : vector<64x32xf32>
    %47 = tpu.matmul %44, %46, %cst_26 {dimension_numbers = #tpu.dot_dimension_numbers<[1], [0], [0], [1], [0, 0, 1, 1], [], []>} : vector<64x48xbf16>, vector<48x32xbf16>, vector<64x32xf32> -> vector<64x32xf32>
    %48 = arith.addf %42, %47 : vector<64x32xf32>
    %49 = vector.extract_strided_slice %1 {offsets = [2, 2, 0], sizes = [8, 8, 48], strides = [1, 1, 1]} : vector<10x10x48xbf16> to vector<8x8x48xbf16>
    %50 = vector.shape_cast %49 : vector<8x8x48xbf16> to vector<64x48xbf16>
    %c8 = arith.constant 8 : index
    %c0_27 = arith.constant 0 : index
    %c0_28 = arith.constant 0 : index
    %51 = vector.load %arg2[%c8, %c0_27, %c0_28] : memref<9x48x32xbf16, #tpu.memory_space<vmem>>, vector<1x48x32xbf16>
    %52 = vector.shape_cast %51 : vector<1x48x32xbf16> to vector<48x32xbf16>
    %cst_29 = arith.constant dense<0.000000e+00> : vector<64x32xf32>
    %53 = tpu.matmul %50, %52, %cst_29 {dimension_numbers = #tpu.dot_dimension_numbers<[1], [0], [0], [1], [0, 0, 1, 1], [], []>} : vector<64x48xbf16>, vector<48x32xbf16>, vector<64x32xf32> -> vector<64x32xf32>
    %54 = arith.addf %48, %53 : vector<64x32xf32>
    %c0_30 = arith.constant 0 : index
    %c0_31 = arith.constant 0 : index
    %55 = vector.load %arg3[%c0_30, %c0_31] : memref<1x32xf32, #tpu.memory_space<vmem>>, vector<1x32xf32>
    %56 = vector.broadcast %55 : vector<1x32xf32> to vector<64x32xf32>
    %57 = arith.addf %54, %56 : vector<64x32xf32>
    %cst_32 = arith.constant 0.000000e+00 : f32
    %58 = vector.broadcast %cst_32 : f32 to vector<64x32xf32>
    %59 = arith.maximumf %57, %58 : vector<64x32xf32>
    %60 = arith.truncf %59 : vector<64x32xf32> to vector<64x32xbf16>
    %c0_33 = arith.constant 0 : index
    %c0_34 = arith.constant 0 : index
    %61 = vector.load %arg4[%c0_33, %c0_34] : memref<32x1xbf16, #tpu.memory_space<vmem>>, vector<32x1xbf16>
    %cst_35 = arith.constant dense<0.000000e+00> : vector<64x1xf32>
    %62 = tpu.matmul %60, %61, %cst_35 {dimension_numbers = #tpu.dot_dimension_numbers<[1], [0], [0], [1], [0, 0, 1, 1], [], []>} : vector<64x32xbf16>, vector<32x1xbf16>, vector<64x1xf32> -> vector<64x1xf32>
    %c0_36 = arith.constant 0 : index
    %c0_37 = arith.constant 0 : index
    %63 = vector.load %arg5[%c0_36, %c0_37] : memref<1x1xf32, #tpu.memory_space<vmem>>, vector<1x1xf32>
    %64 = vector.broadcast %63 : vector<1x1xf32> to vector<64x1xf32>
    %65 = arith.addf %62, %64 : vector<64x1xf32>
    %c0_38 = arith.constant 0 : index
    %c0_39 = arith.constant 0 : index
    %66 = vector.load %arg6[%c0_38, %c0_39] : memref<64x1xf32, #tpu.memory_space<vmem>>, vector<64x1xf32>
    tpu.vector_store %arg6[%c0_38, %c0_39], %65 {strides = array<i32>} : memref<64x1xf32, #tpu.memory_space<vmem>>, vector<64x1xf32>,
    return
  }
  func.func @transform_0(%arg0: i32) -> (i32, i32, i32, i32) {
    %c0_i32 = arith.constant 0 : i32
    %c0_i32_0 = arith.constant 0 : i32
    %c0_i32_1 = arith.constant 0 : i32
    %c0_i32_2 = arith.constant 0 : i32
    return %arg0, %c0_i32, %c0_i32_0, %c0_i32_1 : i32, i32, i32, i32
  }
  func.func @transform_1(%arg0: i32) -> (i32, i32, i32) {
    %c0_i32 = arith.constant 0 : i32
    %c0_i32_0 = arith.constant 0 : i32
    %c0_i32_1 = arith.constant 0 : i32
    %c0_i32_2 = arith.constant 0 : i32
    return %c0_i32, %c0_i32_0, %c0_i32_1 : i32, i32, i32
  }
  func.func @transform_2(%arg0: i32) -> (i32, i32) {
    %c0_i32 = arith.constant 0 : i32
    %c0_i32_0 = arith.constant 0 : i32
    %c0_i32_1 = arith.constant 0 : i32
    return %c0_i32, %c0_i32_0 : i32, i32
  }
  func.func @transform_3(%arg0: i32) -> (i32, i32) {
    %c0_i32 = arith.constant 0 : i32
    %c0_i32_0 = arith.constant 0 : i32
    %c0_i32_1 = arith.constant 0 : i32
    return %c0_i32, %c0_i32_0 : i32, i32
  }
  func.func @transform_4(%arg0: i32) -> (i32, i32) {
    %c0_i32 = arith.constant 0 : i32
    %c0_i32_0 = arith.constant 0 : i32
    %c0_i32_1 = arith.constant 0 : i32
    return %c0_i32, %c0_i32_0 : i32, i32
  }
  func.func @transform_5(%arg0: i32) -> (i32, i32) {
    %c0_i32 = arith.constant 0 : i32
    %c0_i32_0 = arith.constant 0 : i32
    return %arg0, %c0_i32 : i32, i32
  }
}

module attributes {stable_mosaic.version = 11 : i64} {
  func.func @_tail_kernel(%arg0: i32, %arg1: i32, %arg2: memref<32x8xf32, #tpu.memory_space<vmem>>, %arg3: memref<8x32xf32, #tpu.memory_space<vmem>>, %arg4: memref<1x8x8xf32, #tpu.memory_space<vmem>>, %arg5: memref<1x3x32x32xf32, #tpu.memory_space<vmem>>, %arg6: memref<1x3x32x32xf32, #tpu.memory_space<vmem>>) attributes {dimension_semantics = [#tpu.dimension_semantics<parallel>, #tpu.dimension_semantics<parallel>], iteration_bounds = array<i64: 2, 1>, scalar_prefetch = 0 : i64, scratch_operands = 0 : i64, tpu.core_type = #tpu.core_type<tc>, window_params = [{transform_indices = @transform_0, window_bounds = array<i64: 32, 8>}, {pipeline_mode = #tpu.pipeline_mode<synchronous>, transform_indices = @transform_1, window_bounds = array<i64: 8, 32>}, {transform_indices = @transform_2, window_bounds = array<i64: 1, 8, 8>}, {transform_indices = @transform_3, window_bounds = array<i64: 1, 3, 32, 32>}, {transform_indices = @transform_4, window_bounds = array<i64: 1, 3, 32, 32>}]} {
    %c0 = arith.constant 0 : index
    %c0_0 = arith.constant 0 : index
    %c0_1 = arith.constant 0 : index
    %0 = vector.load %arg4[%c0, %c0_0, %c0_1] : memref<1x8x8xf32, #tpu.memory_space<vmem>>, vector<1x8x8xf32>
    %1 = vector.shape_cast %0 : vector<1x8x8xf32> to vector<8x8xf32>
    %c0_2 = arith.constant 0 : index
    %c0_3 = arith.constant 0 : index
    %2 = vector.load %arg2[%c0_2, %c0_3] : memref<32x8xf32, #tpu.memory_space<vmem>>, vector<32x8xf32>
    %cst = arith.constant dense<0.000000e+00> : vector<32x8xf32>
    %3 = tpu.matmul %2, %1, %cst {dimension_numbers = #tpu.dot_dimension_numbers<[1], [0], [0], [1], [0, 0, 1, 1], [], []>} : vector<32x8xf32>, vector<8x8xf32>, vector<32x8xf32> -> vector<32x8xf32>
    %c0_4 = arith.constant 0 : index
    %c0_5 = arith.constant 0 : index
    %4 = vector.load %arg3[%c0_4, %c0_5] : memref<8x32xf32, #tpu.memory_space<vmem>>, vector<8x32xf32>
    %cst_6 = arith.constant dense<0.000000e+00> : vector<32x32xf32>
    %5 = tpu.matmul %3, %4, %cst_6 {dimension_numbers = #tpu.dot_dimension_numbers<[1], [0], [0], [1], [0, 0, 1, 1], [], []>} : vector<32x8xf32>, vector<8x32xf32>, vector<32x32xf32> -> vector<32x32xf32>
    %6 = math.tanh %5 : vector<32x32xf32>
    %c0_7 = arith.constant 0 : index
    %c0_8 = arith.constant 0 : index
    %c0_9 = arith.constant 0 : index
    %c0_10 = arith.constant 0 : index
    %7 = vector.load %arg5[%c0_7, %c0_8, %c0_9, %c0_10] : memref<1x3x32x32xf32, #tpu.memory_space<vmem>>, vector<1x3x32x32xf32>
    %8 = vector.shape_cast %6 : vector<32x32xf32> to vector<1x1x32x32xf32>
    %9 = vector.broadcast %8 : vector<1x1x32x32xf32> to vector<1x3x32x32xf32>
    %10 = arith.mulf %7, %9 : vector<1x3x32x32xf32>
    %c0_11 = arith.constant 0 : index
    %c0_12 = arith.constant 0 : index
    %c0_13 = arith.constant 0 : index
    %c0_14 = arith.constant 0 : index
    %11 = vector.load %arg6[%c0_11, %c0_12, %c0_13, %c0_14] : memref<1x3x32x32xf32, #tpu.memory_space<vmem>>, vector<1x3x32x32xf32>
    tpu.vector_store %arg6[%c0_11, %c0_12, %c0_13, %c0_14], %10 {strides = array<i32>} : memref<1x3x32x32xf32, #tpu.memory_space<vmem>>, vector<1x3x32x32xf32>,
    return
  }
  func.func @transform_0(%arg0: i32, %arg1: i32) -> (i32, i32) {
    %c0_i32 = arith.constant 0 : i32
    %c0_i32_0 = arith.constant 0 : i32
    return %arg1, %c0_i32 : i32, i32
  }
  func.func @transform_1(%arg0: i32, %arg1: i32) -> (i32, i32) {
    %c0_i32 = arith.constant 0 : i32
    %c0_i32_0 = arith.constant 0 : i32
    %c0_i32_1 = arith.constant 0 : i32
    return %c0_i32, %c0_i32_0 : i32, i32
  }
  func.func @transform_2(%arg0: i32, %arg1: i32) -> (i32, i32, i32) {
    %c0_i32 = arith.constant 0 : i32
    %c0_i32_0 = arith.constant 0 : i32
    %c0_i32_1 = arith.constant 0 : i32
    return %arg0, %c0_i32, %c0_i32_0 : i32, i32, i32
  }
  func.func @transform_3(%arg0: i32, %arg1: i32) -> (i32, i32, i32, i32) {
    %c0_i32 = arith.constant 0 : i32
    %c0_i32_0 = arith.constant 0 : i32
    %c0_i32_1 = arith.constant 0 : i32
    return %arg0, %c0_i32, %arg1, %c0_i32_0 : i32, i32, i32, i32
  }
  func.func @transform_4(%arg0: i32, %arg1: i32) -> (i32, i32, i32, i32) {
    %c0_i32 = arith.constant 0 : i32
    %c0_i32_0 = arith.constant 0 : i32
    %c0_i32_1 = arith.constant 0 : i32
    return %arg0, %c0_i32, %arg1, %c0_i32_0 : i32, i32, i32, i32
  }
}

</mosaic_0001>

<bundles_post_ra>
// kernel: v2_forward.8
= control target key start
LH: loop header
LB: loop body
LE: loop exit
PB: predicated region body
PF: predicated region fallthrough
CT: control target
= control target key end

     0   :  { %vm355_vm0 = vcmask 1044480   ;;  %vm356_vm1 = vcmask 1045504   ;;  %v938_v2 = vmov 65535   ;;  %vm258_vm2 = vcmask 220160   ;;  %s1421_s1 = inlined_call_operand.vmem [shape: bf16[27,16], index: 1, kind: input, shape index: {}]   ;;  %s1422_s2 = inlined_call_operand.vmem [shape: f32[1,16], index: 2, kind: input, shape index: {}]   ;;  %s1423_s0 = inlined_call_operand.vmem [shape: bf16[512,27], index: 0, kind: input, shape index: {}]   ;;  %s1424_s3 = inlined_call_operand.vmem [shape: bf16[512,16], index: 3, kind: output, shape index: {}]  }
   0x1   :  { %v862_v0 = vld [vmem:[%s1421_s1 + $0x8] sm:$0xf]  ;;  %v929_v1 = vld [vmem:[%s1421_s1 + $0x8] sm:$0x30]  ;;  %v357_v3 = vsel %vm355_vm0, 4294967295, %v938_v2  ;;  %v928_v7 = vld [vmem:[%s1421_s1] sm:$0xff] }
   0x2   :  { %v863_v4 = vor.u32 %v929_v1, %v862_v0  ;;  %v358_v5 = vsel %vm356_vm1, %v357_v3, 0  ;;  %v896_v8 = vld [vmem:[%s1423_s0] sm:$0xff]  ;;  %v897_v12 = vld [vmem:[%s1423_s0 + $0x8] sm:$0xff]  ;;  %v898_v16 = vld [vmem:[%s1423_s0 + $0x10] sm:$0xff]  ;;  %vm659_vm3 = vcmask 125952  }
   0x3   :  { %v904_v9 = vld [vmem:[%s1423_s0 + $0x40] sm:$0xff]  ;;  %v905_v13 = vld [vmem:[%s1423_s0 + $0x48] sm:$0xff]  ;;  %v906_v17 = vld [vmem:[%s1423_s0 + $0x50] sm:$0xff] }
   0x4   :  { %v360_v6 = vand.u32 %v863_v4, %v358_v5  ;;  %v912_v10 = vld [vmem:[%s1423_s0 + $0x80] sm:$0xff]  ;;  %v913_v14 = vld [vmem:[%s1423_s0 + $0x88] sm:$0xff]  ;;  %v914_v18 = vld [vmem:[%s1423_s0 + $0x90] sm:$0xff] }
   0x5   :  { %v920_v11 = vld [vmem:[%s1423_s0 + $0xc0] sm:$0xff]  ;;  %v921_v15 = vld [vmem:[%s1423_s0 + $0xc8] sm:$0xff]  ;;  %v922_v19 = vld [vmem:[%s1423_s0 + $0xd0] sm:$0xff] }
   0x6   :  { %368 = vmatpush.bf16.msra.mxu0 %v360_v6  ;;  %930 = vmatpush.bf16.msra.mxu1 %v360_v6  ;;  %v899_v20 = vld [vmem:[%s1423_s0 + $0x18] sm:$0xff]  ;;  %v900_v24 = vld [vmem:[%s1423_s0 + $0x20] sm:$0xff]  ;;  %v901_v28 = vld [vmem:[%s1423_s0 + $0x28] sm:$0xff] }
   0x7   :  { %931 = vmatpush.bf16.msra.mxu2 %v360_v6  ;;  %932 = vmatpush.bf16.msra.mxu3 %v360_v6  ;;  %v907_v21 = vld [vmem:[%s1423_s0 + $0x58] sm:$0xff]  ;;  %v908_v25 = vld [vmem:[%s1423_s0 + $0x60] sm:$0xff]  ;;  %v909_v29 = vld [vmem:[%s1423_s0 + $0x68] sm:$0xff] }
   0x8   :  { %v915_v22 = vld [vmem:[%s1423_s0 + $0x98] sm:$0xff]  ;;  %v916_v26 = vld [vmem:[%s1423_s0 + $0xa0] sm:$0xff]  ;;  %v917_v30 = vld [vmem:[%s1423_s0 + $0xa8] sm:$0xff] }
   0x9   :  { %v923_v23 = vld [vmem:[%s1423_s0 + $0xd8] sm:$0xff]  ;;  %v924_v27 = vld [vmem:[%s1423_s0 + $0xe0] sm:$0xff]  ;;  %v925_v31 = vld [vmem:[%s1423_s0 + $0xe8] sm:$0xff] }
   0xa   :  { %369 = vmatpush.bf16.msra.mxu0 %v928_v7  ;;  %933 = vmatpush.bf16.msra.mxu1 %v928_v7  ;;  %v902_v32 = vld [vmem:[%s1423_s0 + $0x30] sm:$0xff]  ;;  %v903_v36 = vld [vmem:[%s1423_s0 + $0x38] sm:$0xff]  ;;  %v1099_v40 = vld [vmem:[%s1422_s2] ss:$0 sm:$0xff] }
   0xb   :  { %934 = vmatpush.bf16.msra.mxu2 %v928_v7  ;;  %935 = vmatpush.bf16.msra.mxu3 %v928_v7  ;;  %v910_v33 = vld [vmem:[%s1423_s0 + $0x70] sm:$0xff]  ;;  %v911_v37 = vld [vmem:[%s1423_s0 + $0x78] sm:$0xff] }
   0xc   :  { %v918_v34 = vld [vmem:[%s1423_s0 + $0xb0] sm:$0xff]  ;;  %v919_v38 = vld [vmem:[%s1423_s0 + $0xb8] sm:$0xff] }
   0xd   :  { %864 = vmatmul.msk.bf16.vlgmr.msra.gmra.mxu0 %vm258_vm2, %v896_v8  ;;  %872 = vmatmul.msk.bf16.vlgmr.msra.gmra.mxu1 %vm258_vm2, %v904_v9  ;;  %v926_v35 = vld [vmem:[%s1423_s0 + $0xf0] sm:$0xff]  ;;  %v927_v39 = vld [vmem:[%s1423_s0 + $0xf8] sm:$0xff] }
   0xe   :  { %880 = vmatmul.msk.bf16.vlgmr.msra.gmra.mxu2 %vm258_vm2, %v912_v10  ;;  %888 = vmatmul.msk.bf16.vlgmr.msra.gmra.mxu3 %vm258_vm2, %v920_v11 }
  0x1d   :  { %865 = vmatmul.msk.bf16.gmra.mxu0 %vm258_vm2, %v897_v12  ;;  %873 = vmatmul.msk.bf16.gmra.mxu1 %vm258_vm2, %v905_v13 }
  0x1e   :  { %881 = vmatmul.msk.bf16.gmra.mxu2 %vm258_vm2, %v913_v14  ;;  %889 = vmatmul.msk.bf16.gmra.mxu3 %vm258_vm2, %v921_v15 }
  0x2d   :  { %866 = vmatmul.msk.bf16.gmra.mxu0 %vm258_vm2, %v898_v16  ;;  %874 = vmatmul.msk.bf16.gmra.mxu1 %vm258_vm2, %v906_v17 }
  0x2e   :  { %882 = vmatmul.msk.bf16.gmra.mxu2 %vm258_vm2, %v914_v18  ;;  %890 = vmatmul.msk.bf16.gmra.mxu3 %vm258_vm2, %v922_v19 }
  0x3d   :  { %867 = vmatmul.msk.bf16.gmra.mxu0 %vm258_vm2, %v899_v20  ;;  %875 = vmatmul.msk.bf16.gmra.mxu1 %vm258_vm2, %v907_v21 }
  0x3e   :  { %883 = vmatmul.msk.bf16.gmra.mxu2 %vm258_vm2, %v915_v22  ;;  %891 = vmatmul.msk.bf16.gmra.mxu3 %vm258_vm2, %v923_v23 }
  0x4d   :  { %868 = vmatmul.msk.bf16.gmra.mxu0 %vm258_vm2, %v900_v24  ;;  %876 = vmatmul.msk.bf16.gmra.mxu1 %vm258_vm2, %v908_v25 }
  0x4e   :  { %884 = vmatmul.msk.bf16.gmra.mxu2 %vm258_vm2, %v916_v26  ;;  %892 = vmatmul.msk.bf16.gmra.mxu3 %vm258_vm2, %v924_v27 }
  0x5d   :  { %869 = vmatmul.msk.bf16.gmra.mxu0 %vm258_vm2, %v901_v28  ;;  %877 = vmatmul.msk.bf16.gmra.mxu1 %vm258_vm2, %v909_v29 }
  0x5e   :  { %885 = vmatmul.msk.bf16.gmra.mxu2 %vm258_vm2, %v917_v30  ;;  %893 = vmatmul.msk.bf16.gmra.mxu3 %vm258_vm2, %v925_v31 }
  0x6d   :  { %870 = vmatmul.msk.bf16.gmra.mxu0 %vm258_vm2, %v902_v32  ;;  %878 = vmatmul.msk.bf16.gmra.mxu1 %vm258_vm2, %v910_v33 }
  0x6e   :  { %886 = vmatmul.msk.bf16.gmra.mxu2 %vm258_vm2, %v918_v34  ;;  %894 = vmatmul.msk.bf16.gmra.mxu3 %vm258_vm2, %v926_v35 }
  0x7d   :  { %871 = vmatmul.msk.bf16.gmra.mxu0 %vm258_vm2, %v903_v36  ;;  %879 = vmatmul.msk.bf16.gmra.mxu1 %vm258_vm2, %v911_v37 }
  0x7e   :  { %887 = vmatmul.msk.bf16.gmra.mxu2 %vm258_vm2, %v919_v38  ;;  %895 = vmatmul.msk.bf16.gmra.mxu3 %vm258_vm2, %v927_v39 }
  0x8a   :  { %v371_v41 = vpop.f32.mrf.mxu0  ;;  %v411_v42 = vpop.f32.mrf.mxu1 }
  0x8b   :  { %v372_v43 = vadd.f32 %v1099_v40, %v371_v41  ;;  %v412_v44 = vadd.f32 %v1099_v40, %v411_v42 }
  0x8d   :  { %v531_v45 = vmax.f32 %v372_v43, 0.0  ;;  %v547_v46 = vmax.f32 %v412_v44, 0.0 }
  0x8f   :  { %v595_v47 = vpack.c.bf16 %v531_v45, %v531_v45  ;;  %v611_v48 = vpack.c.bf16 %v547_v46, %v547_v46 }
  0x91   :  { %660 = vst.msk [vmem:[%s1424_s3] sm:$0xf] %vm659_vm3, %v595_v47  ;;  %v451_v49 = vpop.f32.mrf.mxu2  ;;  %v491_v50 = vpop.f32.mrf.mxu3 }
  0x92   :  { %676 = vst.msk [vmem:[%s1424_s3 + $0x40] sm:$0xf] %vm659_vm3, %v611_v48  ;;  %v452_v51 = vadd.f32 %v1099_v40, %v451_v49  ;;  %v492_v52 = vadd.f32 %v1099_v40, %v491_v50  ;;  %v373_v53 = vpop.f32.mrf.mxu0  ;;  %v413_v54 = vpop.f32.mrf.mxu1 }
  0x93   :  { %v374_v55 = vadd.f32 %v1099_v40, %v373_v53  ;;  %v414_v56 = vadd.f32 %v1099_v40, %v413_v54 }
  0x94   :  { %v563_v57 = vmax.f32 %v452_v51, 0.0  ;;  %v579_v58 = vmax.f32 %v492_v52, 0.0 }
  0x95   :  { %v532_v59 = vmax.f32 %v374_v55, 0.0  ;;  %v548_v60 = vmax.f32 %v414_v56, 0.0 }
  0x96   :  { %v627_v61 = vpack.c.bf16 %v563_v57, %v563_v57  ;;  %v643_v62 = vpack.c.bf16 %v579_v58, %v579_v58 }
  0x97   :  { %v596_v63 = vpack.c.bf16 %v532_v59, %v532_v59  ;;  %v612_v0 = vpack.c.bf16 %v548_v60, %v548_v60 }
  0x98   :  { %692 = vst.msk [vmem:[%s1424_s3 + $0x80] sm:$0xf] %vm659_vm3, %v627_v61 }
  0x99   :  { %708 = vst.msk [vmem:[%s1424_s3 + $0xc0] sm:$0xf] %vm659_vm3, %v643_v62  ;;  %v453_v1 = vpop.f32.mrf.mxu2  ;;  %v493_v2 = vpop.f32.mrf.mxu3 }
  0x9a   :  { %661 = vst.msk [vmem:[%s1424_s3 + $0x4] sm:$0xf] %vm659_vm3, %v596_v63  ;;  %v454_v3 = vadd.f32 %v1099_v40, %v453_v1  ;;  %v494_v4 = vadd.f32 %v1099_v40, %v493_v2  ;;  %v376_v5 = vpop.f32.mrf.mxu0  ;;  %v416_v6 = vpop.f32.mrf.mxu1 }
  0x9b   :  { %677 = vst.msk [vmem:[%s1424_s3 + $0x44] sm:$0xf] %vm659_vm3, %v612_v0  ;;  %v377_v7 = vadd.f32 %v1099_v40, %v376_v5  ;;  %v417_v8 = vadd.f32 %v1099_v40, %v416_v6 }
  0x9c   :  { %v564_v9 = vmax.f32 %v454_v3, 0.0  ;;  %v580_v10 = vmax.f32 %v494_v4, 0.0 }
  0x9d   :  { %v533_v11 = vmax.f32 %v377_v7, 0.0  ;;  %v549_v12 = vmax.f32 %v417_v8, 0.0 }
  0x9e   :  { %v628_v13 = vpack.c.bf16 %v564_v9, %v564_v9  ;;  %v644_v14 = vpack.c.bf16 %v580_v10, %v580_v10 }
  0x9f   :  { %v597_v15 = vpack.c.bf16 %v533_v11, %v533_v11  ;;  %v613_v16 = vpack.c.bf16 %v549_v12, %v549_v12 }
  0xa0   :  { %693 = vst.msk [vmem:[%s1424_s3 + $0x84] sm:$0xf] %vm659_vm3, %v628_v13 }
  0xa1   :  { %709 = vst.msk [vmem:[%s1424_s3 + $0xc4] sm:$0xf] %vm659_vm3, %v644_v14  ;;  %v456_v17 = vpop.f32.mrf.mxu2  ;;  %v496_v18 = vpop.f32.mrf.mxu3 }
  0xa2   :  { %662 = vst.msk [vmem:[%s1424_s3 + $0x8] sm:$0xf] %vm659_vm3, %v597_v15  ;;  %v457_v19 = vadd.f32 %v1099_v40, %v456_v17  ;;  %v497_v20 = vadd.f32 %v1099_v40, %v496_v18  ;;  %v378_v21 = vpop.f32.mrf.mxu0  ;;  %v418_v22 = vpop.f32.mrf.mxu1 }
  0xa3   :  { %678 = vst.msk [vmem:[%s1424_s3 + $0x48] sm:$0xf] %vm659_vm3, %v613_v16  ;;  %v379_v23 = vadd.f32 %v1099_v40, %v378_v21  ;;  %v419_v24 = vadd.f32 %v1099_v40, %v418_v22 }
  0xa4   :  { %v565_v25 = vmax.f32 %v457_v19, 0.0  ;;  %v581_v26 = vmax.f32 %v497_v20, 0.0 }
  0xa5   :  { %v534_v27 = vmax.f32 %v379_v23, 0.0  ;;  %v550_v28 = vmax.f32 %v419_v24, 0.0 }
  0xa6   :  { %v629_v29 = vpack.c.bf16 %v565_v25, %v565_v25  ;;  %v645_v30 = vpack.c.bf16 %v581_v26, %v581_v26 }
  0xa7   :  { %v598_v31 = vpack.c.bf16 %v534_v27, %v534_v27  ;;  %v614_v32 = vpack.c.bf16 %v550_v28, %v550_v28 }
  0xa8   :  { %694 = vst.msk [vmem:[%s1424_s3 + $0x88] sm:$0xf] %vm659_vm3, %v629_v29 }
  0xa9   :  { %710 = vst.msk [vmem:[%s1424_s3 + $0xc8] sm:$0xf] %vm659_vm3, %v645_v30  ;;  %v458_v33 = vpop.f32.mrf.mxu2  ;;  %v498_v34 = vpop.f32.mrf.mxu3 }
  0xaa   :  { %663 = vst.msk [vmem:[%s1424_s3 + $0xc] sm:$0xf] %vm659_vm3, %v598_v31  ;;  %v459_v35 = vadd.f32 %v1099_v40, %v458_v33  ;;  %v499_v36 = vadd.f32 %v1099_v40, %v498_v34  ;;  %v381_v37 = vpop.f32.mrf.mxu0  ;;  %v421_v38 = vpop.f32.mrf.mxu1 }
  0xab   :  { %679 = vst.msk [vmem:[%s1424_s3 + $0x4c] sm:$0xf] %vm659_vm3, %v614_v32  ;;  %v382_v39 = vadd.f32 %v1099_v40, %v381_v37  ;;  %v422_v41 = vadd.f32 %v1099_v40, %v421_v38 }
  0xac   :  { %v566_v42 = vmax.f32 %v459_v35, 0.0  ;;  %v582_v43 = vmax.f32 %v499_v36, 0.0 }
  0xad   :  { %v535_v44 = vmax.f32 %v382_v39, 0.0  ;;  %v551_v45 = vmax.f32 %v422_v41, 0.0 }
  0xae   :  { %v630_v46 = vpack.c.bf16 %v566_v42, %v566_v42  ;;  %v646_v47 = vpack.c.bf16 %v582_v43, %v582_v43 }
  0xaf   :  { %v599_v48 = vpack.c.bf16 %v535_v44, %v535_v44  ;;  %v615_v49 = vpack.c.bf16 %v551_v45, %v551_v45 }
  0xb0   :  { %695 = vst.msk [vmem:[%s1424_s3 + $0x8c] sm:$0xf] %vm659_vm3, %v630_v46 }
  0xb1   :  { %711 = vst.msk [vmem:[%s1424_s3 + $0xcc] sm:$0xf] %vm659_vm3, %v646_v47  ;;  %v461_v50 = vpop.f32.mrf.mxu2  ;;  %v501_v51 = vpop.f32.mrf.mxu3 }
  0xb2   :  { %664 = vst.msk [vmem:[%s1424_s3 + $0x10] sm:$0xf] %vm659_vm3, %v599_v48  ;;  %v462_v52 = vadd.f32 %v1099_v40, %v461_v50  ;;  %v502_v53 = vadd.f32 %v1099_v40, %v501_v51  ;;  %v383_v54 = vpop.f32.mrf.mxu0  ;;  %v423_v55 = vpop.f32.mrf.mxu1 }
  0xb3   :  { %680 = vst.msk [vmem:[%s1424_s3 + $0x50] sm:$0xf] %vm659_vm3, %v615_v49  ;;  %v384_v56 = vadd.f32 %v1099_v40, %v383_v54  ;;  %v424_v57 = vadd.f32 %v1099_v40, %v423_v55 }
  0xb4   :  { %v567_v58 = vmax.f32 %v462_v52, 0.0  ;;  %v583_v59 = vmax.f32 %v502_v53, 0.0 }
  0xb5   :  { %v536_v60 = vmax.f32 %v384_v56, 0.0  ;;  %v552_v61 = vmax.f32 %v424_v57, 0.0 }
  0xb6   :  { %v631_v62 = vpack.c.bf16 %v567_v58, %v567_v58  ;;  %v647_v63 = vpack.c.bf16 %v583_v59, %v583_v59 }
  0xb7   :  { %v600_v0 = vpack.c.bf16 %v536_v60, %v536_v60  ;;  %v616_v1 = vpack.c.bf16 %v552_v61, %v552_v61 }
  0xb8   :  { %696 = vst.msk [vmem:[%s1424_s3 + $0x90] sm:$0xf] %vm659_vm3, %v631_v62 }
  0xb9   :  { %712 = vst.msk [vmem:[%s1424_s3 + $0xd0] sm:$0xf] %vm659_vm3, %v647_v63  ;;  %v463_v2 = vpop.f32.mrf.mxu2  ;;  %v503_v3 = vpop.f32.mrf.mxu3 }
  0xba   :  { %665 = vst.msk [vmem:[%s1424_s3 + $0x14] sm:$0xf] %vm659_vm3, %v600_v0  ;;  %v464_v4 = vadd.f32 %v1099_v40, %v463_v2  ;;  %v504_v5 = vadd.f32 %v1099_v40, %v503_v3  ;;  %v386_v6 = vpop.f32.mrf.mxu0  ;;  %v426_v7 = vpop.f32.mrf.mxu1 }
  0xbb   :  { %681 = vst.msk [vmem:[%s1424_s3 + $0x54] sm:$0xf] %vm659_vm3, %v616_v1  ;;  %v387_v8 = vadd.f32 %v1099_v40, %v386_v6  ;;  %v427_v9 = vadd.f32 %v1099_v40, %v426_v7 }
  0xbc   :  { %v568_v10 = vmax.f32 %v464_v4, 0.0  ;;  %v584_v11 = vmax.f32 %v504_v5, 0.0 }
  0xbd   :  { %v537_v12 = vmax.f32 %v387_v8, 0.0  ;;  %v553_v13 = vmax.f32 %v427_v9, 0.0 }
  0xbe   :  { %v632_v14 = vpack.c.bf16 %v568_v10, %v568_v10  ;;  %v648_v15 = vpack.c.bf16 %v584_v11, %v584_v11 }
  0xbf   :  { %v601_v16 = vpack.c.bf16 %v537_v12, %v537_v12  ;;  %v617_v17 = vpack.c.bf16 %v553_v13, %v553_v13 }
  0xc0   :  { %697 = vst.msk [vmem:[%s1424_s3 + $0x94] sm:$0xf] %vm659_vm3, %v632_v14 }
  0xc1   :  { %713 = vst.msk [vmem:[%s1424_s3 + $0xd4] sm:$0xf] %vm659_vm3, %v648_v15  ;;  %v466_v18 = vpop.f32.mrf.mxu2  ;;  %v506_v19 = vpop.f32.mrf.mxu3 }
  0xc2   :  { %666 = vst.msk [vmem:[%s1424_s3 + $0x18] sm:$0xf] %vm659_vm3, %v601_v16  ;;  %v467_v20 = vadd.f32 %v1099_v40, %v466_v18  ;;  %v507_v21 = vadd.f32 %v1099_v40, %v506_v19  ;;  %v388_v22 = vpop.f32.mrf.mxu0  ;;  %v428_v23 = vpop.f32.mrf.mxu1 }
  0xc3   :  { %682 = vst.msk [vmem:[%s1424_s3 + $0x58] sm:$0xf] %vm659_vm3, %v617_v17  ;;  %v389_v24 = vadd.f32 %v1099_v40, %v388_v22  ;;  %v429_v25 = vadd.f32 %v1099_v40, %v428_v23 }
  0xc4   :  { %v569_v26 = vmax.f32 %v467_v20, 0.0  ;;  %v585_v27 = vmax.f32 %v507_v21, 0.0 }
  0xc5   :  { %v538_v28 = vmax.f32 %v389_v24, 0.0  ;;  %v554_v29 = vmax.f32 %v429_v25, 0.0 }
  0xc6   :  { %v633_v30 = vpack.c.bf16 %v569_v26, %v569_v26  ;;  %v649_v31 = vpack.c.bf16 %v585_v27, %v585_v27 }
  0xc7   :  { %v602_v32 = vpack.c.bf16 %v538_v28, %v538_v28  ;;  %v618_v33 = vpack.c.bf16 %v554_v29, %v554_v29 }
  0xc8   :  { %698 = vst.msk [vmem:[%s1424_s3 + $0x98] sm:$0xf] %vm659_vm3, %v633_v30 }
  0xc9   :  { %714 = vst.msk [vmem:[%s1424_s3 + $0xd8] sm:$0xf] %vm659_vm3, %v649_v31  ;;  %v468_v34 = vpop.f32.mrf.mxu2  ;;  %v508_v35 = vpop.f32.mrf.mxu3 }
  0xca   :  { %667 = vst.msk [vmem:[%s1424_s3 + $0x1c] sm:$0xf] %vm659_vm3, %v602_v32  ;;  %v469_v36 = vadd.f32 %v1099_v40, %v468_v34  ;;  %v509_v37 = vadd.f32 %v1099_v40, %v508_v35  ;;  %v391_v38 = vpop.f32.mrf.mxu0  ;;  %v431_v39 = vpop.f32.mrf.mxu1 }
  0xcb   :  { %683 = vst.msk [vmem:[%s1424_s3 + $0x5c] sm:$0xf] %vm659_vm3, %v618_v33  ;;  %v392_v41 = vadd.f32 %v1099_v40, %v391_v38  ;;  %v432_v42 = vadd.f32 %v1099_v40, %v431_v39 }
  0xcc   :  { %v570_v43 = vmax.f32 %v469_v36, 0.0  ;;  %v586_v44 = vmax.f32 %v509_v37, 0.0 }
  0xcd   :  { %v539_v45 = vmax.f32 %v392_v41, 0.0  ;;  %v555_v46 = vmax.f32 %v432_v42, 0.0 }
  0xce   :  { %v634_v47 = vpack.c.bf16 %v570_v43, %v570_v43  ;;  %v650_v48 = vpack.c.bf16 %v586_v44, %v586_v44 }
  0xcf   :  { %v603_v49 = vpack.c.bf16 %v539_v45, %v539_v45  ;;  %v619_v50 = vpack.c.bf16 %v555_v46, %v555_v46 }
  0xd0   :  { %699 = vst.msk [vmem:[%s1424_s3 + $0x9c] sm:$0xf] %vm659_vm3, %v634_v47 }
  0xd1   :  { %715 = vst.msk [vmem:[%s1424_s3 + $0xdc] sm:$0xf] %vm659_vm3, %v650_v48  ;;  %v471_v51 = vpop.f32.mrf.mxu2  ;;  %v511_v52 = vpop.f32.mrf.mxu3 }
  0xd2   :  { %668 = vst.msk [vmem:[%s1424_s3 + $0x20] sm:$0xf] %vm659_vm3, %v603_v49  ;;  %v472_v53 = vadd.f32 %v1099_v40, %v471_v51  ;;  %v512_v54 = vadd.f32 %v1099_v40, %v511_v52  ;;  %v393_v55 = vpop.f32.mrf.mxu0  ;;  %v433_v56 = vpop.f32.mrf.mxu1 }
  0xd3   :  { %684 = vst.msk [vmem:[%s1424_s3 + $0x60] sm:$0xf] %vm659_vm3, %v619_v50  ;;  %v394_v57 = vadd.f32 %v1099_v40, %v393_v55  ;;  %v434_v58 = vadd.f32 %v1099_v40, %v433_v56 }
  0xd4   :  { %v571_v59 = vmax.f32 %v472_v53, 0.0  ;;  %v587_v60 = vmax.f32 %v512_v54, 0.0 }
  0xd5   :  { %v540_v61 = vmax.f32 %v394_v57, 0.0  ;;  %v556_v62 = vmax.f32 %v434_v58, 0.0 }
  0xd6   :  { %v635_v63 = vpack.c.bf16 %v571_v59, %v571_v59  ;;  %v651_v0 = vpack.c.bf16 %v587_v60, %v587_v60 }
  0xd7   :  { %v604_v1 = vpack.c.bf16 %v540_v61, %v540_v61  ;;  %v620_v2 = vpack.c.bf16 %v556_v62, %v556_v62 }
  0xd8   :  { %700 = vst.msk [vmem:[%s1424_s3 + $0xa0] sm:$0xf] %vm659_vm3, %v635_v63 }
  0xd9   :  { %716 = vst.msk [vmem:[%s1424_s3 + $0xe0] sm:$0xf] %vm659_vm3, %v651_v0  ;;  %v473_v3 = vpop.f32.mrf.mxu2  ;;  %v513_v4 = vpop.f32.mrf.mxu3 }
  0xda   :  { %669 = vst.msk [vmem:[%s1424_s3 + $0x24] sm:$0xf] %vm659_vm3, %v604_v1  ;;  %v474_v5 = vadd.f32 %v1099_v40, %v473_v3  ;;  %v514_v6 = vadd.f32 %v1099_v40, %v513_v4  ;;  %v396_v7 = vpop.f32.mrf.mxu0  ;;  %v436_v8 = vpop.f32.mrf.mxu1 }
  0xdb   :  { %685 = vst.msk [vmem:[%s1424_s3 + $0x64] sm:$0xf] %vm659_vm3, %v620_v2  ;;  %v397_v9 = vadd.f32 %v1099_v40, %v396_v7  ;;  %v437_v10 = vadd.f32 %v1099_v40, %v436_v8 }
  0xdc   :  { %v572_v11 = vmax.f32 %v474_v5, 0.0  ;;  %v588_v12 = vmax.f32 %v514_v6, 0.0 }
  0xdd   :  { %v541_v13 = vmax.f32 %v397_v9, 0.0  ;;  %v557_v14 = vmax.f32 %v437_v10, 0.0 }
  0xde   :  { %v636_v15 = vpack.c.bf16 %v572_v11, %v572_v11  ;;  %v652_v16 = vpack.c.bf16 %v588_v12, %v588_v12 }
  0xdf   :  { %v605_v17 = vpack.c.bf16 %v541_v13, %v541_v13  ;;  %v621_v18 = vpack.c.bf16 %v557_v14, %v557_v14 }
  0xe0   :  { %701 = vst.msk [vmem:[%s1424_s3 + $0xa4] sm:$0xf] %vm659_vm3, %v636_v15 }
  0xe1   :  { %717 = vst.msk [vmem:[%s1424_s3 + $0xe4] sm:$0xf] %vm659_vm3, %v652_v16  ;;  %v476_v19 = vpop.f32.mrf.mxu2  ;;  %v516_v20 = vpop.f32.mrf.mxu3 }
  0xe2   :  { %670 = vst.msk [vmem:[%s1424_s3 + $0x28] sm:$0xf] %vm659_vm3, %v605_v17  ;;  %v477_v21 = vadd.f32 %v1099_v40, %v476_v19  ;;  %v517_v22 = vadd.f32 %v1099_v40, %v516_v20  ;;  %v398_v23 = vpop.f32.mrf.mxu0  ;;  %v438_v24 = vpop.f32.mrf.mxu1 }
  0xe3   :  { %686 = vst.msk [vmem:[%s1424_s3 + $0x68] sm:$0xf] %vm659_vm3, %v621_v18  ;;  %v399_v25 = vadd.f32 %v1099_v40, %v398_v23  ;;  %v439_v26 = vadd.f32 %v1099_v40, %v438_v24 }
  0xe4   :  { %v573_v27 = vmax.f32 %v477_v21, 0.0  ;;  %v589_v28 = vmax.f32 %v517_v22, 0.0 }
  0xe5   :  { %v542_v29 = vmax.f32 %v399_v25, 0.0  ;;  %v558_v30 = vmax.f32 %v439_v26, 0.0 }
  0xe6   :  { %v637_v31 = vpack.c.bf16 %v573_v27, %v573_v27  ;;  %v653_v32 = vpack.c.bf16 %v589_v28, %v589_v28 }
  0xe7   :  { %v606_v33 = vpack.c.bf16 %v542_v29, %v542_v29  ;;  %v622_v34 = vpack.c.bf16 %v558_v30, %v558_v30 }
  0xe8   :  { %702 = vst.msk [vmem:[%s1424_s3 + $0xa8] sm:$0xf] %vm659_vm3, %v637_v31 }
  0xe9   :  { %718 = vst.msk [vmem:[%s1424_s3 + $0xe8] sm:$0xf] %vm659_vm3, %v653_v32  ;;  %v478_v35 = vpop.f32.mrf.mxu2  ;;  %v518_v36 = vpop.f32.mrf.mxu3 }
  0xea   :  { %671 = vst.msk [vmem:[%s1424_s3 + $0x2c] sm:$0xf] %vm659_vm3, %v606_v33  ;;  %v479_v37 = vadd.f32 %v1099_v40, %v478_v35  ;;  %v519_v38 = vadd.f32 %v1099_v40, %v518_v36  ;;  %v401_v39 = vpop.f32.mrf.mxu0  ;;  %v441_v41 = vpop.f32.mrf.mxu1 }
  0xeb   :  { %687 = vst.msk [vmem:[%s1424_s3 + $0x6c] sm:$0xf] %vm659_vm3, %v622_v34  ;;  %v402_v42 = vadd.f32 %v1099_v40, %v401_v39  ;;  %v442_v43 = vadd.f32 %v1099_v40, %v441_v41 }
  0xec   :  { %v574_v44 = vmax.f32 %v479_v37, 0.0  ;;  %v590_v45 = vmax.f32 %v519_v38, 0.0 }
  0xed   :  { %v543_v46 = vmax.f32 %v402_v42, 0.0  ;;  %v559_v47 = vmax.f32 %v442_v43, 0.0 }
  0xee   :  { %v638_v48 = vpack.c.bf16 %v574_v44, %v574_v44  ;;  %v654_v49 = vpack.c.bf16 %v590_v45, %v590_v45 }
  0xef   :  { %v607_v50 = vpack.c.bf16 %v543_v46, %v543_v46  ;;  %v623_v51 = vpack.c.bf16 %v559_v47, %v559_v47 }
  0xf0   :  { %703 = vst.msk [vmem:[%s1424_s3 + $0xac] sm:$0xf] %vm659_vm3, %v638_v48 }
  0xf1   :  { %719 = vst.msk [vmem:[%s1424_s3 + $0xec] sm:$0xf] %vm659_vm3, %v654_v49  ;;  %v481_v52 = vpop.f32.mrf.mxu2  ;;  %v521_v53 = vpop.f32.mrf.mxu3 }
  0xf2   :  { %672 = vst.msk [vmem:[%s1424_s3 + $0x30] sm:$0xf] %vm659_vm3, %v607_v50  ;;  %v482_v54 = vadd.f32 %v1099_v40, %v481_v52  ;;  %v522_v55 = vadd.f32 %v1099_v40, %v521_v53  ;;  %v403_v56 = vpop.f32.mrf.mxu0  ;;  %v443_v57 = vpop.f32.mrf.mxu1 }
  0xf3   :  { %688 = vst.msk [vmem:[%s1424_s3 + $0x70] sm:$0xf] %vm659_vm3, %v623_v51  ;;  %v404_v58 = vadd.f32 %v1099_v40, %v403_v56  ;;  %v444_v59 = vadd.f32 %v1099_v40, %v443_v57 }
  0xf4   :  { %v575_v60 = vmax.f32 %v482_v54, 0.0  ;;  %v591_v61 = vmax.f32 %v522_v55, 0.0 }
  0xf5   :  { %v544_v62 = vmax.f32 %v404_v58, 0.0  ;;  %v560_v63 = vmax.f32 %v444_v59, 0.0 }
  0xf6   :  { %v639_v0 = vpack.c.bf16 %v575_v60, %v575_v60  ;;  %v655_v1 = vpack.c.bf16 %v591_v61, %v591_v61 }
  0xf7   :  { %v608_v2 = vpack.c.bf16 %v544_v62, %v544_v62  ;;  %v624_v3 = vpack.c.bf16 %v560_v63, %v560_v63 }
  0xf8   :  { %704 = vst.msk [vmem:[%s1424_s3 + $0xb0] sm:$0xf] %vm659_vm3, %v639_v0 }
  0xf9   :  { %720 = vst.msk [vmem:[%s1424_s3 + $0xf0] sm:$0xf] %vm659_vm3, %v655_v1  ;;  %v483_v4 = vpop.f32.mrf.mxu2  ;;  %v523_v5 = vpop.f32.mrf.mxu3 }
  0xfa   :  { %673 = vst.msk [vmem:[%s1424_s3 + $0x34] sm:$0xf] %vm659_vm3, %v608_v2  ;;  %v484_v6 = vadd.f32 %v1099_v40, %v483_v4  ;;  %v524_v7 = vadd.f32 %v1099_v40, %v523_v5  ;;  %v406_v8 = vpop.f32.mrf.mxu0  ;;  %v446_v9 = vpop.f32.mrf.mxu1 }
  0xfb   :  { %689 = vst.msk [vmem:[%s1424_s3 + $0x74] sm:$0xf] %vm659_vm3, %v624_v3  ;;  %v407_v10 = vadd.f32 %v1099_v40, %v406_v8  ;;  %v447_v11 = vadd.f32 %v1099_v40, %v446_v9 }
  0xfc   :  { %v576_v12 = vmax.f32 %v484_v6, 0.0  ;;  %v592_v13 = vmax.f32 %v524_v7, 0.0 }
  0xfd   :  { %v545_v14 = vmax.f32 %v407_v10, 0.0  ;;  %v561_v15 = vmax.f32 %v447_v11, 0.0 }
  0xfe   :  { %v640_v16 = vpack.c.bf16 %v576_v12, %v576_v12  ;;  %v656_v17 = vpack.c.bf16 %v592_v13, %v592_v13 }
  0xff   :  { %v609_v18 = vpack.c.bf16 %v545_v14, %v545_v14  ;;  %v625_v19 = vpack.c.bf16 %v561_v15, %v561_v15 }
 0x100   :  { %705 = vst.msk [vmem:[%s1424_s3 + $0xb4] sm:$0xf] %vm659_vm3, %v640_v16 }
 0x101   :  { %721 = vst.msk [vmem:[%s1424_s3 + $0xf4] sm:$0xf] %vm659_vm3, %v656_v17  ;;  %v486_v20 = vpop.f32.mrf.mxu2  ;;  %v526_v21 = vpop.f32.mrf.mxu3 }
 0x102   :  { %674 = vst.msk [vmem:[%s1424_s3 + $0x38] sm:$0xf] %vm659_vm3, %v609_v18  ;;  %v487_v22 = vadd.f32 %v1099_v40, %v486_v20  ;;  %v527_v23 = vadd.f32 %v1099_v40, %v526_v21  ;;  %v408_v24 = vpop.f32.mrf.mxu0  ;;  %v448_v25 = vpop.f32.mrf.mxu1 }
 0x103   :  { %690 = vst.msk [vmem:[%s1424_s3 + $0x78] sm:$0xf] %vm659_vm3, %v625_v19  ;;  %v409_v26 = vadd.f32 %v1099_v40, %v408_v24  ;;  %v449_v27 = vadd.f32 %v1099_v40, %v448_v25 }
 0x104   :  { %v577_v28 = vmax.f32 %v487_v22, 0.0  ;;  %v593_v29 = vmax.f32 %v527_v23, 0.0 }
 0x105   :  { %v546_v30 = vmax.f32 %v409_v26, 0.0  ;;  %v562_v31 = vmax.f32 %v449_v27, 0.0 }
 0x106   :  { %v641_v32 = vpack.c.bf16 %v577_v28, %v577_v28  ;;  %v657_v33 = vpack.c.bf16 %v593_v29, %v593_v29 }
 0x107   :  { %v610_v34 = vpack.c.bf16 %v546_v30, %v546_v30  ;;  %v626_v35 = vpack.c.bf16 %v562_v31, %v562_v31 }
 0x108   :  { %706 = vst.msk [vmem:[%s1424_s3 + $0xb8] sm:$0xf] %vm659_vm3, %v641_v32 }
 0x109   :  { %722 = vst.msk [vmem:[%s1424_s3 + $0xf8] sm:$0xf] %vm659_vm3, %v657_v33  ;;  %v488_v36 = vpop.f32.mrf.mxu2  ;;  %v528_v37 = vpop.f32.mrf.mxu3 }
 0x10a   :  { %675 = vst.msk [vmem:[%s1424_s3 + $0x3c] sm:$0xf] %vm659_vm3, %v610_v34  ;;  %v489_v38 = vadd.f32 %v1099_v40, %v488_v36  ;;  %v529_v39 = vadd.f32 %v1099_v40, %v528_v37 }
 0x10b   :  { %691 = vst.msk [vmem:[%s1424_s3 + $0x7c] sm:$0xf] %vm659_vm3, %v626_v35 }
 0x10c   :  { %v578_v41 = vmax.f32 %v489_v38, 0.0  ;;  %v594_v42 = vmax.f32 %v529_v39, 0.0 }
 0x10e   :  { %v642_v43 = vpack.c.bf16 %v578_v41, %v578_v41  ;;  %v658_v44 = vpack.c.bf16 %v594_v42, %v594_v42 }
 0x110   :  { %707 = vst.msk [vmem:[%s1424_s3 + $0xbc] sm:$0xf] %vm659_vm3, %v642_v43 }
 0x111   :  { %723 = vst.msk [vmem:[%s1424_s3 + $0xfc] sm:$0xf] %vm659_vm3, %v658_v44 }

// kernel: v2_forward.9
= control target key start
LH: loop header
LB: loop body
LE: loop exit
PB: predicated region body
PF: predicated region fallthrough
CT: control target
= control target key end

     0   :  { %vm179_vm0 = vcmask 130048   ;;  %vm334_vm1 = vcmask 191488   ;;  %s734_s1 = inlined_call_operand.vmem [shape: bf16[144,24], index: 1, kind: input, shape index: {}]   ;;  %s735_s0 = inlined_call_operand.vmem [shape: bf16[128,144], index: 0, kind: input, shape index: {}]   ;;  %s736_s2 = inlined_call_operand.vmem [shape: f32[1,24], index: 2, kind: input, shape index: {}]   ;;  %s737_s3 = inlined_call_operand.vmem [shape: bf16[128,24], index: 3, kind: output, shape index: {}]  }
   0x1   :  { %v486_v0 = vld [vmem:[%s734_s1 + $0x38] sm:$0xff]  ;;  %v487_v1 = vld [vmem:[%s734_s1 + $0x40] sm:$0xff]  ;;  %v359_v3 = vld [vmem:[%s735_s0 + $0x8] sm:$0xf0] }
   0x2   :  { %v463_v2 = vld [vmem:[%s735_s0 + $0x4] sm:$0xf]  ;;  %204 = vmatpush.bf16.msra.mxu0 %v486_v0  ;;  %488 = vmatpush.bf16.msra.mxu2 %v486_v0  ;;  %v485_v5 = vld [vmem:[%s734_s1 + $0x30] sm:$0xff]  ;;  %v484_v6 = vld [vmem:[%s734_s1 + $0x28] sm:$0xff] }
   0x3   :  { %v362_v4 = vor.u32 %v463_v2, %v359_v3  ;;  %260 = vmatpush.bf16.msra.mxu1 %v487_v1  ;;  %496 = vmatpush.bf16.msra.mxu3 %v487_v1  ;;  %v473_v7 = vld [vmem:[%s735_s0 + $0x54] sm:$0xf]  ;;  %v399_v8 = vld [vmem:[%s735_s0 + $0x58] sm:$0xf0]  ;;  %v483_v10 = vld [vmem:[%s734_s1 + $0x20] sm:$0xff] }
   0x4   :  { %v402_v9 = vor.u32 %v473_v7, %v399_v8  ;;  %v482_v11 = vld [vmem:[%s734_s1 + $0x18] sm:$0xff]  ;;  %v465_v12 = vld [vmem:[%s735_s0 + $0x14] sm:$0xf]  ;;  %v480_v16 = vld [vmem:[%s734_s1 + $0x8] sm:$0xff] }
   0x5   :  { %v367_v13 = vld [vmem:[%s735_s0 + $0x18] sm:$0xf0]  ;;  %v481_v15 = vld [vmem:[%s734_s1 + $0x10] sm:$0xff]  ;;  %v475_v17 = vld [vmem:[%s735_s0 + $0x64] sm:$0xf] }
   0x6   :  { %455 = vmatmul.msk.bf16.vlgmr.msra.gmra.mxu1 %vm179_vm0, %v362_v4  ;;  %205 = vmatpush.bf16.msra.mxu0 %v485_v5  ;;  %v370_v14 = vor.u32 %v465_v12, %v367_v13  ;;  %v407_v18 = vld [vmem:[%s735_s0 + $0x68] sm:$0xf0]  ;;  %v479_v20 = vld [vmem:[%s734_s1] sm:$0xff]  ;;  %v464_v22 = vld [vmem:[%s735_s0 + $0x4] sm:$0xf0] }
   0x7   :  { %489 = vmatpush.bf16.msra.mxu2 %v485_v5  ;;  %460 = vmatmul.msk.bf16.vlgmr.msra.gmra.mxu3 %vm179_vm0, %v402_v9  ;;  %v410_v19 = vor.u32 %v475_v17, %v407_v18  ;;  %v357_v21 = vld [vmem:[%s735_s0] sm:$0xf]  ;;  %v472_v24 = vld [vmem:[%s735_s0 + $0x44] sm:$0xf0]  ;;  %v467_v27 = vld [vmem:[%s735_s0 + $0x24] sm:$0xf] }
   0x8   :  { %v389_v23 = vld [vmem:[%s735_s0 + $0x40] sm:$0xf]  ;;  %v358_v25 = vor.u32 %v464_v22, %v357_v21  ;;  %v375_v28 = vld [vmem:[%s735_s0 + $0x28] sm:$0xf0]  ;;  %v477_v30 = vld [vmem:[%s735_s0 + $0x74] sm:$0xf] }
   0x9   :  { %v390_v26 = vor.u32 %v472_v24, %v389_v23  ;;  %v378_v29 = vor.u32 %v467_v27, %v375_v28  ;;  %v415_v31 = vld [vmem:[%s735_s0 + $0x78] sm:$0xf0]  ;;  %v365_v33 = vld [vmem:[%s735_s0 + $0x10] sm:$0xf]  ;;  %v466_v34 = vld [vmem:[%s735_s0 + $0x14] sm:$0xf0] }
   0xa   :  { %206 = vmatpush.bf16.msra.mxu0 %v484_v6  ;;  %v418_v32 = vor.u32 %v477_v30, %v415_v31  ;;  %v397_v35 = vld [vmem:[%s735_s0 + $0x50] sm:$0xf]  ;;  %v474_v36 = vld [vmem:[%s735_s0 + $0x54] sm:$0xf0]  ;;  %v366_v37 = vor.u32 %v466_v34, %v365_v33  ;;  %v469_v39 = vld [vmem:[%s735_s0 + $0x34] sm:$0xf] }
   0xb   :  { %490 = vmatpush.bf16.msra.mxu2 %v484_v6  ;;  %v398_v38 = vor.u32 %v474_v36, %v397_v35  ;;  %v383_v40 = vld [vmem:[%s735_s0 + $0x38] sm:$0xf0]  ;;  %v373_v42 = vld [vmem:[%s735_s0 + $0x20] sm:$0xf]  ;;  %v468_v43 = vld [vmem:[%s735_s0 + $0x24] sm:$0xf0] }
   0xc   :  { %v386_v41 = vor.u32 %v469_v39, %v383_v40  ;;  %v405_v44 = vld [vmem:[%s735_s0 + $0x60] sm:$0xf]  ;;  %v476_v45 = vld [vmem:[%s735_s0 + $0x64] sm:$0xf0]  ;;  %v374_v46 = vor.u32 %v468_v43, %v373_v42  ;;  %v471_v48 = vld [vmem:[%s735_s0 + $0x44] sm:$0xf] }
   0xd   :  { %v406_v47 = vor.u32 %v476_v45, %v405_v44  ;;  %v391_v49 = vld [vmem:[%s735_s0 + $0x48] sm:$0xf0]  ;;  %v381_v51 = vld [vmem:[%s735_s0 + $0x30] sm:$0xf]  ;;  %v470_v52 = vld [vmem:[%s735_s0 + $0x34] sm:$0xf0] }
   0xe   :  { %207 = vmatpush.bf16.msra.mxu0 %v483_v10  ;;  %v394_v50 = vor.u32 %v471_v48, %v391_v49  ;;  %v413_v53 = vld [vmem:[%s735_s0 + $0x70] sm:$0xf]  ;;  %v478_v54 = vld [vmem:[%s735_s0 + $0x74] sm:$0xf0]  ;;  %v382_v55 = vor.u32 %v470_v52, %v381_v51  ;;  %v652_v61 = vld [vmem:[%s736_s2] ss:$0 sm:$0xff] }
   0xf   :  { %491 = vmatpush.bf16.msra.mxu2 %v483_v10  ;;  %v414_v56 = vor.u32 %v478_v54, %v413_v53 }
  0x12   :  { %208 = vmatpush.bf16.msra.mxu0 %v482_v11 }
  0x13   :  { %492 = vmatpush.bf16.msra.mxu2 %v482_v11 }
  0x16   :  { %456 = vmatmul.msk.bf16.gmra.mxu1 %vm179_vm0, %v370_v14  ;;  %209 = vmatpush.bf16.msra.mxu0 %v481_v15 }
  0x17   :  { %493 = vmatpush.bf16.msra.mxu2 %v481_v15  ;;  %461 = vmatmul.msk.bf16.gmra.mxu3 %vm179_vm0, %v410_v19 }
  0x1a   :  { %210 = vmatpush.bf16.msra.mxu0 %v480_v16 }
  0x1b   :  { %494 = vmatpush.bf16.msra.mxu2 %v480_v16 }
  0x1e   :  { %211 = vmatpush.bf16.msra.mxu0 %v479_v20 }
  0x1f   :  { %495 = vmatpush.bf16.msra.mxu2 %v479_v20 }
  0x21   :  { %212 = vmatmul.bf16.vlgmr.msra.gmra.mxu0 %v358_v25 }
  0x22   :  { %232 = vmatmul.bf16.vlgmr.msra.gmra.mxu2 %v390_v26 }
  0x26   :  { %457 = vmatmul.msk.bf16.gmra.mxu1 %vm179_vm0, %v378_v29 }
  0x27   :  { %462 = vmatmul.msk.bf16.gmra.mxu3 %vm179_vm0, %v418_v32 }
  0x31   :  { %217 = vmatmul.bf16.gmra.mxu0 %v366_v37 }
  0x32   :  { %237 = vmatmul.bf16.gmra.mxu2 %v398_v38 }
  0x36   :  { %458 = vmatmul.msk.bf16.gmra.mxu1 %vm179_vm0, %v386_v41 }
  0x41   :  { %222 = vmatmul.bf16.gmra.mxu0 %v374_v46 }
  0x42   :  { %242 = vmatmul.bf16.gmra.mxu2 %v406_v47 }
  0x46   :  { %459 = vmatmul.msk.bf16.gmra.mxu1 %vm179_vm0, %v394_v50 }
  0x51   :  { %227 = vmatmul.bf16.gmra.mxu0 %v382_v55 }
  0x52   :  { %247 = vmatmul.bf16.gmra.mxu2 %v414_v56 }
  0x83   :  { %v262_v57 = vpop.f32.mrf.mxu1 }
  0x8a   :  { %v287_v12 = vpop.f32.mrf.mxu3 }
  0x8b   :  { %v264_v58 = vpop.f32.mrf.mxu1 }
  0x92   :  { %v289_v23 = vpop.f32.mrf.mxu3 }
  0x93   :  { %v267_v59 = vpop.f32.mrf.mxu1 }
  0x9a   :  { %v292_v37 = vpop.f32.mrf.mxu3 }
  0x9b   :  { %v269_v60 = vpop.f32.mrf.mxu1 }
  0x9e   :  { %v213_v62 = vpop.f32.mrf.mxu0 }
  0x9f   :  { %v214_v63 = vadd.f32 %v652_v61, %v213_v62 }
  0xa1   :  { %v263_v0 = vadd.f32 %v262_v57, %v214_v63 }
  0xa2   :  { %v294_v56 = vpop.f32.mrf.mxu3 }
  0xa3   :  { %v302_v1 = vmax.f32 %v263_v0, 0.0  ;;  %v272_v2 = vpop.f32.mrf.mxu1 }
  0xa5   :  { %v318_v3 = vpack.c.bf16 %v302_v1, %v302_v1  ;;  %v233_v4 = vpop.f32.mrf.mxu2 }
  0xa6   :  { %v215_v5 = vpop.f32.mrf.mxu0  ;;  %v234_v38 = vadd.f32 %v652_v61, %v233_v4 }
  0xa7   :  { %335 = vst.msk [vmem:[%s737_s3] sm:$0xf] %vm334_vm1, %v318_v3  ;;  %v216_v6 = vadd.f32 %v652_v61, %v215_v5 }
  0xa9   :  { %v265_v7 = vadd.f32 %v264_v58, %v216_v6 }
  0xab   :  { %v303_v8 = vmax.f32 %v265_v7, 0.0  ;;  %v274_v9 = vpop.f32.mrf.mxu1 }
  0xad   :  { %v319_v10 = vpack.c.bf16 %v303_v8, %v303_v8  ;;  %v235_v11 = vpop.f32.mrf.mxu2 }
  0xae   :  { %v218_v13 = vpop.f32.mrf.mxu0  ;;  %v236_v53 = vadd.f32 %v652_v61, %v235_v11 }
  0xaf   :  { %336 = vst.msk [vmem:[%s737_s3 + $0x4] sm:$0xf] %vm334_vm1, %v319_v10  ;;  %v219_v14 = vadd.f32 %v652_v61, %v218_v13  ;;  %v297_v10 = vpop.f32.mrf.mxu3 }
  0xb1   :  { %v268_v15 = vadd.f32 %v267_v59, %v219_v14 }
  0xb3   :  { %v304_v16 = vmax.f32 %v268_v15, 0.0  ;;  %v277_v17 = vpop.f32.mrf.mxu1 }
  0xb5   :  { %v320_v18 = vpack.c.bf16 %v304_v16, %v304_v16  ;;  %v238_v19 = vpop.f32.mrf.mxu2 }
  0xb6   :  { %v239_v20 = vadd.f32 %v652_v61, %v238_v19  ;;  %v220_v21 = vpop.f32.mrf.mxu0 }
  0xb7   :  { %337 = vst.msk [vmem:[%s737_s3 + $0x8] sm:$0xf] %vm334_vm1, %v320_v18  ;;  %v221_v22 = vadd.f32 %v652_v61, %v220_v21 }
  0xb8   :  { %v288_v24 = vadd.f32 %v287_v12, %v239_v20 }
  0xb9   :  { %v270_v25 = vadd.f32 %v269_v60, %v221_v22 }
  0xba   :  { %v312_v26 = vmax.f32 %v288_v24, 0.0 }
  0xbb   :  { %v305_v27 = vmax.f32 %v270_v25, 0.0  ;;  %v279_v28 = vpop.f32.mrf.mxu1 }
  0xbc   :  { %v328_v29 = vpack.c.bf16 %v312_v26, %v312_v26 }
  0xbd   :  { %v321_v30 = vpack.c.bf16 %v305_v27, %v305_v27  ;;  %v240_v31 = vpop.f32.mrf.mxu2 }
  0xbe   :  { %345 = vst.msk [vmem:[%s737_s3 + $0x28] sm:$0xf] %vm334_vm1, %v328_v29  ;;  %v241_v32 = vadd.f32 %v652_v61, %v240_v31  ;;  %v223_v33 = vpop.f32.mrf.mxu0 }
  0xbf   :  { %338 = vst.msk [vmem:[%s737_s3 + $0xc] sm:$0xf] %vm334_vm1, %v321_v30  ;;  %v224_v34 = vadd.f32 %v652_v61, %v223_v33 }
  0xc0   :  { %v290_v35 = vadd.f32 %v289_v23, %v241_v32  ;;  %v299_v23 = vpop.f32.mrf.mxu3 }
  0xc1   :  { %v273_v36 = vadd.f32 %v272_v2, %v224_v34 }
  0xc2   :  { %v313_v39 = vmax.f32 %v290_v35, 0.0 }
  0xc3   :  { %v306_v40 = vmax.f32 %v273_v36, 0.0  ;;  %v282_v41 = vpop.f32.mrf.mxu1 }
  0xc4   :  { %v329_v42 = vpack.c.bf16 %v313_v39, %v313_v39  ;;  %v283_v43 = vadd.f32 %v282_v41, %v234_v38 }
  0xc5   :  { %v322_v44 = vpack.c.bf16 %v306_v40, %v306_v40  ;;  %v243_v45 = vpop.f32.mrf.mxu2 }
  0xc6   :  { %346 = vst.msk [vmem:[%s737_s3 + $0x2c] sm:$0xf] %vm334_vm1, %v329_v42  ;;  %v310_v46 = vmax.f32 %v283_v43, 0.0  ;;  %v244_v47 = vadd.f32 %v652_v61, %v243_v45  ;;  %v225_v48 = vpop.f32.mrf.mxu0 }
  0xc7   :  { %339 = vst.msk [vmem:[%s737_s3 + $0x10] sm:$0xf] %vm334_vm1, %v322_v44  ;;  %v226_v49 = vadd.f32 %v652_v61, %v225_v48 }
  0xc8   :  { %v326_v50 = vpack.c.bf16 %v310_v46, %v310_v46  ;;  %v293_v51 = vadd.f32 %v292_v37, %v244_v47 }
  0xc9   :  { %v275_v52 = vadd.f32 %v274_v9, %v226_v49 }
  0xca   :  { %343 = vst.msk [vmem:[%s737_s3 + $0x20] sm:$0xf] %vm334_vm1, %v326_v50  ;;  %v314_v54 = vmax.f32 %v293_v51, 0.0 }
  0xcb   :  { %v307_v55 = vmax.f32 %v275_v52, 0.0  ;;  %v284_v57 = vpop.f32.mrf.mxu1 }
  0xcc   :  { %v330_v58 = vpack.c.bf16 %v314_v54, %v314_v54  ;;  %v285_v59 = vadd.f32 %v284_v57, %v236_v53 }
  0xcd   :  { %v323_v60 = vpack.c.bf16 %v307_v55, %v307_v55  ;;  %v245_v62 = vpop.f32.mrf.mxu2 }
  0xce   :  { %347 = vst.msk [vmem:[%s737_s3 + $0x30] sm:$0xf] %vm334_vm1, %v330_v58  ;;  %v311_v63 = vmax.f32 %v285_v59, 0.0  ;;  %v246_v0 = vadd.f32 %v652_v61, %v245_v62  ;;  %v228_v1 = vpop.f32.mrf.mxu0 }
  0xcf   :  { %340 = vst.msk [vmem:[%s737_s3 + $0x14] sm:$0xf] %vm334_vm1, %v323_v60  ;;  %v229_v2 = vadd.f32 %v652_v61, %v228_v1 }
  0xd0   :  { %v327_v3 = vpack.c.bf16 %v311_v63, %v311_v63  ;;  %v295_v4 = vadd.f32 %v294_v56, %v246_v0 }
  0xd1   :  { %v278_v5 = vadd.f32 %v277_v17, %v229_v2 }
  0xd2   :  { %344 = vst.msk [vmem:[%s737_s3 + $0x24] sm:$0xf] %vm334_vm1, %v327_v3  ;;  %v315_v6 = vmax.f32 %v295_v4, 0.0 }
  0xd3   :  { %v308_v7 = vmax.f32 %v278_v5, 0.0 }
  0xd4   :  { %v331_v8 = vpack.c.bf16 %v315_v6, %v315_v6 }
  0xd5   :  { %v324_v9 = vpack.c.bf16 %v308_v7, %v308_v7  ;;  %v248_v11 = vpop.f32.mrf.mxu2 }
  0xd6   :  { %348 = vst.msk [vmem:[%s737_s3 + $0x34] sm:$0xf] %vm334_vm1, %v331_v8  ;;  %v249_v12 = vadd.f32 %v652_v61, %v248_v11  ;;  %v230_v13 = vpop.f32.mrf.mxu0 }
  0xd7   :  { %341 = vst.msk [vmem:[%s737_s3 + $0x18] sm:$0xf] %vm334_vm1, %v324_v9  ;;  %v231_v14 = vadd.f32 %v652_v61, %v230_v13 }
  0xd8   :  { %v298_v15 = vadd.f32 %v297_v10, %v249_v12 }
  0xd9   :  { %v280_v16 = vadd.f32 %v279_v28, %v231_v14 }
  0xda   :  { %v316_v17 = vmax.f32 %v298_v15, 0.0 }
  0xdb   :  { %v309_v18 = vmax.f32 %v280_v16, 0.0 }
  0xdc   :  { %v332_v19 = vpack.c.bf16 %v316_v17, %v316_v17 }
  0xdd   :  { %v325_v20 = vpack.c.bf16 %v309_v18, %v309_v18  ;;  %v250_v21 = vpop.f32.mrf.mxu2 }
  0xde   :  { %349 = vst.msk [vmem:[%s737_s3 + $0x38] sm:$0xf] %vm334_vm1, %v332_v19  ;;  %v251_v22 = vadd.f32 %v652_v61, %v250_v21 }
  0xdf   :  { %342 = vst.msk [vmem:[%s737_s3 + $0x1c] sm:$0xf] %vm334_vm1, %v325_v20 }
  0xe0   :  { %v300_v24 = vadd.f32 %v299_v23, %v251_v22 }
  0xe2   :  { %v317_v25 = vmax.f32 %v300_v24, 0.0 }
  0xe4   :  { %v333_v26 = vpack.c.bf16 %v317_v25, %v317_v25 }
  0xe6   :  { %350 = vst.msk [vmem:[%s737_s3 + $0x3c] sm:$0xf] %vm334_vm1, %v333_v26 }

// kernel: v2_forward.10
= control target key start
LH: loop header
LB: loop body
LE: loop exit
PB: predicated region body
PF: predicated region fallthrough
CT: control target
= control target key end

     0   :  { %vm156_vm0 = vcmask 1043456   ;;  %vm149_vm1 = vcmask 719872   ;;  %vm206_vm2 = vcmask 257024   ;;  %s422_s1 = inlined_call_operand.vmem [shape: bf16[216,32], index: 1, kind: input, shape index: {}]   ;;  %s423_s2 = inlined_call_operand.vmem [shape: f32[1,32], index: 2, kind: input, shape index: {}]   ;;  %s424_s0 = inlined_call_operand.vmem [shape: bf16[32,216], index: 0, kind: input, shape index: {}]   ;;  %s425_s3 = inlined_call_operand.vmem [shape: bf16[32,32], index: 3, kind: output, shape index: {}]  }
   0x1   :  { %v296_v0 = vld [vmem:[%s422_s1 + $0x38] sm:$0xff]  ;;  %v45_v1 = vld [vmem:[%s422_s1 + $0x68] sm:$0xf]  ;;  %v295_v3 = vld [vmem:[%s422_s1 + $0x30] sm:$0xff] }
   0x2   :  { %v121_v2 = vunpack.c.l.b16 %v45_v1  ;;  %160 = vmatpush.bf16.msra.mxu0 %v296_v0  ;;  %302 = vmatpush.bf16.msra.mxu2 %v296_v0  ;;  %v301_v6 = vld [vmem:[%s422_s1 + $0x60] sm:$0xff]  ;;  %v294_v7 = vld [vmem:[%s422_s1 + $0x28] sm:$0xff]  ;;  %v300_v8 = vld [vmem:[%s422_s1 + $0x58] sm:$0xff] }
   0x3   :  { %v293_v9 = vld [vmem:[%s422_s1 + $0x20] sm:$0xff]  ;;  %v299_v10 = vld [vmem:[%s422_s1 + $0x50] sm:$0xff]  ;;  %v292_v11 = vld [vmem:[%s422_s1 + $0x18] sm:$0xff] }
   0x4   :  { %v135_v4 = vpack.c.b16 %v121_v2, %v121_v2  ;;  %v298_v12 = vld [vmem:[%s422_s1 + $0x48] sm:$0xff]  ;;  %v291_v13 = vld [vmem:[%s422_s1 + $0x10] sm:$0xff]  ;;  %v297_v14 = vld [vmem:[%s422_s1 + $0x40] sm:$0xff] }
   0x5   :  { %v290_v15 = vld [vmem:[%s422_s1 + $0x8] sm:$0xff]  ;;  %v287_v16 = vld [vmem:[%s424_s0 + $0x14] sm:$0xf]  ;;  %v227_v17 = vld [vmem:[%s424_s0 + $0x18] sm:$0xf0] }
   0x6   :  { %v158_v5 = vsel %vm156_vm0, %v135_v4, 0  ;;  %161 = vmatpush.bf16.msra.mxu0 %v295_v3  ;;  %303 = vmatpush.bf16.msra.mxu2 %v295_v3  ;;  %v285_v18 = vld [vmem:[%s424_s0 + $0x4] sm:$0xf]  ;;  %v219_v19 = vld [vmem:[%s424_s0 + $0x8] sm:$0xf0]  ;;  %v230_v20 = vor.u32 %v287_v16, %v227_v17 }
   0x7   :  { %310 = vmatpush.bf16.msra.mxu3 %v158_v5  ;;  %181 = vmatpush.bf16.msra.mxu1 %v158_v5  ;;  %v289_v21 = vld [vmem:[%s422_s1] sm:$0xff]  ;;  %v286_v23 = vld [vmem:[%s424_s0 + $0x4] sm:$0xf0]  ;;  %v222_v24 = vor.u32 %v285_v18, %v219_v19  ;;  %v225_v25 = vld [vmem:[%s424_s0 + $0x10] sm:$0xf] }
   0x8   :  { %v217_v22 = vld [vmem:[%s424_s0] sm:$0xf]  ;;  %v288_v26 = vld [vmem:[%s424_s0 + $0x14] sm:$0xf0] }
   0x9   :  { %v218_v27 = vor.u32 %v286_v23, %v217_v22  ;;  %v226_v28 = vor.u32 %v288_v26, %v225_v25  ;;  %v316_v29 = vld [vmem:[%s423_s2] ss:$0 sm:$0xff] }
   0xa   :  { %162 = vmatpush.bf16.msra.mxu0 %v294_v7  ;;  %304 = vmatpush.bf16.msra.mxu2 %v294_v7 }
   0xb   :  { %311 = vmatpush.bf16.msra.mxu3 %v301_v6  ;;  %182 = vmatpush.bf16.msra.mxu1 %v301_v6 }
   0xe   :  { %163 = vmatpush.bf16.msra.mxu0 %v293_v9  ;;  %305 = vmatpush.bf16.msra.mxu2 %v293_v9 }
   0xf   :  { %312 = vmatpush.bf16.msra.mxu3 %v300_v8  ;;  %183 = vmatpush.bf16.msra.mxu1 %v300_v8 }
  0x12   :  { %164 = vmatpush.bf16.msra.mxu0 %v292_v11  ;;  %306 = vmatpush.bf16.msra.mxu2 %v292_v11 }
  0x13   :  { %313 = vmatpush.bf16.msra.mxu3 %v299_v10  ;;  %184 = vmatpush.bf16.msra.mxu1 %v299_v10 }
  0x16   :  { %165 = vmatpush.bf16.msra.mxu0 %v291_v13  ;;  %307 = vmatpush.bf16.msra.mxu2 %v291_v13 }
  0x17   :  { %314 = vmatpush.bf16.msra.mxu3 %v298_v12  ;;  %185 = vmatpush.bf16.msra.mxu1 %v298_v12 }
  0x1a   :  { %166 = vmatpush.bf16.msra.mxu0 %v290_v15  ;;  %308 = vmatpush.bf16.msra.mxu2 %v290_v15 }
  0x1b   :  { %315 = vmatpush.bf16.msra.mxu3 %v297_v14  ;;  %186 = vmatpush.bf16.msra.mxu1 %v297_v14 }
  0x1e   :  { %284 = vmatmul.msk.bf16.vlgmr.msra.gmra.mxu3 %vm149_vm1, %v230_v20  ;;  %167 = vmatpush.bf16.msra.mxu0 %v289_v21 }
  0x1f   :  { %283 = vmatmul.msk.bf16.vlgmr.msra.gmra.mxu1 %vm149_vm1, %v222_v24  ;;  %309 = vmatpush.bf16.msra.mxu2 %v289_v21 }
  0x21   :  { %168 = vmatmul.bf16.vlgmr.msra.gmra.mxu0 %v218_v27 }
  0x22   :  { %173 = vmatmul.bf16.vlgmr.msra.gmra.mxu2 %v226_v28 }
  0x9c   :  { %v188_v31 = vpop.f32.mrf.mxu1 }
  0x9e   :  { %v169_v30 = vpop.f32.mrf.mxu0 }
  0x9f   :  { %v170_v32 = vadd.f32 %v316_v29, %v169_v30 }
  0xa1   :  { %v189_v33 = vadd.f32 %v188_v31, %v170_v32  ;;  %v193_v36 = vpop.f32.mrf.mxu3 }
  0xa3   :  { %v198_v34 = vmax.f32 %v189_v33, 0.0 }
  0xa4   :  { %v190_v42 = vpop.f32.mrf.mxu1 }
  0xa5   :  { %v202_v35 = vpack.c.bf16 %v198_v34, %v198_v34  ;;  %v174_v37 = vpop.f32.mrf.mxu2 }
  0xa6   :  { %v175_v38 = vadd.f32 %v316_v29, %v174_v37  ;;  %v171_v39 = vpop.f32.mrf.mxu0 }
  0xa7   :  { %207 = vst.msk [vmem:[%s425_s3] sm:$0xf] %vm206_vm2, %v202_v35  ;;  %v172_v40 = vadd.f32 %v316_v29, %v171_v39 }
  0xa8   :  { %v194_v41 = vadd.f32 %v193_v36, %v175_v38 }
  0xa9   :  { %v191_v43 = vadd.f32 %v190_v42, %v172_v40  ;;  %v195_v50 = vpop.f32.mrf.mxu3 }
  0xaa   :  { %v200_v44 = vmax.f32 %v194_v41, 0.0 }
  0xab   :  { %v199_v45 = vmax.f32 %v191_v43, 0.0 }
  0xac   :  { %v204_v46 = vpack.c.bf16 %v200_v44, %v200_v44 }
  0xad   :  { %v203_v47 = vpack.c.bf16 %v199_v45, %v199_v45  ;;  %v176_v48 = vpop.f32.mrf.mxu2 }
  0xae   :  { %209 = vst.msk [vmem:[%s425_s3 + $0x8] sm:$0xf] %vm206_vm2, %v204_v46  ;;  %v177_v49 = vadd.f32 %v316_v29, %v176_v48 }
  0xaf   :  { %208 = vst.msk [vmem:[%s425_s3 + $0x4] sm:$0xf] %vm206_vm2, %v203_v47 }
  0xb0   :  { %v196_v51 = vadd.f32 %v195_v50, %v177_v49 }
  0xb2   :  { %v201_v52 = vmax.f32 %v196_v51, 0.0 }
  0xb4   :  { %v205_v53 = vpack.c.bf16 %v201_v52, %v201_v52 }
  0xb6   :  { %210 = vst.msk [vmem:[%s425_s3 + $0xc] sm:$0xf] %vm206_vm2, %v205_v53 }

// kernel: v2_forward.11
= control target key start
LH: loop header
LB: loop body
LE: loop exit
PB: predicated region body
PF: predicated region fallthrough
CT: control target
= control target key end

     0   :  { %vm175_vm0 = vcmask 261120   ;;  %vm220_vm1 = vcmask 519168   ;;  %s404_s1 = inlined_call_operand.vmem [shape: bf16[288,64], index: 1, kind: input, shape index: {}]   ;;  %s405_s0 = inlined_call_operand.vmem [shape: bf16[8,288], index: 0, kind: input, shape index: {}]   ;;  %s406_s2 = inlined_call_operand.vmem [shape: f32[1,64], index: 2, kind: input, shape index: {}]   ;;  %s407_s3 = inlined_call_operand.vmem [shape: bf16[8,64], index: 3, kind: output, shape index: {}]  }
   0x1   :  { %v306_v0 = vld [vmem:[%s404_s1 + $0x38] sm:$0xff]  ;;  %v305_v2 = vld [vmem:[%s404_s1 + $0x30] sm:$0xff]  ;;  %v316_v4 = vld [vmem:[%s404_s1 + $0x88] sm:$0xff] }
   0x2   :  { %v314_v1 = vld [vmem:[%s404_s1 + $0x78] sm:$0xff]  ;;  %179 = vmatpush.bf16.msra.mxu0 %v306_v0  ;;  %v313_v3 = vld [vmem:[%s404_s1 + $0x70] sm:$0xff]  ;;  %211 = vmatpush.bf16.msra.mxu2 %v316_v4  ;;  %v315_v5 = vld [vmem:[%s404_s1 + $0x80] sm:$0xff] }
   0x3   :  { %192 = vmatpush.bf16.msra.mxu1 %v314_v1  ;;  %v16_v6 = vld [vmem:[%s405_s0 + $0x8] sm:$0xf]  ;;  %v303_v11 = vld [vmem:[%s404_s1 + $0x20] sm:$0xff]  ;;  %v302_v13 = vld [vmem:[%s404_s1 + $0x18] sm:$0xff] }
   0x4   :  { %v61_v7 = vunpack.c.l.b16 %v16_v6  ;;  %v304_v8 = vld [vmem:[%s404_s1 + $0x28] sm:$0xff]  ;;  %v311_v12 = vld [vmem:[%s404_s1 + $0x60] sm:$0xff]  ;;  %v310_v14 = vld [vmem:[%s404_s1 + $0x58] sm:$0xff] }
   0x5   :  { %v312_v9 = vld [vmem:[%s404_s1 + $0x68] sm:$0xff]  ;;  %v301_v15 = vld [vmem:[%s404_s1 + $0x10] sm:$0xff]  ;;  %v15_v19 = vld [vmem:[%s405_s0] sm:$0xff] }
   0x6   :  { %180 = vmatpush.bf16.msra.mxu0 %v305_v2  ;;  %v64_v10 = vpack.c.b16 %v61_v7, %v61_v7  ;;  %212 = vmatpush.bf16.msra.mxu2 %v315_v5  ;;  %v309_v16 = vld [vmem:[%s404_s1 + $0x50] sm:$0xff]  ;;  %v300_v17 = vld [vmem:[%s404_s1 + $0x8] sm:$0xff]  ;;  %v59_v20 = vunpack.c.l.b16 %v15_v19  ;;  %v60_v21 = vunpack.c.h.b16 %v15_v19  ;;  %v299_v22 = vld [vmem:[%s404_s1] sm:$0xff] }
   0x7   :  { %193 = vmatpush.bf16.msra.mxu1 %v313_v3  ;;  %v308_v18 = vld [vmem:[%s404_s1 + $0x48] sm:$0xff]  ;;  %v307_v23 = vld [vmem:[%s404_s1 + $0x40] sm:$0xff] }
   0x8   :  { %v62_v24 = vpack.c.b16 %v59_v20, %v59_v20  ;;  %v63_v25 = vpack.c.b16 %v60_v21, %v60_v21  ;;  %v317_v28 = vld [vmem:[%s406_s2] ss:$0 sm:$0xff] }
   0x9   :  { %298 = vmatmul.msk.bf16.vlgmr.msra.gmra.mxu2 %vm175_vm0, %v64_v10 }
   0xa   :  { %181 = vmatpush.bf16.msra.mxu0 %v304_v8 }
   0xb   :  { %194 = vmatpush.bf16.msra.mxu1 %v312_v9 }
   0xe   :  { %182 = vmatpush.bf16.msra.mxu0 %v303_v11 }
   0xf   :  { %195 = vmatpush.bf16.msra.mxu1 %v311_v12 }
  0x12   :  { %183 = vmatpush.bf16.msra.mxu0 %v302_v13 }
  0x13   :  { %196 = vmatpush.bf16.msra.mxu1 %v310_v14 }
  0x16   :  { %184 = vmatpush.bf16.msra.mxu0 %v301_v15 }
  0x17   :  { %197 = vmatpush.bf16.msra.mxu1 %v309_v16 }
  0x1a   :  { %185 = vmatpush.bf16.msra.mxu0 %v300_v17 }
  0x1b   :  { %198 = vmatpush.bf16.msra.mxu1 %v308_v18 }
  0x1e   :  { %186 = vmatpush.bf16.msra.mxu0 %v299_v22 }
  0x1f   :  { %199 = vmatpush.bf16.msra.mxu1 %v307_v23 }
  0x21   :  { %187 = vmatmul.bf16.vlgmr.msra.gmra.mxu0 %v62_v24 }
  0x22   :  { %200 = vmatmul.bf16.vlgmr.msra.gmra.mxu1 %v63_v25 }
  0x8c   :  { %v214_v26 = vpop.f32.mrf.mxu2 }
  0x94   :  { %v216_v27 = vpop.f32.mrf.mxu2 }
  0x9e   :  { %v188_v29 = vpop.f32.mrf.mxu0 }
  0x9f   :  { %v201_v30 = vpop.f32.mrf.mxu1  ;;  %v189_v31 = vadd.f32 %v317_v28, %v188_v29 }
  0xa1   :  { %v202_v32 = vadd.f32 %v201_v30, %v189_v31 }
  0xa3   :  { %v215_v33 = vadd.f32 %v214_v26, %v202_v32 }
  0xa5   :  { %v218_v34 = vmax.f32 %v215_v33, 0.0 }
  0xa6   :  { %v190_v35 = vpop.f32.mrf.mxu0 }
  0xa7   :  { %v203_v36 = vpop.f32.mrf.mxu1  ;;  %v219_v37 = vpack.c.bf16 %v218_v34, %v218_v34 }
  0xa9   :  { %221 = vst.msk [vmem:[%s407_s3] sm:$0xf] %vm220_vm1, %v219_v37 }

// kernel: v2_forward.12
= control target key start
LH: loop header
LB: loop body
LE: loop exit
PB: predicated region body
PF: predicated region fallthrough
CT: control target
= control target key end

     0   :  { %s1355_s30 = smov 0   ;;  %s1357_s10 = smov 0   ;;  %s1545_s0 = inlined_call_operand.vmem [shape: bf16[2,4,64], index: 0, kind: input, shape index: {}]   ;;  %s1546_s1 = inlined_call_operand.vmem [shape: bf16[2,4,576], index: 1, kind: input, shape index: {}]   ;;  %s1547_s2 = inlined_call_operand.vmem [shape: bf16[64,32], index: 2, kind: input, shape index: {}]   ;;  %s1548_s3 = inlined_call_operand.vmem [shape: f32[1,32], index: 3, kind: input, shape index: {}]   ;;  %s1549_s4 = inlined_call_operand.vmem [shape: bf16[576,32], index: 4, kind: input, shape index: {}]   ;;  %s1550_s5 = inlined_call_operand.vmem [shape: f32[1,32], index: 5, kind: input, shape index: {}]   ;;  %s1551_s6 = inlined_call_operand.vmem [shape: bf16[32,32], index: 6, kind: input, shape index: {}]   ;;  %s1552_s7 = inlined_call_operand.vmem [shape: bf16[32,32], index: 7, kind: input, shape index: {}]   ;;  %s1553_s8 = inlined_call_operand.vmem [shape: f32[2,1,32], index: 8, kind: input, shape index: {}]   ;;  %s1554_s9 = inlined_call_operand.vmem [shape: bf16[2,4,32], index: 9, kind: output, shape index: {}]  }
   0x1   :  { %s1359_s11 = smov 0  }
   0x2 LB: > { %s31_s12 = sadd.s32 1, %s1299_s10  ;;  %p1023_p0 = scmp.ge.s32.totalorder %s1303_s11, 1  ;;  %s1303_s11 = sphi %s1359_s11, %s19_s11   ;;  %s1299_s10 = sphi %s1357_s10, %s1556_s10   ;;  %s1295_s30 = sphi %s1355_s30, %s1555_s30  }
   0x3   : > { %p33_p1 = scmp.ge.s32.totalorder %s31_s12, 2  ;;  %p329_p2 = scmp.lt.s32.totalorder %s1303_s11, 3 }
   0x5   : > { %s1558_s12 = smov (%p33_p1, %s31_s12), 0  ;;  %p330_p3 = pnand %p1023_p0, %p329_p2 }
   0x6   : > { %p381_p4 = scmp.lt.s32.totalorder (!%p330_p3), %s1295_s30, 1 }
   0x7   : > { %333 = sbr.rel (%p330_p3) target bundleno = 335 (0x14f), region = 56 }
   0xc   : > { %v1212_v0 = vld [vmem:[%s1547_s2 + $0x18] sm:$0xff]  ;;  %v1211_v4 = vld [vmem:[%s1547_s2 + $0x10] sm:$0xff]  ;;  %s1560_s30 = smov (!%p381_p4, %s1295_s30), 1  ;;  %v1210_v8 = vld [vmem:[%s1547_s2 + $0x8] sm:$0xff]  ;;  %vm447_vm0 = vcmask 523264   ;;  %vm861_vm1 = vcmask 261120  }
   0xd   : > { %v1220_v1 = vld [vmem:[%s1549_s4 + $0x38] sm:$0xff]  ;;  %455 = vmatpush.bf16.msra.mxu0 %v1212_v0  ;;  %v1219_v5 = vld [vmem:[%s1549_s4 + $0x30] sm:$0xff]  ;;  %s1253_s29 = smul.u32 10, %s1560_s30  ;;  %v1218_v9 = vld [vmem:[%s1549_s4 + $0x28] sm:$0xff]  ;;  %s1024_s24 = sshll.u32 %s1560_s30, 1  ;;  %vm913_vm2 = vcmask 254976  }
   0xe   : > { %v1228_v2 = vld [vmem:[%s1549_s4 + $0x78] sm:$0xff]  ;;  %774 = vmatpush.bf16.msra.mxu1 %v1220_v1  ;;  %v1227_v6 = vld [vmem:[%s1549_s4 + $0x70] sm:$0xff]  ;;  %v1226_v10 = vld [vmem:[%s1549_s4 + $0x68] sm:$0xff]  ;;  %s387_s18 = scalar_lea.vmem %s1545_s0, %s1024_s24  ;;  %s399_s15 = scalar_lea.vmem %s1553_s8, %s1560_s30 }
   0xf   : > { %v1236_v3 = vld [vmem:[%s1549_s4 + $0xb8] sm:$0xff]  ;;  %787 = vmatpush.bf16.msra.mxu2 %v1228_v2  ;;  %v1235_v7 = vld [vmem:[%s1549_s4 + $0xb0] sm:$0xff]  ;;  %s396_s19 = scalar_lea.vmem %s1546_s1, %s1253_s29  ;;  %v1234_v11 = vld [vmem:[%s1549_s4 + $0xa8] sm:$0xff]  ;;  %s406_s20 = scalar_lea.vmem %s1554_s9, %s1024_s24 }
  0x10   : > { %800 = vmatpush.bf16.msra.mxu3 %v1236_v3  ;;  %v409_v12 = vld [vmem:[%s396_s19] sm:$0xff]  ;;  %v410_v13 = vld [vmem:[%s396_s19 + $0x8] sm:$0x3]  ;;  %v1244_v18 = vld [vmem:[%s1549_s4 + $0xf8] sm:$0xff] }
  0x11   : > { %456 = vmatpush.bf16.msra.mxu0 %v1211_v4  ;;  %543 = vst [vmem:[#allocation1] ss:$4 sm:$0xff] %v409_v12  ;;  %v1209_v14 = vld [vmem:[%s1547_s2] sm:$0xff]  ;;  %v1216_v19 = vld [vmem:[%s1549_s4 + $0x18] sm:$0xff]  ;;  %v1243_v23 = vld [vmem:[%s1549_s4 + $0xf0] sm:$0xff] }
  0x12   : > { %775 = vmatpush.bf16.msra.mxu1 %v1219_v5  ;;  %v1217_v15 = vld [vmem:[%s1549_s4 + $0x20] sm:$0xff]  ;;  %546 = vst [vmem:[#allocation1 + $0x20] ss:$4 sm:$0xff] %v410_v13  ;;  %v1224_v21 = vld [vmem:[%s1549_s4 + $0x58] sm:$0xff]  ;;  %v1215_v24 = vld [vmem:[%s1549_s4 + $0x10] sm:$0xff] }
  0x13   : > { %788 = vmatpush.bf16.msra.mxu2 %v1227_v6  ;;  %v1225_v16 = vld [vmem:[%s1549_s4 + $0x60] sm:$0xff]  ;;  %v1232_v22 = vld [vmem:[%s1549_s4 + $0x98] sm:$0xff]  ;;  %v1223_v25 = vld [vmem:[%s1549_s4 + $0x50] sm:$0xff] }
  0x14   : > { %801 = vmatpush.bf16.msra.mxu3 %v1235_v7  ;;  %v1233_v17 = vld [vmem:[%s1549_s4 + $0xa0] sm:$0xff]  ;;  %v1231_v26 = vld [vmem:[%s1549_s4 + $0x90] sm:$0xff]  ;;  %v1242_v27 = vld [vmem:[%s1549_s4 + $0xe8] sm:$0xff] }
  0x15   : > { %457 = vmatpush.bf16.msra.mxu0 %v1210_v8  ;;  %v408_v20 = vld [vmem:[%s387_s18] sm:$0x3]  ;;  %v1214_v28 = vld [vmem:[%s1549_s4 + $0x8] sm:$0xff]  ;;  %v1240_v35 = vld [vmem:[%s1549_s4 + $0xd8] sm:$0xff] }
  0x16   : > { %776 = vmatpush.bf16.msra.mxu1 %v1218_v9  ;;  %v1222_v29 = vld [vmem:[%s1549_s4 + $0x48] sm:$0xff]  ;;  %v1241_v31 = vld [vmem:[%s1549_s4 + $0xe0] sm:$0xff]  ;;  %v1248_v36 = vld [vmem:[%s1549_s4 + $0x118] sm:$0xff] }
  0x17   : > { %789 = vmatpush.bf16.msra.mxu2 %v1226_v10  ;;  %v1230_v30 = vld [vmem:[%s1549_s4 + $0x88] sm:$0xff]  ;;  %v1213_v32 = vld [vmem:[%s1549_s4] sm:$0xff]  ;;  %v1239_v40 = vld [vmem:[%s1549_s4 + $0xd0] sm:$0xff] }
  0x18   : > { %802 = vmatpush.bf16.msra.mxu3 %v1234_v11  ;;  %v1221_v33 = vld [vmem:[%s1549_s4 + $0x40] sm:$0xff]  ;;  %v548_v38 = vld.sshfl [vmem:[#allocation1 + $0x8] sm:$0xff pattern:$0x73625140]  ;;  %v1247_v41 = vld [vmem:[%s1549_s4 + $0x110] sm:$0xff] }
  0x19   : > { %458 = vmatpush.bf16.msra.mxu0 %v1209_v14  ;;  %v1229_v34 = vld [vmem:[%s1549_s4 + $0x80] sm:$0xff]  ;;  %v549_v39 = vld.sshfl [vmem:[#allocation1 + $0x10] sm:$0xff pattern:$0x73625140]  ;;  %v1238_v42 = vld [vmem:[%s1549_s4 + $0xc8] sm:$0xff] }
  0x1a   : > { %777 = vmatpush.bf16.msra.mxu1 %v1217_v15  ;;  %v547_v37 = vld.sshfl [vmem:[#allocation1] sm:$0xff pattern:$0x73625140]  ;;  %v1246_v43 = vld [vmem:[%s1549_s4 + $0x108] sm:$0xff] }
  0x1b   : > { %790 = vmatpush.bf16.msra.mxu2 %v1225_v16  ;;  %v1237_v44 = vld [vmem:[%s1549_s4 + $0xc0] sm:$0xff]  ;;  %v550_v46 = vld.sshfl [vmem:[#allocation1 + $0x18] sm:$0xff pattern:$0x73625140]  ;;  %v1250_v48 = vld [vmem:[%s1551_s6 + $0x8] sm:$0xff] }
  0x1c   : > { %803 = vmatpush.bf16.msra.mxu3 %v1233_v17  ;;  %1043 = vmatmul.msk.bf16.vlgmr.msra.gmra.mxu0 %vm447_vm0, %v408_v20  ;;  %v1245_v45 = vld [vmem:[%s1549_s4 + $0x100] sm:$0xff]  ;;  %v1252_v50 = vld [vmem:[%s1552_s7 + $0x8] sm:$0xff] }
  0x1d   : > { %813 = vmatpush.bf16.msrb.mxu0 %v1244_v18  ;;  %v551_v47 = vld.sshfl [vmem:[#allocation1 + $0x20] sm:$0xff pattern:$0x73625140] }
  0x1e   : > { %778 = vmatpush.bf16.msra.mxu1 %v1216_v19  ;;  %v1249_v49 = vld [vmem:[%s1551_s6] sm:$0xff] }
  0x1f   : > { %791 = vmatpush.bf16.msra.mxu2 %v1224_v21  ;;  %v1278_v51 = vld [vmem:[%s1548_s3] ss:$0 sm:$0xff] }
  0x20   : > { %804 = vmatpush.bf16.msra.mxu3 %v1232_v22  ;;  %v1251_v52 = vld [vmem:[%s1552_s7] sm:$0xff] }
  0x21   : > { %814 = vmatpush.bf16.msrb.mxu0 %v1243_v23  ;;  %v1279_v59 = vld [vmem:[%s1550_s5] ss:$0 sm:$0xff] }
  0x22   : > { %779 = vmatpush.bf16.msra.mxu1 %v1215_v24  ;;  %v1280_v14 = vld [vmem:[%s399_s15] ss:$0 sm:$0xff] }
  0x23   : > { %792 = vmatpush.bf16.msra.mxu2 %v1223_v25 }
  0x24   : > { %805 = vmatpush.bf16.msra.mxu3 %v1231_v26 }
  0x25   : > { %815 = vmatpush.bf16.msrb.mxu0 %v1242_v27 }
  0x26   : > { %780 = vmatpush.bf16.msra.mxu1 %v1214_v28 }
  0x27   : > { %793 = vmatpush.bf16.msra.mxu2 %v1222_v29 }
  0x28   : > { %806 = vmatpush.bf16.msra.mxu3 %v1230_v30 }
  0x29   : > { %816 = vmatpush.bf16.msrb.mxu0 %v1241_v31 }
  0x2a   : > { %781 = vmatpush.bf16.msra.mxu1 %v1213_v32 }
  0x2b   : > { %794 = vmatpush.bf16.msra.mxu2 %v1221_v33 }
  0x2c   : > { %807 = vmatpush.bf16.msra.mxu3 %v1229_v34 }
  0x2d   : > { %817 = vmatpush.bf16.msrb.mxu0 %v1240_v35  ;;  %782 = vmatmul.bf16.vlgmr.msra.gmra.mxu1 %v547_v37 }
  0x2e   : > { %830 = vmatpush.bf16.msrb.mxu1 %v1248_v36  ;;  %795 = vmatmul.bf16.vlgmr.msra.gmra.mxu2 %v548_v38 }
  0x2f   : > { %808 = vmatmul.bf16.vlgmr.msra.gmra.mxu3 %v549_v39  ;;  %871 = vmatpush.bf16.msrb.mxu2 %v1252_v50 }
  0x30   : > { %899 = vmatpush.bf16.msrb.mxu3 %v1250_v48 }
  0x31   : > { %818 = vmatpush.bf16.msrb.mxu0 %v1239_v40 }
  0x32   : > { %831 = vmatpush.bf16.msrb.mxu1 %v1247_v41 }
  0x33   : > { %872 = vmatpush.bf16.msrb.mxu2 %v1251_v52 }
  0x34   : > { %900 = vmatpush.bf16.msrb.mxu3 %v1249_v49 }
  0x35   : > { %819 = vmatpush.bf16.msrb.mxu0 %v1238_v42 }
  0x36   : > { %832 = vmatpush.bf16.msrb.mxu1 %v1246_v43 }
  0x39   : > { %820 = vmatpush.bf16.msrb.mxu0 %v1237_v44 }
  0x3a   : > { %833 = vmatpush.bf16.msrb.mxu1 %v1245_v45 }
  0x3c   : > { %821 = vmatmul.bf16.vlgmr.msrb.gmra.mxu0 %v550_v46 }
  0x3d   : > { %1188 = vmatmul.msk.bf16.vlgmr.msrb.gmra.mxu1 %vm447_vm0, %v551_v47 }
  0x99   : > { %v460_v53 = vpop.f32.mrf.mxu0 }
  0x9a   : > { %v461_v54 = vadd.f32 %v1278_v51, %v460_v53 }
  0x9c   : > { %v464_v55 = vmax.f32 %v461_v54, 0.0 }
  0x9e   : > { %v465_v56 = vpack.c.bf16 %v464_v55, %v464_v55 }
  0xa0   : > { %1206 = vmatmul.msk.bf16.vlgmr.msrb.gmra.mxu3 %vm861_vm1, %v465_v56 }
  0xa1   : > { %v462_v57 = vpop.f32.mrf.mxu0 }
  0xaa   : > { %v783_v58 = vpop.f32.mrf.mxu1 }
  0xab   : > { %v784_v60 = vadd.f32 %v1279_v59, %v783_v58 }
  0xb1   : > { %v796_v61 = vpop.f32.mrf.mxu2 }
  0xb2   : > { %v809_v62 = vpop.f32.mrf.mxu3  ;;  %v785_v63 = vpop.f32.mrf.mxu1  ;;  %v797_v0 = vadd.f32 %v796_v61, %v784_v60 }
  0xb4   : > { %v810_v1 = vadd.f32 %v809_v62, %v797_v0 }
  0xb9   : > { %v822_v2 = vpop.f32.mrf.mxu0  ;;  %v798_v4 = vpop.f32.mrf.mxu2 }
  0xba   : > { %v823_v3 = vadd.f32 %v822_v2, %v810_v1  ;;  %v811_v5 = vpop.f32.mrf.mxu3  ;;  %v835_v6 = vpop.f32.mrf.mxu1 }
  0xbc   : > { %v836_v7 = vadd.f32 %v835_v6, %v823_v3 }
  0xbe   : > { %v839_v8 = vmax.f32 %v836_v7, 0.0 }
  0xc0   : > { %v840_v9 = vpack.c.bf16 %v839_v8, %v839_v8 }
  0xc1   : > { %v824_v10 = vpop.f32.mrf.mxu0 }
  0xc2   : > { %1197 = vmatmul.msk.bf16.vlgmr.msrb.gmra.mxu2 %vm861_vm1, %v840_v9  ;;  %v837_v11 = vpop.f32.mrf.mxu1 }
 0x123   : > { %v902_v12 = vpop.f32.mrf.mxu3 }
 0x12b   : > { %v904_v13 = vpop.f32.mrf.mxu3 }
 0x145   : > { %v874_v15 = vpop.f32.mrf.mxu2 }
 0x146   : > { %v903_v16 = vadd.f32 %v902_v12, %v874_v15 }
 0x148   : > { %v910_v17 = vadd.f32 %v1280_v14, %v903_v16 }
 0x14a   : > { %v911_v18 = vmax.f32 %v910_v17, 0.0 }
 0x14c   : > { %v912_v19 = vpack.c.bf16 %v911_v18, %v911_v18 }
 0x14d   : > { %v876_v20 = vpop.f32.mrf.mxu2 }
 0x14e   : > { %914 = vst.msk [vmem:[%s406_s20] sm:$0x3] %vm913_vm2, %v912_v19 }
 0x14f PF: > { %s19_s11 = sadd.s32 1, %s1303_s11   ;;  %s1555_s30 = smov %s1299_s10 }
 0x150   : > { %p16_p5 = scmp.ge.s32.totalorder %s19_s11, 4   ;;  %s1556_s10 = smov %s1558_s12 }
 0x152   :  { %18 = sbr.rel (!%p16_p5) target bundleno = 2 (0x2), region = 93 }

// kernel: v2_forward.13
= control target key start
LH: loop header
LB: loop body
LE: loop exit
PB: predicated region body
PF: predicated region fallthrough
CT: control target
= control target key end

     0   :  { %vm112_vm0 = vcmask 1043456   ;;  %vm87_vm1 = vcmask 195584   ;;  %vm197_vm2 = vcmask 125952   ;;  %s421_s1 = inlined_call_operand.vmem [shape: bf16[24,16], index: 1, kind: input, shape index: {}]   ;;  %s422_s2 = inlined_call_operand.vmem [shape: f32[1,16], index: 2, kind: input, shape index: {}]   ;;  %s423_s0 = inlined_call_operand.vmem [shape: bf16[128,24], index: 0, kind: input, shape index: {}]   ;;  %s424_s3 = inlined_call_operand.vmem [shape: bf16[128,16], index: 3, kind: output, shape index: {}]  }
   0x1   :  { %v33_v0 = vld [vmem:[%s421_s1 + $0x8] sm:$0xf]  ;;  %v270_v4 = vld [vmem:[%s421_s1] sm:$0xff]  ;;  %v264_v6 = vld [vmem:[%s423_s0 + $0x10] sm:$0xff] }
   0x2   :  { %v83_v1 = vunpack.c.l.b16 %v33_v0  ;;  %v262_v5 = vld [vmem:[%s423_s0] sm:$0xff]  ;;  %v268_v8 = vld [vmem:[%s423_s0 + $0x30] sm:$0xff]  ;;  %v263_v9 = vld [vmem:[%s423_s0 + $0x8] sm:$0xff] }
   0x3   :  { %v266_v7 = vld [vmem:[%s423_s0 + $0x20] sm:$0xff]  ;;  %v265_v10 = vld [vmem:[%s423_s0 + $0x18] sm:$0xff]  ;;  %v267_v11 = vld [vmem:[%s423_s0 + $0x28] sm:$0xff] }
   0x4   :  { %v85_v2 = vpack.c.b16 %v83_v1, %v83_v1  ;;  %v269_v12 = vld [vmem:[%s423_s0 + $0x38] sm:$0xff]  ;;  %v339_v13 = vld [vmem:[%s422_s2] ss:$0 sm:$0xff] }
   0x6   :  { %v114_v3 = vsel %vm112_vm0, %v85_v2, 0 }
   0x7   :  { %122 = vmatpush.bf16.msra.mxu0 %v114_v3  ;;  %271 = vmatpush.bf16.msra.mxu1 %v114_v3 }
   0x8   :  { %272 = vmatpush.bf16.msra.mxu2 %v114_v3  ;;  %273 = vmatpush.bf16.msra.mxu3 %v114_v3 }
   0xb   :  { %123 = vmatpush.bf16.msra.mxu0 %v270_v4  ;;  %274 = vmatpush.bf16.msra.mxu1 %v270_v4 }
   0xc   :  { %275 = vmatpush.bf16.msra.mxu2 %v270_v4  ;;  %276 = vmatpush.bf16.msra.mxu3 %v270_v4 }
   0xe   :  { %254 = vmatmul.msk.bf16.vlgmr.msra.gmra.mxu0 %vm87_vm1, %v262_v5  ;;  %256 = vmatmul.msk.bf16.vlgmr.msra.gmra.mxu1 %vm87_vm1, %v264_v6 }
   0xf   :  { %258 = vmatmul.msk.bf16.vlgmr.msra.gmra.mxu2 %vm87_vm1, %v266_v7  ;;  %260 = vmatmul.msk.bf16.vlgmr.msra.gmra.mxu3 %vm87_vm1, %v268_v8 }
  0x1e   :  { %255 = vmatmul.msk.bf16.gmra.mxu0 %vm87_vm1, %v263_v9  ;;  %257 = vmatmul.msk.bf16.gmra.mxu1 %vm87_vm1, %v265_v10 }
  0x1f   :  { %259 = vmatmul.msk.bf16.gmra.mxu2 %vm87_vm1, %v267_v11  ;;  %261 = vmatmul.msk.bf16.gmra.mxu3 %vm87_vm1, %v269_v12 }
  0x8b   :  { %v125_v14 = vpop.f32.mrf.mxu0  ;;  %v135_v15 = vpop.f32.mrf.mxu1 }
  0x8c   :  { %v126_v16 = vadd.f32 %v339_v13, %v125_v14  ;;  %v136_v17 = vadd.f32 %v339_v13, %v135_v15 }
  0x8e   :  { %v165_v18 = vmax.f32 %v126_v16, 0.0  ;;  %v169_v19 = vmax.f32 %v136_v17, 0.0 }
  0x90   :  { %v181_v20 = vpack.c.bf16 %v165_v18, %v165_v18  ;;  %v185_v21 = vpack.c.bf16 %v169_v19, %v169_v19 }
  0x92   :  { %198 = vst.msk [vmem:[%s424_s3] sm:$0xf] %vm197_vm2, %v181_v20  ;;  %v145_v22 = vpop.f32.mrf.mxu2  ;;  %v155_v23 = vpop.f32.mrf.mxu3 }
  0x93   :  { %202 = vst.msk [vmem:[%s424_s3 + $0x10] sm:$0xf] %vm197_vm2, %v185_v21  ;;  %v146_v24 = vadd.f32 %v339_v13, %v145_v22  ;;  %v156_v25 = vadd.f32 %v339_v13, %v155_v23  ;;  %v127_v26 = vpop.f32.mrf.mxu0  ;;  %v137_v27 = vpop.f32.mrf.mxu1 }
  0x94   :  { %v128_v28 = vadd.f32 %v339_v13, %v127_v26  ;;  %v138_v29 = vadd.f32 %v339_v13, %v137_v27 }
  0x95   :  { %v173_v30 = vmax.f32 %v146_v24, 0.0  ;;  %v177_v31 = vmax.f32 %v156_v25, 0.0 }
  0x96   :  { %v166_v32 = vmax.f32 %v128_v28, 0.0  ;;  %v170_v33 = vmax.f32 %v138_v29, 0.0 }
  0x97   :  { %v189_v34 = vpack.c.bf16 %v173_v30, %v173_v30  ;;  %v193_v35 = vpack.c.bf16 %v177_v31, %v177_v31 }
  0x98   :  { %v182_v36 = vpack.c.bf16 %v166_v32, %v166_v32  ;;  %v186_v37 = vpack.c.bf16 %v170_v33, %v170_v33 }
  0x99   :  { %206 = vst.msk [vmem:[%s424_s3 + $0x20] sm:$0xf] %vm197_vm2, %v189_v34 }
  0x9a   :  { %210 = vst.msk [vmem:[%s424_s3 + $0x30] sm:$0xf] %vm197_vm2, %v193_v35  ;;  %v147_v38 = vpop.f32.mrf.mxu2  ;;  %v157_v39 = vpop.f32.mrf.mxu3 }
  0x9b   :  { %199 = vst.msk [vmem:[%s424_s3 + $0x4] sm:$0xf] %vm197_vm2, %v182_v36  ;;  %v148_v40 = vadd.f32 %v339_v13, %v147_v38  ;;  %v158_v41 = vadd.f32 %v339_v13, %v157_v39  ;;  %v130_v42 = vpop.f32.mrf.mxu0  ;;  %v140_v43 = vpop.f32.mrf.mxu1 }
  0x9c   :  { %203 = vst.msk [vmem:[%s424_s3 + $0x14] sm:$0xf] %vm197_vm2, %v186_v37  ;;  %v131_v44 = vadd.f32 %v339_v13, %v130_v42  ;;  %v141_v45 = vadd.f32 %v339_v13, %v140_v43 }
  0x9d   :  { %v174_v46 = vmax.f32 %v148_v40, 0.0  ;;  %v178_v47 = vmax.f32 %v158_v41, 0.0 }
  0x9e   :  { %v167_v48 = vmax.f32 %v131_v44, 0.0  ;;  %v171_v49 = vmax.f32 %v141_v45, 0.0 }
  0x9f   :  { %v190_v50 = vpack.c.bf16 %v174_v46, %v174_v46  ;;  %v194_v51 = vpack.c.bf16 %v178_v47, %v178_v47 }
  0xa0   :  { %v183_v52 = vpack.c.bf16 %v167_v48, %v167_v48  ;;  %v187_v53 = vpack.c.bf16 %v171_v49, %v171_v49 }
  0xa1   :  { %207 = vst.msk [vmem:[%s424_s3 + $0x24] sm:$0xf] %vm197_vm2, %v190_v50 }
  0xa2   :  { %211 = vst.msk [vmem:[%s424_s3 + $0x34] sm:$0xf] %vm197_vm2, %v194_v51  ;;  %v150_v54 = vpop.f32.mrf.mxu2  ;;  %v160_v55 = vpop.f32.mrf.mxu3 }
  0xa3   :  { %200 = vst.msk [vmem:[%s424_s3 + $0x8] sm:$0xf] %vm197_vm2, %v183_v52  ;;  %v151_v56 = vadd.f32 %v339_v13, %v150_v54  ;;  %v161_v57 = vadd.f32 %v339_v13, %v160_v55  ;;  %v132_v58 = vpop.f32.mrf.mxu0  ;;  %v142_v59 = vpop.f32.mrf.mxu1 }
  0xa4   :  { %204 = vst.msk [vmem:[%s424_s3 + $0x18] sm:$0xf] %vm197_vm2, %v187_v53  ;;  %v133_v60 = vadd.f32 %v339_v13, %v132_v58  ;;  %v143_v61 = vadd.f32 %v339_v13, %v142_v59 }
  0xa5   :  { %v175_v62 = vmax.f32 %v151_v56, 0.0  ;;  %v179_v63 = vmax.f32 %v161_v57, 0.0 }
  0xa6   :  { %v168_v0 = vmax.f32 %v133_v60, 0.0  ;;  %v172_v1 = vmax.f32 %v143_v61, 0.0 }
  0xa7   :  { %v191_v2 = vpack.c.bf16 %v175_v62, %v175_v62  ;;  %v195_v3 = vpack.c.bf16 %v179_v63, %v179_v63 }
  0xa8   :  { %v184_v4 = vpack.c.bf16 %v168_v0, %v168_v0  ;;  %v188_v5 = vpack.c.bf16 %v172_v1, %v172_v1 }
  0xa9   :  { %208 = vst.msk [vmem:[%s424_s3 + $0x28] sm:$0xf] %vm197_vm2, %v191_v2 }
  0xaa   :  { %212 = vst.msk [vmem:[%s424_s3 + $0x38] sm:$0xf] %vm197_vm2, %v195_v3  ;;  %v152_v6 = vpop.f32.mrf.mxu2  ;;  %v162_v7 = vpop.f32.mrf.mxu3 }
  0xab   :  { %201 = vst.msk [vmem:[%s424_s3 + $0xc] sm:$0xf] %vm197_vm2, %v184_v4  ;;  %v153_v8 = vadd.f32 %v339_v13, %v152_v6  ;;  %v163_v9 = vadd.f32 %v339_v13, %v162_v7 }
  0xac   :  { %205 = vst.msk [vmem:[%s424_s3 + $0x1c] sm:$0xf] %vm197_vm2, %v188_v5 }
  0xad   :  { %v176_v10 = vmax.f32 %v153_v8, 0.0  ;;  %v180_v11 = vmax.f32 %v163_v9, 0.0 }
  0xaf   :  { %v192_v12 = vpack.c.bf16 %v176_v10, %v176_v10  ;;  %v196_v14 = vpack.c.bf16 %v180_v11, %v180_v11 }
  0xb1   :  { %209 = vst.msk [vmem:[%s424_s3 + $0x2c] sm:$0xf] %vm197_vm2, %v192_v12 }
  0xb2   :  { %213 = vst.msk [vmem:[%s424_s3 + $0x3c] sm:$0xf] %vm197_vm2, %v196_v14 }

// kernel: v2_forward.15
= control target key start
LH: loop header
LB: loop body
LE: loop exit
PB: predicated region body
PF: predicated region fallthrough
CT: control target
= control target key end

     0   :  { %9 = vsyncpa [#allocation3], 0  ;;  %s888_s0 = inlined_call_operand.vmem [shape: f32[32,8], index: 0, kind: input, shape index: {}]   ;;  %s889_s1 = inlined_call_operand.vmem [shape: f32[8,32], index: 1, kind: input, shape index: {}]   ;;  %s890_s2 = inlined_call_operand.vmem [shape: f32[2,8,8], index: 2, kind: input, shape index: {}]   ;;  %s891_s3 = inlined_call_operand.vmem [shape: f32[2,3,32,32], index: 3, kind: input, shape index: {}]   ;;  %s892_s4 = inlined_call_operand.hbm [shape: f32[2,3,32,32], index: 4, kind: output, shape index: {}]  }
   0x1   :  { %11 = vsyncpa [#allocation3 + $0x1], 0  ;;  %s716_s15 = smov 0   ;;  %s718_s16 = smov 0  }
   0x2   :  { %s720_s17 = smov 0   ;;  %s722_s18 = smov 0  }
   0x3   :  { %s724_s19 = smov 0   ;;  %s726_s20 = smov 0  }
   0x4 LB: > { %s520_s21 = sadd.s32 4294967295, %s687_s20   ;;  %s521_s22 = sadd.s32 4294967294, %s687_s20   ;;  %s687_s20 = sphi %s726_s20, %s17_s20   ;;  %s683_s19 = sphi %s724_s19, %s899_s19   ;;  %s679_s18 = sphi %s722_s18, %s898_s18   ;;  %s675_s17 = sphi %s720_s17, %s897_s17   ;;  %s671_s16 = sphi %s718_s16, %s896_s16   ;;  %s667_s15 = sphi %s716_s15, %s895_s15  }
   0x5   : > { %s29_s23 = sadd.s32 1, %s683_s19  ;;  %s139_s24 = sadd.s32 1, %s675_s17 }
   0x6   : > { %p31_p0 = scmp.ge.s32.totalorder %s29_s23, 2  ;;  %p149_p1 = scmp.ne.s32.totalorder %s675_s17, %s671_s16 }
   0x7   : > { %p150_p2 = scmp.eq.s32.totalorder %s520_s21, 1  ;;  %p155_p3 = scmp.ne.s32.totalorder %s671_s16, %s667_s15 }
   0x8   : > { %s901_s23 = smov (%p31_p0, %s29_s23), 0  ;;  %p156_p5 = scmp.eq.s32.totalorder %s521_s22, 1 }
   0x9   : > { %p756_p4 = por %p150_p2, %p149_p1  ;;  %s134_s26 = ssub.s32 %s683_s19, %s901_s23 }
   0xa   : > { %p525_p6 = scmp.ge.s32.totalorder %s687_s20, 1  ;;  %p137_p7 = scmp.eq.s32.totalorder %s134_s26, 0 }
   0xb   : > { %p763_p8 = por %p156_p5, %p155_p3  ;;  %p206_p9 = scmp.lt.s32.totalorder %s687_s20, 3 }
   0xc   : > { %s769_s28 = scalar_select %p137_p7, %s675_s17, %s139_s24  }
   0xd   : > { %p207_p10 = pnand %p525_p6, %p206_p9 }
   0xe   : > { %p251_p11 = scmp.lt.s32.totalorder (!%p207_p10), %s679_s18, 1  ;;  %s543_s9 = smul.u32 (!%p207_p10), 96, %s679_s18 }
   0xf   : > { %210 = sbr.rel (%p207_p10) target bundleno = 313 (0x139), region = 36  ;;  %s629_s5 = scalar_lea.hbm (!%p207_p10), %s892_s4, 192 }
  0x10   : > { %s410_s12 = scalar_lea.hbm (!%p207_p10), %s892_s4, %s543_s9 }
  0x11   : > { %s413_s13 = sshll.u32 (!%p207_p10), %s410_s12, 4  ;;  %s414_s13 = int_to_ptr.hbm [resolvable:$true] %s413_s13 }
  0x12   : > { %s623_s21 = sshra.s32 (!%p207_p10), %s414_s13, 4  ;;  %s624_s21 = int_to_ptr.hbm [resolvable:$true] %s623_s21 }
  0x13   : > { %s625_s22 = scalar_lea.hbm (!%p207_p10), %s624_s21, 96  ;;  %p630_p1 = scmp.lt.s32.totalorder (!%p207_p10), %s624_s21, %s892_s4 }
  0x14   : > { %s773_s29 = scalar_select %p251_p11, %s679_s18, 1  ;;  %v269_v0 = vld [vmem:[%s888_s0 + $0x10] sm:$0xff]  ;;  %vm271_vm0 = vcmask 64512   ;;  %v267_v1 = vld [vmem:[%s888_s0] sm:$0xff]  ;;  %v270_v3 = vld [vmem:[%s888_s0 + $0x18] sm:$0xff]  ;;  %vm383_vm1 = vcmask 261120  }
  0x15   : > { %v268_v4 = vld [vmem:[%s888_s0 + $0x8] sm:$0xff]  ;;  %v313_v5 = vld [vmem:[%s889_s1] sm:$0xff]  ;;  %p626_p12 = scmp.ne.s32.totalorder %s624_s21, %s625_s22  ;;  %p631_p2 = scmp.lt.s32.totalorder %s629_s5, %s625_s22 }
  0x16   : > { %s526_s30 = sshll.u32 %s773_s29, 3  ;;  %540 = vmatpush.msra.mxu3 %v313_v5  ;;  %341 = vmatpush.msra.mxu1 %v313_v5  ;;  %s542_s26 = smul.u32 96, %s773_s29 }
  0x17   : > { %s254_s7 = scalar_lea.vmem %s890_s2, %s526_s30  ;;  %s242_s30 = sand.u32 1, %s671_s16  }
  0x18   : > { %v266_v2 = vld [vmem:[%s254_s7] sm:$0xff]  ;;  %s807_s7 = scalar_lea.vmem %s891_s3, %s542_s26  ;;  %s541_s8 = smul.u32 96, %s242_s30 }
  0x19   : > { %539 = vmatpush.msra.mxu2 %v266_v2  ;;  %299 = vmatpush.msra.mxu0 %v266_v2  ;;  %v359_v11 = vld [vmem:[%s807_s7] sm:$0xff]  ;;  %v360_v20 = vld [vmem:[%s807_s7 + $0x8] sm:$0xff]  ;;  %v361_v27 = vld [vmem:[%s807_s7 + $0x10] sm:$0xff]  ;;  %s397_s14 = scalar_lea.sflag [#allocation3], %s242_s30  ;;  %p627_p13 = pnand %p626_p12, %p756_p4 }
  0x1a   : > { %530 = vmatmul.msk.f32.vlgmr.msra.gmra.mxu2 %vm271_vm0, %v269_v0  ;;  %528 = vmatmul.msk.f32.vlgmr.msra.gmra.mxu0 %vm271_vm0, %v267_v1  ;;  %v363_v12 = vld [vmem:[%s807_s7 + $0x20] sm:$0xff]  ;;  %s814_s29 = scalar_lea.vmem [#allocation2], %s541_s8  ;;  %v364_v21 = vld [vmem:[%s807_s7 + $0x28] sm:$0xff]  ;;  %v365_v28 = vld [vmem:[%s807_s7 + $0x30] sm:$0xff]  ;;  %p632_p3 = por %p631_p2, %p630_p1 }
  0x1b   : > { %v367_v13 = vld [vmem:[%s807_s7 + $0x40] sm:$0xff]  ;;  %v368_v22 = vld [vmem:[%s807_s7 + $0x48] sm:$0xff]  ;;  %v369_v29 = vld [vmem:[%s807_s7 + $0x50] sm:$0xff]  ;;  %s411_s18 = sshll.u32 %s814_s29, 4  ;;  %p628_p0 = pneg %p627_p13  ;;  %s412_s18 = int_to_ptr.vmem [resolvable:$true] %s411_s18 }
  0x1c   : > { %v362_v35 = vld [vmem:[%s807_s7 + $0x18] sm:$0xff] }
  0x1d   : > { %v366_v36 = vld [vmem:[%s807_s7 + $0x38] sm:$0xff]  ;;  %p633_p5 = pnand %p632_p3, %p628_p0 }
  0x1e   : > { %v370_v37 = vld [vmem:[%s807_s7 + $0x58] sm:$0xff] }
  0x22   : > { %531 = vmatmul.msk.f32.gmra.mxu2 %vm271_vm0, %v270_v3  ;;  %529 = vmatmul.msk.f32.gmra.mxu0 %vm271_vm0, %v268_v4 }
  0x97   : > { %v301_v6 = vpop.f32.mrf.mxu0 }
  0x98   : > { %532 = vmatmul.msk.f32.vlgmr.msra.gmra.mxu1 %vm271_vm0, %v301_v6 }
  0x9d   : > { %v307_v7 = vpop.f32.mrf.mxu2 }
  0x9e   : > { %534 = vmatmul.msk.f32.vlgmr.msra.gmra.mxu3 %vm271_vm0, %v307_v7 }
  0x9f   : > { %v304_v8 = vpop.f32.mrf.mxu0 }
  0xa0   : > { %533 = vmatmul.msk.f32.gmra.mxu1 %vm271_vm0, %v304_v8 }
  0xa5   : > { %v310_v9 = vpop.f32.mrf.mxu2 }
  0xa6   : > { %535 = vmatmul.msk.f32.gmra.mxu3 %vm271_vm0, %v310_v9 }
 0x115   : > { %v343_v10 = vpop.f32.mrf.mxu1 }
 0x116   : > { %601 = vtanh.f32 %v343_v10 }
 0x11c   : > { %v602_v14 = vpop.eup %601 }
 0x11d   : > { %v371_v15 = vmul.f32 %v602_v14, %v359_v11  ;;  %v375_v16 = vmul.f32 %v602_v14, %v363_v12  ;;  %v379_v17 = vmul.f32 %v602_v14, %v367_v13  ;;  %v346_v18 = vpop.f32.mrf.mxu1 }
 0x11e   : > { %603 = vtanh.f32 %v346_v18 }
 0x11f   : > { %384 = vst.msk [vmem:[%s814_s29] sm:$0xff] %vm383_vm1, %v371_v15 }
 0x120   : > { %388 = vst.msk [vmem:[%s814_s29 + $0x20] sm:$0xff] %vm383_vm1, %v375_v16 }
 0x121   : > { %392 = vst.msk [vmem:[%s814_s29 + $0x40] sm:$0xff] %vm383_vm1, %v379_v17  ;;  %v349_v19 = vpop.f32.mrf.mxu3 }
 0x122   : > { %605 = vtanh.f32 %v349_v19 }
 0x124   : > { %v604_v23 = vpop.eup %603 }
 0x125   : > { %v372_v24 = vmul.f32 %v604_v23, %v360_v20  ;;  %v376_v25 = vmul.f32 %v604_v23, %v364_v21  ;;  %v380_v26 = vmul.f32 %v604_v23, %v368_v22 }
 0x127   : > { %385 = vst.msk [vmem:[%s814_s29 + $0x8] sm:$0xff] %vm383_vm1, %v372_v24 }
 0x128   : > { %v606_v30 = vpop.eup %605  ;;  %389 = vst.msk [vmem:[%s814_s29 + $0x28] sm:$0xff] %vm383_vm1, %v376_v25 }
 0x129   : > { %v373_v31 = vmul.f32 %v606_v30, %v361_v27  ;;  %v377_v32 = vmul.f32 %v606_v30, %v365_v28  ;;  %v381_v33 = vmul.f32 %v606_v30, %v369_v29  ;;  %393 = vst.msk [vmem:[%s814_s29 + $0x48] sm:$0xff] %vm383_vm1, %v380_v26  ;;  %v352_v34 = vpop.f32.mrf.mxu3 }
 0x12a   : > { %607 = vtanh.f32 %v352_v34 }
 0x12b   : > { %386 = vst.msk [vmem:[%s814_s29 + $0x10] sm:$0xff] %vm383_vm1, %v373_v31 }
 0x12c   : > { %390 = vst.msk [vmem:[%s814_s29 + $0x30] sm:$0xff] %vm383_vm1, %v377_v32 }
 0x12d   : > { %394 = vst.msk [vmem:[%s814_s29 + $0x50] sm:$0xff] %vm383_vm1, %v381_v33 }
 0x130   : > { %v608_v38 = vpop.eup %607 }
 0x131   : > { %v374_v39 = vmul.f32 %v608_v38, %v362_v35  ;;  %v378_v40 = vmul.f32 %v608_v38, %v366_v36  ;;  %v382_v41 = vmul.f32 %v608_v38, %v370_v37 }
 0x133   : > { %387 = vst.msk [vmem:[%s814_s29 + $0x18] sm:$0xff] %vm383_vm1, %v374_v39 }
 0x134   : > { %391 = vst.msk [vmem:[%s814_s29 + $0x38] sm:$0xff] %vm383_vm1, %v378_v40 }
 0x135   : > { %395 = vst.msk [vmem:[%s814_s29 + $0x58] sm:$0xff] %vm383_vm1, %v382_v41 }
 0x136   : > { %636 = shalt.err (!%p633_p5)
}
 0x137   : > { %s689_s30 = smov 128   ;;  %s690_s8 = smov 8  }
 0x138   : > { %544 = dma.vmem_to_hbm [thread:$0]  (%p756_p4), %s412_s18, 1536, %s414_s13, %s397_s14, %s689_s30, %s689_s30, %s690_s8  }
 0x139 PF: > { %p550_p6 = scmp.ge.s32.totalorder %s687_s20, 2  ;;  %s428_s29 = sand.u32 1, %s667_s15  }
 0x13a   : > { %s429_s9 = scalar_lea.sflag [#allocation3], %s428_s29 }
 0x13b   : > { %p547_p7 = pnand %p550_p6, %p763_p8 }
 0x13d   : > { %p548_p9 = pneg %p547_p7 }
 0x13f   : > { %662 = dma.done.wait (%p548_p9), %s429_s9, 1536  }
 0x140   : > { %664 = vsyncadd (%p548_p9), %s429_s9, 4294965760  ;;  %s17_s20 = sadd.s32 1, %s687_s20   ;;  %s895_s15 = smov %s671_s16 }
 0x141   : > { %p14_p10 = scmp.ge.s32.totalorder %s17_s20, 4   ;;  %s896_s16 = smov %s675_s17 }
 0x142   : > { %s897_s17 = smov %s769_s28  ;;  %s898_s18 = smov %s683_s19 }
 0x143   : > { %s899_s19 = smov %s901_s23  ;;  %16 = sbr.rel (!%p14_p10) target bundleno = 4 (0x4), region = 77 }
 0x148   :  { %435 = vsyncpa [#allocation3], 1 }
 0x149   :  { %437 = vsyncpa [#allocation3 + $0x1], 1 }

// kernel: v2_forward.14
= control target key start
LH: loop header
LB: loop body
LE: loop exit
PB: predicated region body
PF: predicated region fallthrough
CT: control target
= control target key end

     0   :  { %s1597_s20 = smov 0   ;;  %s2026_s0 = inlined_call_operand.vmem [shape: bf16[2,10,10,48], index: 0, kind: input, shape index: {}]   ;;  %s2027_s1 = inlined_call_operand.vmem [shape: bf16[9,48,32], index: 1, kind: input, shape index: {}]   ;;  %s2028_s2 = inlined_call_operand.vmem [shape: f32[1,32], index: 2, kind: input, shape index: {}]   ;;  %s2029_s3 = inlined_call_operand.vmem [shape: bf16[32,1], index: 3, kind: input, shape index: {}]   ;;  %s2030_s4 = inlined_call_operand.<no memory space> [shape: f32[1,1], index: 4, kind: input, shape index: {}]   ;;  %s2031_s5 = inlined_call_operand.vmem [shape: f32[128,1], index: 5, kind: output, shape index: {}]  }
   0x1   :  { %v10_v0 = vstv %s2030_s4 }
   0x2   :  { %11 = vst [vmem:[#allocation2] sm:$0x1] %v10_v0 }
   0x3 LB: > { %s1603_s21 = sadd.s32 4294967295, %s1562_s20   ;;  %p1290_p0 = scmp.ge.s32.totalorder %s1562_s20, 1  ;;  %s1562_s20 = sphi %s1597_s20, %s17_s20  }
   0x4   : > { %p189_p1 = scmp.lt.s32.totalorder %s1562_s20, 3 }
   0x6   : > { %p190_p2 = pnand %p1290_p0, %p189_p1 }
   0x7   : > { %p217_p3 = scmp.lt.s32.totalorder (!%p190_p2), %s1603_s21, 1  ;;  %s1292_s14 = sshll.u32 (!%p190_p2), %s1603_s21, 3 }
   0x8   : > { %193 = sbr.rel (%p190_p2) target bundleno = 466 (0x1d2), region = 40  ;;  %p223_p4 = scmp.lt.s32.totalorder (!%p190_p2), %s1292_s14, 15 }
   0xd   : > { %v1512_v1 = vld [vmem:[%s2027_s1 + $0x10] sm:$0xff]  ;;  %v1515_v2 = vld [vmem:[%s2027_s1 + $0x28] sm:$0xff]  ;;  %v1514_v4 = vld [vmem:[%s2027_s1 + $0x20] sm:$0xff]  ;;  %s218_s29 = scalar_select %p217_p3, %s1603_s21, 1  ;;  %vm407_vm0 = vcmask 392192   ;;  %vm536_vm4 = vcmask 1042432  }
   0xe   : > { %1542 = vmatpush.bf16.msra.mxu3 %v1512_v1  ;;  %v1511_v3 = vld [vmem:[%s2027_s1 + $0x8] sm:$0xff]  ;;  %1539 = vmatpush.bf16.msra.mxu2 %v1515_v2  ;;  %v1510_v5 = vld [vmem:[%s2027_s1] sm:$0xff]  ;;  %v1513_v6 = vld [vmem:[%s2027_s1 + $0x18] sm:$0xff]  ;;  %vm255_vm1 = vsmask.f32 3328  ;;  %vm537_vm5 = vcmask 1046532  }
   0xf   : > { %425 = vmatpush.bf16.msra.mxu0 %v1515_v2  ;;  %504 = vmatpush.bf16.msra.mxu1 %v1512_v1  ;;  %s1545_s30 = smul.u32 80, %s218_s29  ;;  %vm256_vm2 = vsmask.f32 7440  ;;  %v1518_v7 = vld [vmem:[%s2027_s1 + $0x40] sm:$0xff]  ;;  %v1521_v8 = vld [vmem:[%s2027_s1 + $0x58] sm:$0xff]  ;;  %v1524_v12 = vld [vmem:[%s2027_s1 + $0x70] sm:$0xff] }
  0x10   : > { %v1517_v37 = vld [vmem:[%s2027_s1 + $0x38] sm:$0xff]  ;;  %v1520_v38 = vld [vmem:[%s2027_s1 + $0x50] sm:$0xff]  ;;  %vm1692_vm3 = vmor %vm255_vm1, %vm256_vm2  ;;  %vm1179_vm7 = vcmask 261120   ;;  %s2037_s14 = smov (!%p223_p4, %s1292_s14), 15  ;;  %vm1221_vm8 = vcmask 7168  }
  0x11   : > { %s1630_s12 = scalar_lea.vmem %s2026_s0, %s1545_s30  ;;  %v1523_v44 = vld [vmem:[%s2027_s1 + $0x68] sm:$0xff]  ;;  %v1516_v57 = vld [vmem:[%s2027_s1 + $0x30] sm:$0xff]  ;;  %v1522_v0 = vld [vmem:[%s2027_s1 + $0x60] sm:$0xff]  ;;  %s1293_s15 = sshll.u32 %s2037_s14, 3 }
  0x12   : > { %1543 = vmatpush.bf16.msra.mxu3 %v1511_v3  ;;  %1540 = vmatpush.bf16.msra.mxu2 %v1514_v4  ;;  %v1639_v9 = vld [vmem:[%s1630_s12 + $0x20] sm:$0xf]  ;;  %v1642_v10 = vld [vmem:[%s1630_s12 + $0x28] sm:$0xf]  ;;  %v1645_v11 = vld [vmem:[%s1630_s12 + $0x24] sm:$0x1]  ;;  %s226_s18 = scalar_lea.vmem %s2031_s5, %s1293_s15 }
  0x13   : > { %426 = vmatpush.bf16.msra.mxu0 %v1514_v4  ;;  %505 = vmatpush.bf16.msra.mxu1 %v1511_v3  ;;  %v461_v13 = vunpack.c.l.b16 %v1639_v9  ;;  %v462_v14 = vunpack.c.l.b16 %v1642_v10  ;;  %v1653_v15 = vld [vmem:[%s1630_s12 + $0x2c] sm:$0x1]  ;;  %v315_v16 = vshrl.u32 %v1639_v9, 16  ;;  %v318_v17 = vshll.u32 %v1639_v9, 16  ;;  %v1658_v18 = vld [vmem:[%s1630_s12] sm:$0xf]  ;;  %vm1837_vm6 = vmor %vm536_vm4, %vm537_vm5 }
  0x14   : > { %v324_v19 = vshll.u32 %v1645_v11, 16  ;;  %v329_v20 = vshrl.u32 %v1642_v10, 16  ;;  %v332_v21 = vshll.u32 %v1642_v10, 16  ;;  %v338_v22 = vshll.u32 %v1653_v15, 16  ;;  %v1665_v23 = vld [vmem:[%s1630_s12 + $0x4] sm:$0x1] }
  0x15   : > { %v1671_v24 = vpack.c.b16 %v462_v14, %v461_v13  ;;  %v317_v25 = vrot.slane %v315_v16, 4  ;;  %v320_v26 = vrot.slane %v318_v17, 5  ;;  %v1674_v27 = vld [vmem:[%s1630_s12 + $0x8] sm:$0xf]  ;;  %v1677_v28 = vld [vmem:[%s1630_s12 + $0xc] sm:$0x1]  ;;  %v457_v51 = vunpack.c.l.b16 %v1658_v18 }
  0x16   : > { %1544 = vmatpush.bf16.msra.mxu3 %v1510_v5  ;;  %1541 = vmatpush.bf16.msra.mxu2 %v1513_v6  ;;  %v326_v29 = vrot.slane %v324_v19, 5  ;;  %v331_v30 = vrot.slane %v329_v20, 4  ;;  %v334_v31 = vrot.slane %v332_v21, 5  ;;  %v340_v32 = vrot.slane %v338_v22, 5  ;;  %v1706_v56 = vld [vmem:[%s1630_s12 + $0x30] sm:$0xf] }
  0x17   : > { %427 = vmatpush.bf16.msra.mxu0 %v1513_v6  ;;  %506 = vmatpush.bf16.msra.mxu1 %v1510_v5  ;;  %v321_v33 = vor.u32 %v320_v26, %v317_v25  ;;  %v259_v34 = vshrl.u32 %v1658_v18, 16  ;;  %v262_v35 = vshll.u32 %v1658_v18, 16  ;;  %v268_v36 = vshll.u32 %v1665_v23, 16  ;;  %v1717_v62 = vld [vmem:[%s1630_s12 + $0x34] sm:$0x1]  ;;  %v1519_v63 = vld [vmem:[%s2027_s1 + $0x48] sm:$0xff] }
  0x18   : > { %v335_v40 = vor.u32 %v334_v31, %v331_v30  ;;  %v273_v41 = vshrl.u32 %v1674_v27, 16  ;;  %v276_v42 = vshll.u32 %v1674_v27, 16  ;;  %v282_v43 = vshll.u32 %v1677_v28, 16  ;;  %v1731_v6 = vld [vmem:[%s1630_s12 + $0x38] sm:$0xf] }
  0x19   : > { %1330 = vmatmul.msk.bf16.vlgmr.msra.gmra.mxu3 %vm407_vm0, %v1671_v24  ;;  %v322_v45 = vrot.slane %v321_v33, 4  ;;  %v261_v46 = vrot.slane %v259_v34, 4  ;;  %v264_v47 = vrot.slane %v262_v35, 5  ;;  %v270_v54 = vrot.slane %v268_v36, 5  ;;  %v1743_v19 = vld [vmem:[%s1630_s12 + $0x3c] sm:$0x1] }
  0x1a   : > { %625 = vmatpush.bf16.msrb.mxu2 %v1518_v7  ;;  %705 = vmatpush.bf16.msrb.mxu3 %v1521_v8  ;;  %v336_v48 = vrot.slane %v335_v40, 4  ;;  %v275_v49 = vrot.slane %v273_v41, 4  ;;  %v278_v50 = vrot.slane %v276_v42, 5  ;;  %v284_v55 = vrot.slane %v282_v43, 5  ;;  %v1747_v21 = vld [vmem:[%s1630_s12 + $0x10] sm:$0xf] }
  0x1b   : > { %798 = vmatpush.bf16.msrb.mxu0 %v1524_v12  ;;  %v327_v52 = vsel %vm1692_vm3, %v322_v45, %v326_v29  ;;  %v265_v53 = vor.u32 %v264_v47, %v261_v46  ;;  %v458_v61 = vunpack.c.l.b16 %v1674_v27  ;;  %v463_v3 = vunpack.c.l.b16 %v1706_v56  ;;  %v1753_v30 = vld [vmem:[%s1630_s12 + $0x14] sm:$0x1]  ;;  %v1530_v35 = vld [vmem:[%s2027_s1 + $0xa0] sm:$0xff]  ;;  %v1527_v36 = vld [vmem:[%s2027_s1 + $0x88] sm:$0xff] }
  0x1c   : > { %v341_v58 = vsel %vm1692_vm3, %v336_v48, %v340_v32  ;;  %v1713_v59 = vunpack.c.l.b16 %v327_v52  ;;  %v279_v60 = vor.u32 %v278_v50, %v275_v49  ;;  %v343_v7 = vshrl.u32 %v1706_v56, 16  ;;  %v1769_v40 = vld [vmem:[%s1630_s12 + $0x18] sm:$0xf]  ;;  %v1775_v46 = vld [vmem:[%s1630_s12 + $0x1c] sm:$0x1]  ;;  %882 = vmatpush.bf16.msrb.mxu1 %v1527_v36 }
  0x1d   : > { %v1725_v1 = vunpack.c.l.b16 %v341_v58  ;;  %v266_v2 = vrot.slane %v265_v53, 4  ;;  %v465_v5 = vpack.c.b16 %v458_v61, %v457_v51  ;;  %v346_v8 = vshll.u32 %v1706_v56, 16  ;;  %v1526_v58 = vld [vmem:[%s2027_s1 + $0x80] sm:$0xff] }
  0x1e   : > { %626 = vmatpush.bf16.msrb.mxu2 %v1517_v37  ;;  %706 = vmatpush.bf16.msrb.mxu3 %v1520_v38  ;;  %v280_v4 = vrot.slane %v279_v60, 4  ;;  %v464_v17 = vunpack.c.l.b16 %v1731_v6  ;;  %v352_v20 = vshll.u32 %v1717_v62, 16  ;;  %v345_v26 = vrot.slane %v343_v7, 4 }
  0x1f   : > { %799 = vmatpush.bf16.msrb.mxu0 %v1523_v44  ;;  %v1737_v12 = vpack.c.b16 %v1725_v1, %v1713_v59  ;;  %v271_v16 = vsel %vm1692_vm3, %v266_v2, %v270_v54  ;;  %1328 = vmatmul.msk.bf16.vlgmr.msra.gmra.mxu1 %vm407_vm0, %v465_v5  ;;  %v348_v29 = vrot.slane %v346_v8, 5  ;;  %v357_v33 = vshrl.u32 %v1731_v6, 16  ;;  %v1525_v8 = vld [vmem:[%s2027_s1 + $0x78] sm:$0xff] }
  0x20   : > { %v285_v22 = vsel %vm1692_vm3, %v280_v4, %v284_v55  ;;  %v377_v25 = vunpack.c.l.b16 %v271_v16  ;;  %v354_v32 = vrot.slane %v352_v20, 5  ;;  %v360_v34 = vshll.u32 %v1731_v6, 16  ;;  %883 = vmatpush.bf16.msrb.mxu1 %v1526_v58 }
  0x21   : > { %1314 = vmatmul.msk.bf16.vlgmr.msra.gmra.mxu2 %vm407_vm0, %v1737_v12  ;;  %v1757_v31 = vunpack.c.l.b16 %v285_v22  ;;  %v349_v37 = vor.u32 %v348_v29, %v345_v26  ;;  %v366_v38 = vshll.u32 %v1743_v19, 16  ;;  %v287_v41 = vshrl.u32 %v1747_v21, 16 }
  0x22   : > { %627 = vmatpush.bf16.msrb.mxu2 %v1516_v57  ;;  %707 = vmatpush.bf16.msrb.mxu3 %v1519_v63  ;;  %v290_v42 = vshll.u32 %v1747_v21, 16  ;;  %v359_v44 = vrot.slane %v357_v33, 4  ;;  %v362_v45 = vrot.slane %v360_v34, 5  ;;  %v296_v47 = vshll.u32 %v1753_v30, 16  ;;  %v1533_v57 = vld [vmem:[%s2027_s1 + $0xb8] sm:$0xff] }
  0x23   : > { %800 = vmatpush.bf16.msrb.mxu0 %v1522_v0  ;;  %v385_v43 = vpack.c.b16 %v1757_v31, %v377_v25  ;;  %v1782_v48 = vpack.c.b16 %v464_v17, %v463_v3  ;;  %v350_v49 = vrot.slane %v349_v37, 4  ;;  %v289_v50 = vrot.slane %v287_v41, 4  ;;  %v1536_v25 = vld [vmem:[%s2027_s1 + $0xd0] sm:$0xff] }
  0x24   : > { %v292_v51 = vrot.slane %v290_v42, 5  ;;  %v363_v52 = vor.u32 %v362_v45, %v359_v44  ;;  %v368_v53 = vrot.slane %v366_v38, 5  ;;  %v301_v54 = vshrl.u32 %v1769_v40, 16  ;;  %884 = vmatpush.bf16.msrb.mxu1 %v1525_v8 }
  0x25   : > { %1312 = vmatmul.msk.bf16.vlgmr.msra.gmra.mxu0 %vm407_vm0, %v385_v43  ;;  %v304_v55 = vshll.u32 %v1769_v40, 16  ;;  %v355_v60 = vsel %vm1692_vm3, %v350_v49, %v354_v32  ;;  %v298_v0 = vrot.slane %v296_v47, 5  ;;  %v310_v2 = vshll.u32 %v1775_v46, 16 }
  0x26   : > { %950 = vmatpush.bf16.msra.mxu2 %v1530_v35  ;;  %v293_v63 = vor.u32 %v292_v51, %v289_v50  ;;  %v364_v4 = vrot.slane %v363_v52, 4  ;;  %v303_v5 = vrot.slane %v301_v54, 4  ;;  %1031 = vmatpush.bf16.msra.mxu3 %v1533_v57  ;;  %v459_v20 = vunpack.c.l.b16 %v1747_v21 }
  0x27   : > { %v306_v7 = vrot.slane %v304_v55, 5  ;;  %v460_v22 = vunpack.c.l.b16 %v1769_v40  ;;  %v1808_v29 = vunpack.c.l.b16 %v355_v60  ;;  %v312_v33 = vrot.slane %v310_v2, 5  ;;  %1103 = vmatpush.bf16.msra.mxu0 %v1536_v25 }
  0x28   : > { %v294_v16 = vrot.slane %v293_v63, 4  ;;  %v369_v26 = vsel %vm1692_vm3, %v364_v4, %v368_v53  ;;  %v549_v45 = vrot.slane %v1753_v30, 5  ;;  %v1334_v47 = vrot.slane %v1747_v21, 9  ;;  %v1538_v53 = vld [vmem:[%s2029_s3 + $0x8] sm:$0xff] }
  0x29   : > { %1331 = vmatmul.msk.bf16.gmra.mxu3 %vm407_vm0, %v1782_v48  ;;  %v307_v32 = vor.u32 %v306_v7, %v303_v5  ;;  %v1810_v34 = vunpack.c.l.b16 %v369_v26  ;;  %v1814_v37 = vpack.c.b16 %v460_v22, %v459_v20  ;;  %v541_v49 = vrot.slane %v1665_v23, 5  ;;  %v1529_v23 = vld [vmem:[%s2027_s1 + $0x98] sm:$0xff]  ;;  %1198 = vmatpush.bf16.msra.mxu1 %v1538_v53 }
  0x2a   : > { %v299_v35 = vsel %vm1692_vm3, %v294_v16, %v298_v0  ;;  %v545_v50 = vrot.slane %v1677_v28, 5  ;;  %v1332_v51 = vrot.slane %v1658_v18, 9  ;;  %v1333_v52 = vrot.slane %v1674_v27, 9  ;;  %v1532_v18 = vld [vmem:[%s2027_s1 + $0xb0] sm:$0xff]  ;;  %951 = vmatpush.bf16.msra.mxu2 %v1529_v23 }
  0x2b   : > { %v308_v36 = vrot.slane %v307_v32, 4  ;;  %v1818_v38 = vpack.c.b16 %v1810_v34, %v1808_v29  ;;  %v379_v42 = vunpack.c.l.b16 %v299_v35  ;;  %v666_v54 = vpack.c.b16 %v459_v20, %v458_v61  ;;  %1032 = vmatpush.bf16.msra.mxu3 %v1532_v18 }
  0x2c   : > { %v550_v21 = vsel %vm1837_vm6, %v1334_v47, %v549_v45  ;;  %v542_v28 = vsel %vm1837_vm6, %v1332_v51, %v541_v49  ;;  %v546_v27 = vsel %vm1837_vm6, %v1333_v52, %v545_v50  ;;  %v1337_v30 = vrot.slane %v1642_v10, 9  ;;  %v246_v49 = vld [vmem:[%s1630_s12 + $0x44] sm:$0x1] }
  0x2d   : > { %v313_v41 = vsel %vm1692_vm3, %v308_v36, %v312_v33  ;;  %v580_v61 = vunpack.c.l.b16 %v550_v21  ;;  %v561_v55 = vrot.slane %v1653_v15, 5  ;;  %v578_v57 = vunpack.c.l.b16 %v542_v28  ;;  %v1535_v15 = vld [vmem:[%s2027_s1 + $0xc8] sm:$0xff] }
  0x2e   : > { %v1822_v43 = vunpack.c.l.b16 %v313_v41  ;;  %v579_v58 = vunpack.c.l.b16 %v546_v27  ;;  %v759_v2 = vpack.c.b16 %v379_v42, %v1757_v31  ;;  %v1336_v4 = vrot.slane %v1639_v9, 9  ;;  %1104 = vmatpush.bf16.msra.mxu0 %v1535_v15  ;;  %v1531_v9 = vld [vmem:[%s2027_s1 + $0xa8] sm:$0xff] }
  0x2f   : > { %1329 = vmatmul.msk.bf16.gmra.mxu1 %vm407_vm0, %v1814_v37  ;;  %v562_v60 = vsel %vm1837_vm6, %v1337_v30, %v561_v55  ;;  %v557_v5 = vrot.slane %v1645_v11, 5  ;;  %v1335_v7 = vrot.slane %v1769_v40, 9  ;;  %v553_v8 = vrot.slane %v1775_v46, 5  ;;  %v1528_v40 = vld [vmem:[%s2027_s1 + $0x90] sm:$0xff]  ;;  %1033 = vmatpush.bf16.msra.mxu3 %v1531_v9 }
  0x30   : > { %v1829_v44 = vpack.c.b16 %v1822_v43, %v379_v42  ;;  %v843_v63 = vpack.c.b16 %v580_v61, %v579_v58  ;;  %v586_v0 = vpack.c.b16 %v579_v58, %v578_v57  ;;  %v667_v16 = vpack.c.b16 %v461_v13, %v460_v22  ;;  %952 = vmatpush.bf16.msra.mxu2 %v1528_v40  ;;  %v1534_v42 = vld [vmem:[%s2027_s1 + $0xc0] sm:$0xff]  ;;  %v247_v58 = vld [vmem:[%s1630_s12 + $0x48] sm:$0xf] }
  0x31   : > { %1315 = vmatmul.msk.bf16.gmra.mxu2 %vm407_vm0, %v1818_v38  ;;  %v558_v31 = vsel %vm1837_vm6, %v1336_v4, %v557_v5  ;;  %v554_v11 = vsel %vm1837_vm6, %v1335_v7, %v553_v8  ;;  %v1339_v13 = vrot.slane %v1731_v6, 9  ;;  %v569_v22 = vrot.slane %v1743_v19, 5 }
  0x32   : > { %v582_v20 = vunpack.c.l.b16 %v558_v31  ;;  %v581_v46 = vunpack.c.l.b16 %v554_v11  ;;  %v760_v33 = vpack.c.b16 %v1713_v59, %v1822_v43  ;;  %v1338_v35 = vrot.slane %v1706_v56, 9  ;;  %v1907_v59 = vld [vmem:[%s1630_s12 + $0x40] sm:$0xf]  ;;  %1105 = vmatpush.bf16.msra.mxu0 %v1534_v42 }
  0x33   : > { %v570_v25 = vsel %vm1837_vm6, %v1339_v13, %v569_v22  ;;  %v565_v36 = vrot.slane %v1717_v62, 5  ;;  %v668_v19 = vpack.c.b16 %v463_v3, %v462_v14  ;;  %v583_v10 = vunpack.c.l.b16 %v562_v60 }
  0x34   : > { %v844_v26 = vpack.c.b16 %v582_v20, %v581_v46  ;;  %v587_v32 = vpack.c.b16 %v581_v46, %v580_v61  ;;  %v738_v56 = vshrl.u32 %v1907_v59, 16  ;;  %v741_v14 = vshll.u32 %v1907_v59, 16 }
  0x35   : > { %1313 = vmatmul.msk.bf16.gmra.mxu0 %vm407_vm0, %v1829_v44  ;;  %v566_v41 = vsel %vm1837_vm6, %v1338_v35, %v565_v36  ;;  %v588_v43 = vpack.c.b16 %v583_v10, %v582_v20  ;;  %v665_v50 = vunpack.c.l.b16 %v1907_v59  ;;  %v761_v51 = vpack.c.b16 %v1808_v29, %v1725_v1 }
  0x36   : > { %v584_v62 = vunpack.c.l.b16 %v566_v41  ;;  %v740_v45 = vrot.slane %v738_v56, 4  ;;  %v743_v47 = vrot.slane %v741_v14, 5  ;;  %v1406_v52 = vrot.slane %v1907_v59, 9 }
  0x37   : > { %v747_v23 = vshll.u32 %v246_v49, 16  ;;  %v669_v18 = vpack.c.b16 %v665_v50, %v464_v17  ;;  %v585_v1 = vunpack.c.l.b16 %v570_v25  ;;  %v983_v60 = vshrl.u32 %v247_v58, 16 }
  0x38   : > { %v845_v3 = vpack.c.b16 %v584_v62, %v583_v10  ;;  %v744_v21 = vor.u32 %v743_v47, %v740_v45  ;;  %v1473_v20 = vrot.slane %v247_v58, 9 }
  0x39   : > { %1380 = vmatmul.msk.bf16.vlgmr.msrb.gmra.mxu3 %vm407_vm0, %v666_v54  ;;  %v833_v54 = vrot.slane %v246_v49, 5  ;;  %v749_v61 = vrot.slane %v747_v23, 5  ;;  %v589_v57 = vpack.c.b16 %v585_v1, %v584_v62 }
  0x3a   : > { %v745_v27 = vrot.slane %v744_v21, 4 }
  0x3b   : > { %v834_v28 = vsel %vm1837_vm6, %v1406_v52, %v833_v54 }
  0x3c   : > { %v842_v30 = vunpack.c.l.b16 %v834_v28  ;;  %v750_v29 = vsel %vm1692_vm3, %v745_v27, %v749_v61 }
  0x3d   : > { %v758_v6 = vunpack.c.l.b16 %v750_v29  ;;  %v1537_v29 = vld [vmem:[%s2029_s3] sm:$0xff] }
  0x3e   : > { %v846_v55 = vpack.c.b16 %v842_v30, %v585_v1  ;;  %1199 = vmatpush.bf16.msra.mxu1 %v1537_v29 }
  0x3f   : > { %1425 = vmatmul.msk.bf16.vlgmr.msrb.gmra.mxu1 %vm407_vm0, %v843_v63  ;;  %v762_v17 = vpack.c.b16 %v758_v6, %v1810_v34  ;;  %v986_v63 = vshll.u32 %v247_v58, 16  ;;  %v985_v34 = vrot.slane %v983_v60, 4 }
  0x41   : > { %1358 = vmatmul.msk.bf16.vlgmr.msrb.gmra.mxu2 %vm407_vm0, %v586_v0  ;;  %v988_v0 = vrot.slane %v986_v63, 5 }
  0x45   : > { %1402 = vmatmul.msk.bf16.vlgmr.msrb.gmra.mxu0 %vm407_vm0, %v759_v2  ;;  %v248_v2 = vld [vmem:[%s1630_s12 + $0x4c] sm:$0x1] }
  0x46   : > { %v992_v4 = vshll.u32 %v248_v2, 16  ;;  %v1066_v40 = vrot.slane %v248_v2, 5 }
  0x48   : > { %v994_v5 = vrot.slane %v992_v4, 5  ;;  %v1067_v39 = vsel %vm1837_vm6, %v1473_v20, %v1066_v40 }
  0x49   : > { %1381 = vmatmul.msk.bf16.gmra.mxu3 %vm407_vm0, %v667_v16  ;;  %v1075_v25 = vunpack.c.l.b16 %v1067_v39 }
  0x4f   : > { %1426 = vmatmul.msk.bf16.gmra.mxu1 %vm407_vm0, %v844_v26  ;;  %v1076_v26 = vpack.c.b16 %v1075_v25, %v842_v30 }
  0x51   : > { %1359 = vmatmul.msk.bf16.gmra.mxu2 %vm407_vm0, %v587_v32 }
  0x55   : > { %1403 = vmatmul.msk.bf16.gmra.mxu0 %vm407_vm0, %v760_v33 }
  0x59   : > { %1382 = vmatmul.msk.bf16.gmra.mxu3 %vm407_vm0, %v668_v19 }
  0x5f   : > { %1427 = vmatmul.msk.bf16.gmra.mxu1 %vm407_vm0, %v845_v3 }
  0x61   : > { %1360 = vmatmul.msk.bf16.gmra.mxu2 %vm407_vm0, %v588_v43 }
  0x65   : > { %1404 = vmatmul.msk.bf16.gmra.mxu0 %vm407_vm0, %v761_v51 }
  0x69   : > { %1383 = vmatmul.msk.bf16.gmra.mxu3 %vm407_vm0, %v669_v18 }
  0x6f   : > { %1428 = vmatmul.msk.bf16.gmra.mxu1 %vm407_vm0, %v846_v55 }
  0x71   : > { %1361 = vmatmul.msk.bf16.gmra.mxu2 %vm407_vm0, %v589_v57 }
  0x75   : > { %1405 = vmatmul.msk.bf16.gmra.mxu0 %vm407_vm0, %v762_v17 }
  0x79   : > { %1469 = vmatmul.msk.bf16.vlgmr.msra.gmra.mxu3 %vm407_vm0, %v1829_v44  ;;  %v989_v44 = vor.u32 %v988_v0, %v985_v34 }
  0x81   : > { %1447 = vmatmul.msk.bf16.vlgmr.msra.gmra.mxu2 %vm407_vm0, %v1814_v37  ;;  %v990_v37 = vrot.slane %v989_v44, 4 }
  0x85   : > { %1492 = vmatmul.msk.bf16.vlgmr.msra.gmra.mxu0 %vm407_vm0, %v587_v32 }
  0x89   : > { %1470 = vmatmul.msk.bf16.gmra.mxu3 %vm407_vm0, %v1737_v12  ;;  %v995_v12 = vsel %vm1692_vm3, %v990_v37, %v994_v5 }
  0x8a   : > { %v1003_v7 = vunpack.c.l.b16 %v995_v12 }
  0x8c   : > { %v1004_v31 = vpack.c.b16 %v1003_v7, %v758_v6 }
  0x91   : > { %1448 = vmatmul.msk.bf16.gmra.mxu2 %vm407_vm0, %v1671_v24 }
  0x95   : > { %1493 = vmatmul.msk.bf16.gmra.mxu0 %vm407_vm0, %v588_v43 }
  0x99   : > { %1471 = vmatmul.msk.bf16.gmra.mxu3 %vm407_vm0, %v1818_v38  ;;  %v922_v38 = vunpack.c.l.b16 %v247_v58 }
  0x9b   : > { %v923_v22 = vpack.c.b16 %v922_v38, %v665_v50 }
  0x9c   : > { %v518_v15 = vpop.f32.mrf.mxu3  ;;  %v508_v62 = vpop.f32.mrf.mxu1 }
  0xa1   : > { %1449 = vmatmul.msk.bf16.gmra.mxu2 %vm407_vm0, %v1782_v48 }
  0xa2   : > { %v429_v24 = vpop.f32.mrf.mxu0 }
  0xa3   : > { %v509_v56 = vadd.f32 %v508_v62, %v429_v24 }
  0xa4   : > { %v520_v8 = vpop.f32.mrf.mxu3  ;;  %v439_v16 = vpop.f32.mrf.mxu2 }
  0xa5   : > { %1494 = vmatmul.msk.bf16.gmra.mxu0 %vm407_vm0, %v589_v57  ;;  %v519_v11 = vadd.f32 %v518_v15, %v439_v16  ;;  %v510_v47 = vpop.f32.mrf.mxu1 }
  0xa9   : > { %1472 = vmatmul.msk.bf16.gmra.mxu3 %vm407_vm0, %v1004_v31 }
  0xaa   : > { %v1951_v9 = vpop.f32.mrf.mxu0 }
  0xab   : > { %v511_v40 = vadd.f32 %v510_v47, %v1951_v9  ;;  %v1988_v9 = vld [vmem:[%s2028_s2] ss:$0 sm:$0xff] }
  0xac   : > { %v523_v13 = vpop.f32.mrf.mxu3  ;;  %v441_v46 = vpop.f32.mrf.mxu2 }
  0xad   : > { %v1955_v48 = vadd.f32 %v520_v8, %v441_v46  ;;  %v513_v54 = vpop.f32.mrf.mxu1 }
  0xb1   : > { %1450 = vmatmul.msk.bf16.gmra.mxu2 %vm407_vm0, %v923_v22 }
  0xb2   : > { %v434_v32 = vpop.f32.mrf.mxu0 }
  0xb3   : > { %v514_v23 = vadd.f32 %v513_v54, %v434_v32 }
  0xb4   : > { %v525_v33 = vpop.f32.mrf.mxu3  ;;  %v444_v35 = vpop.f32.mrf.mxu2 }
  0xb5   : > { %1495 = vmatmul.msk.bf16.gmra.mxu0 %vm407_vm0, %v1076_v26  ;;  %v524_v36 = vadd.f32 %v523_v13, %v444_v35  ;;  %v515_v0 = vpop.f32.mrf.mxu1 }
  0xba   : > { %v1959_v19 = vpop.f32.mrf.mxu0 }
  0xbb   : > { %v516_v62 = vadd.f32 %v515_v0, %v1959_v19 }
  0xbc   : > { %v709_v41 = vpop.f32.mrf.mxu3  ;;  %v446_v42 = vpop.f32.mrf.mxu2 }
  0xbd   : > { %v1964_v59 = vadd.f32 %v525_v33, %v446_v42  ;;  %v886_v37 = vpop.f32.mrf.mxu1 }
  0xc2   : > { %v802_v10 = vpop.f32.mrf.mxu0 }
  0xc4   : > { %v711_v14 = vpop.f32.mrf.mxu3  ;;  %v629_v3 = vpop.f32.mrf.mxu2 }
  0xc5   : > { %v649_v43 = vadd.f32 %v629_v3, %v509_v56 }
  0xc7   : > { %v729_v45 = vadd.f32 %v709_v41, %v649_v43 }
  0xc9   : > { %v822_v49 = vadd.f32 %v802_v10, %v729_v45 }
  0xca   : > { %v804_v50 = vpop.f32.mrf.mxu0 }
  0xcb   : > { %v906_v13 = vadd.f32 %v886_v37, %v822_v49 }
  0xcc   : > { %v714_v51 = vpop.f32.mrf.mxu3  ;;  %v631_v52 = vpop.f32.mrf.mxu2 }
  0xcd   : > { %v650_v38 = vadd.f32 %v631_v52, %v511_v40 }
  0xcf   : > { %v730_v46 = vadd.f32 %v711_v14, %v650_v38 }
  0xd1   : > { %v823_v33 = vadd.f32 %v804_v50, %v730_v46 }
  0xd2   : > { %v807_v21 = vpop.f32.mrf.mxu0 }
  0xd4   : > { %v716_v18 = vpop.f32.mrf.mxu3  ;;  %v634_v28 = vpop.f32.mrf.mxu2 }
  0xd5   : > { %v651_v27 = vadd.f32 %v634_v28, %v514_v23 }
  0xd7   : > { %v731_v61 = vadd.f32 %v714_v51, %v651_v27 }
  0xd9   : > { %v824_v30 = vadd.f32 %v807_v21, %v731_v61 }
  0xda   : > { %v809_v1 = vpop.f32.mrf.mxu0 }
  0xdc   : > { %v719_v55 = vpop.f32.mrf.mxu3  ;;  %v636_v57 = vpop.f32.mrf.mxu2 }
  0xdd   : > { %v652_v14 = vadd.f32 %v636_v57, %v516_v62 }
  0xdf   : > { %v732_v51 = vadd.f32 %v716_v18, %v652_v14 }
  0xe1   : > { %v825_v27 = vadd.f32 %v809_v1, %v732_v51 }
  0xe2   : > { %v812_v6 = vpop.f32.mrf.mxu0 }
  0xe4   : > { %v1969_v17 = vpop.f32.mrf.mxu3  ;;  %v639_v58 = vpop.f32.mrf.mxu2 }
  0xe5   : > { %v653_v60 = vadd.f32 %v639_v58, %v519_v11  ;;  %v888_v11 = vpop.f32.mrf.mxu1 }
  0xe6   : > { %v907_v53 = vadd.f32 %v888_v11, %v823_v33 }
  0xe7   : > { %v733_v63 = vadd.f32 %v719_v55, %v653_v60 }
  0xe9   : > { %v1971_v34 = vadd.f32 %v812_v6, %v733_v63 }
  0xea   : > { %v1973_v2 = vpop.f32.mrf.mxu0 }
  0xec   : > { %v724_v44 = vpop.f32.mrf.mxu3  ;;  %v641_v4 = vpop.f32.mrf.mxu2 }
  0xed   : > { %v891_v32 = vpop.f32.mrf.mxu1  ;;  %v654_v18 = vadd.f32 %v641_v4, %v1955_v48 }
  0xee   : > { %v908_v50 = vadd.f32 %v891_v32, %v824_v30 }
  0xf2   : > { %v817_v5 = vpop.f32.mrf.mxu0 }
  0xf4   : > { %v1975_v15 = vpop.f32.mrf.mxu3  ;;  %v644_v12 = vpop.f32.mrf.mxu2 }
  0xf5   : > { %v655_v7 = vadd.f32 %v644_v12, %v524_v36  ;;  %v893_v43 = vpop.f32.mrf.mxu1  ;;  %v734_v12 = vadd.f32 %v1969_v17, %v654_v18 }
  0xf6   : > { %v909_v6 = vadd.f32 %v893_v43, %v825_v27  ;;  %v1555_v27 = vld [vmem:[#allocation2] ss:$0 sm:$0xff] }
  0xf7   : > { %v735_v24 = vadd.f32 %v724_v44, %v655_v7 }
  0xf9   : > { %v1977_v8 = vadd.f32 %v817_v5, %v735_v24 }
  0xfa   : > { %v1979_v16 = vpop.f32.mrf.mxu0 }
  0xfc   : > { %v1035_v31 = vpop.f32.mrf.mxu3  ;;  %v1981_v20 = vpop.f32.mrf.mxu2 }
  0xfd   : > { %v896_v55 = vpop.f32.mrf.mxu1  ;;  %v656_v32 = vadd.f32 %v1981_v20, %v1964_v59 }
  0xfe   : > { %v910_v1 = vadd.f32 %v896_v55, %v1971_v34 }
 0x102   : > { %v1107_v39 = vpop.f32.mrf.mxu0 }
 0x104   : > { %v1037_v22 = vpop.f32.mrf.mxu3  ;;  %v954_v25 = vpop.f32.mrf.mxu2 }
 0x105   : > { %v974_v26 = vadd.f32 %v954_v25, %v906_v13  ;;  %v898_v24 = vpop.f32.mrf.mxu1 }
 0x107   : > { %v1055_v35 = vadd.f32 %v1035_v31, %v974_v26 }
 0x109   : > { %v1127_v10 = vadd.f32 %v1107_v39, %v1055_v35  ;;  %v827_v39 = vadd.f32 %v1973_v2, %v734_v12 }
 0x10a   : > { %v1109_v36 = vpop.f32.mrf.mxu0 }
 0x10b   : > { %v1139_v45 = vadd.f32 %v1988_v9, %v1127_v10  ;;  %v911_v46 = vadd.f32 %v898_v24, %v827_v39 }
 0x10c   : > { %v956_v41 = vpop.f32.mrf.mxu2  ;;  %v1040_v42 = vpop.f32.mrf.mxu3 }
 0x10d   : > { %v975_v56 = vadd.f32 %v956_v41, %v907_v53  ;;  %v1147_v19 = vmax.f32 %v1139_v45, 0.0  ;;  %v901_v17 = vpop.f32.mrf.mxu1  ;;  %v736_v53 = vadd.f32 %v1975_v15, %v656_v32 }
 0x10e   : > { %v912_v2 = vadd.f32 %v901_v17, %v1977_v8 }
 0x10f   : > { %v1056_v3 = vadd.f32 %v1037_v22, %v975_v56  ;;  %v829_v43 = vadd.f32 %v1979_v16, %v736_v53 }
 0x111   : > { %v1128_v47 = vadd.f32 %v1109_v36, %v1056_v3 }
 0x112   : > { %v1112_v49 = vpop.f32.mrf.mxu0 }
 0x113   : > { %v1140_v52 = vadd.f32 %v1988_v9, %v1128_v47 }
 0x114   : > { %v959_v54 = vpop.f32.mrf.mxu2  ;;  %v1042_v28 = vpop.f32.mrf.mxu3 }
 0x115   : > { %v1148_v21 = vmax.f32 %v1140_v52, 0.0  ;;  %v976_v23 = vadd.f32 %v959_v54, %v908_v50  ;;  %v903_v59 = vpop.f32.mrf.mxu1 }
 0x116   : > { %v913_v47 = vadd.f32 %v903_v59, %v829_v43 }
 0x117   : > { %v1155_v61 = vpack.c.bf16 %v1148_v21, %v1147_v19  ;;  %v1057_v29 = vadd.f32 %v1040_v42, %v976_v23 }
 0x119   : > { %1504 = vmatmul.msk.bf16.vlgmr.msra.gmra.mxu1 %vm1179_vm7, %v1155_v61  ;;  %v1129_v60 = vadd.f32 %v1112_v49, %v1057_v29 }
 0x11a   : > { %v1114_v57 = vpop.f32.mrf.mxu0 }
 0x11b   : > { %v1141_v37 = vadd.f32 %v1988_v9, %v1129_v60 }
 0x11c   : > { %v961_v58 = vpop.f32.mrf.mxu2  ;;  %v1045_v0 = vpop.f32.mrf.mxu3 }
 0x11d   : > { %v977_v30 = vadd.f32 %v961_v58, %v909_v6  ;;  %v1149_v40 = vmax.f32 %v1141_v37, 0.0 }
 0x11f   : > { %v1058_v63 = vadd.f32 %v1042_v28, %v977_v30 }
 0x121   : > { %v1130_v44 = vadd.f32 %v1114_v57, %v1058_v63 }
 0x122   : > { %v1117_v5 = vpop.f32.mrf.mxu0 }
 0x123   : > { %v1142_v7 = vadd.f32 %v1988_v9, %v1130_v44 }
 0x124   : > { %v964_v31 = vpop.f32.mrf.mxu2  ;;  %v1047_v13 = vpop.f32.mrf.mxu3 }
 0x125   : > { %v978_v11 = vadd.f32 %v964_v31, %v910_v1  ;;  %v1150_v38 = vmax.f32 %v1142_v7, 0.0 }
 0x127   : > { %v1156_v48 = vpack.c.bf16 %v1150_v38, %v1149_v40  ;;  %v1059_v4 = vadd.f32 %v1045_v0, %v978_v11 }
 0x129   : > { %1505 = vmatmul.msk.bf16.gmra.mxu1 %vm1179_vm7, %v1156_v48  ;;  %v1131_v34 = vadd.f32 %v1117_v5, %v1059_v4 }
 0x12a   : > { %v1119_v22 = vpop.f32.mrf.mxu0 }
 0x12b   : > { %v1143_v36 = vadd.f32 %v1988_v9, %v1131_v34 }
 0x12c   : > { %v966_v25 = vpop.f32.mrf.mxu2  ;;  %v1050_v42 = vpop.f32.mrf.mxu3 }
 0x12d   : > { %v979_v26 = vadd.f32 %v966_v25, %v911_v46  ;;  %v1151_v56 = vmax.f32 %v1143_v36, 0.0 }
 0x12f   : > { %v1060_v33 = vadd.f32 %v1047_v13, %v979_v26 }
 0x131   : > { %v1132_v35 = vadd.f32 %v1119_v22, %v1060_v33 }
 0x132   : > { %v1122_v3 = vpop.f32.mrf.mxu0 }
 0x133   : > { %v1144_v41 = vadd.f32 %v1988_v9, %v1132_v35 }
 0x134   : > { %v969_v62 = vpop.f32.mrf.mxu2  ;;  %v1052_v50 = vpop.f32.mrf.mxu3 }
 0x135   : > { %v980_v10 = vadd.f32 %v969_v62, %v912_v2  ;;  %v1152_v14 = vmax.f32 %v1144_v41, 0.0 }
 0x137   : > { %v1157_v45 = vpack.c.bf16 %v1152_v14, %v1151_v56  ;;  %v1061_v20 = vadd.f32 %v1050_v42, %v980_v10 }
 0x139   : > { %1506 = vmatmul.msk.bf16.gmra.mxu1 %vm1179_vm7, %v1157_v45  ;;  %v1133_v49 = vadd.f32 %v1122_v3, %v1061_v20 }
 0x13a   : > { %v1124_v52 = vpop.f32.mrf.mxu0 }
 0x13b   : > { %v1145_v19 = vadd.f32 %v1988_v9, %v1133_v49 }
 0x13c   : > { %v971_v8 = vpop.f32.mrf.mxu2 }
 0x13d   : > { %v981_v15 = vadd.f32 %v971_v8, %v913_v47  ;;  %v1153_v23 = vmax.f32 %v1145_v19, 0.0 }
 0x13f   : > { %v1062_v51 = vadd.f32 %v1052_v50, %v981_v15 }
 0x141   : > { %v1134_v54 = vadd.f32 %v1124_v52, %v1062_v51 }
 0x143   : > { %v1146_v21 = vadd.f32 %v1988_v9, %v1134_v54 }
 0x145   : > { %v1154_v16 = vmax.f32 %v1146_v21, 0.0 }
 0x147   : > { %v1158_v28 = vpack.c.bf16 %v1154_v16, %v1153_v23 }
 0x149   : > { %1507 = vmatmul.msk.bf16.gmra.mxu1 %vm1179_vm7, %v1158_v28 }
 0x196   : > { %v1201_v61 = vpop.f32.mrf.mxu1 }
 0x197   : > { %v1202_v29 = vadd.f32 %v1555_v27, %v1201_v61 }
 0x199   : > { %1222 = vst.msk [vmem:[%s226_s18] sm:$0xff] %vm1221_vm8, %v1202_v29 }
 0x19e   : > { %v1203_v9 = vpop.f32.mrf.mxu1 }
 0x19f   : > { %v1204_v55 = vadd.f32 %v1555_v27, %v1203_v9 }
 0x1a1   : > { %1223 = vst.msk [vmem:[%s226_s18 + $0x8] sm:$0xff] %vm1221_vm8, %v1204_v55 }
 0x1a6   : > { %v1206_v57 = vpop.f32.mrf.mxu1 }
 0x1a7   : > { %v1207_v6 = vadd.f32 %v1555_v27, %v1206_v57 }
 0x1a9   : > { %1224 = vst.msk [vmem:[%s226_s18 + $0x10] sm:$0xff] %vm1221_vm8, %v1207_v6 }
 0x1ae   : > { %v1208_v58 = vpop.f32.mrf.mxu1 }
 0x1af   : > { %v1209_v60 = vadd.f32 %v1555_v27, %v1208_v58 }
 0x1b1   : > { %1225 = vst.msk [vmem:[%s226_s18 + $0x18] sm:$0xff] %vm1221_vm8, %v1209_v60 }
 0x1b6   : > { %v1211_v30 = vpop.f32.mrf.mxu1 }
 0x1b7   : > { %v1212_v18 = vadd.f32 %v1555_v27, %v1211_v30 }
 0x1b9   : > { %1226 = vst.msk [vmem:[%s226_s18 + $0x20] sm:$0xff] %vm1221_vm8, %v1212_v18 }
 0x1be   : > { %v1213_v63 = vpop.f32.mrf.mxu1 }
 0x1bf   : > { %v1214_v0 = vadd.f32 %v1555_v27, %v1213_v63 }
 0x1c1   : > { %1227 = vst.msk [vmem:[%s226_s18 + $0x28] sm:$0xff] %vm1221_vm8, %v1214_v0 }
 0x1c6   : > { %v1216_v44 = vpop.f32.mrf.mxu1 }
 0x1c7   : > { %v1217_v37 = vadd.f32 %v1555_v27, %v1216_v44 }
 0x1c9   : > { %1228 = vst.msk [vmem:[%s226_s18 + $0x30] sm:$0xff] %vm1221_vm8, %v1217_v37 }
 0x1ce   : > { %v1218_v5 = vpop.f32.mrf.mxu1 }
 0x1cf   : > { %v1219_v1 = vadd.f32 %v1555_v27, %v1218_v5 }
 0x1d1   : > { %1229 = vst.msk [vmem:[%s226_s18 + $0x38] sm:$0xff] %vm1221_vm8, %v1219_v1 }
 0x1d2 PF: > { %s17_s20 = sadd.s32 1, %s1562_s20  }
 0x1d3   : > { %p14_p5 = scmp.ge.s32.totalorder %s17_s20, 4  }
 0x1d5   :  { %16 = sbr.rel (!%p14_p5) target bundleno = 3 (0x3), region = 78 }

</bundles_post_ra>
